<compile_context>
chip_gen: v5e
topology: v5e:2x2
jax: 0.10.0
libtpu: 0.0.40
codegen_flags: <defaults>
</compile_context>

<pallas_src>
import functools

import jax
import jax.numpy as jnp
from jax import lax
from jax.experimental import pallas as pl
from jax.experimental.pallas import tpu as pltpu


_BIG_MARGIN = 1e30  # effective margin for padded columns -> hinge term == 0


def _round_up(x: int, m: int) -> int:
    return ((x + m - 1) // m) * m


def _contrastive_tile_kernel(d_col_ref, d_row_ref, out_ref, acc_ref, *,
                             margin: float, n: int, blk: int):
    i = pl.program_id(0)          # row-block index    ("parallel")
    j = pl.program_id(1)          # column-block index ("arbitrary" reduction)

    @pl.when(j == 0)
    def _init():
        acc_ref[...] = jnp.zeros_like(acc_ref)

    # Symmetry: hinge(r, c) == hinge(c, r).  Only compute the block upper
    # triangle (j >= i); strictly-upper blocks stand in for their skipped
    # mirror block via weight 2, diagonal blocks (already internally symmetric)
    # get weight 1.  The accumulated total equals the full-matrix sum exactly.
    @pl.when(j >= i)
    def _compute():
        d_i = d_col_ref[...]      # (blk, 1)
        d_j = d_row_ref[...]      # (1, blk)

        # Padded columns get a huge margin so their hinge is exactly 0; this
        # folds the column mask into the subtraction we already do, keeping the
        # hot loop pure VPU with no extra N^2 select.
        col_ids = lax.broadcasted_iota(jnp.int32, (1, blk), 1) + j * blk
        eff_margin = jnp.where(col_ids < n, jnp.float32(margin),
                               jnp.float32(_BIG_MARGIN))

        hinge = jnp.maximum(jnp.abs(d_i - d_j) - eff_margin, 0.0)   # (blk, blk)
        w = jnp.where(j == i, jnp.float32(1.0), jnp.float32(2.0))
        acc_ref[...] += w * hinge

    @pl.when(j == pl.num_programs(1) - 1)
    def _finalize():
        # Zero padded rows (only matters for the last row block), then do the
        # single cross-sublane reduce to a lane-dense (1, blk) partial sum.
        row_ids = lax.broadcasted_iota(jnp.int32, (blk, 1), 0) + i * blk
        acc = jnp.where(row_ids < n, acc_ref[...], 0.0)
        out_ref[...] = jnp.sum(acc, axis=0, keepdims=True)[None]   # (1, 1, blk)


def contrastive_loss(pred_score, gt_score, margin: float = 0.2, *,
                     block_size: int = 1024, min_pallas_n: int = 128):
    """JAX/Pallas equivalent of ContrastiveLoss.forward."""
    pred_score = jnp.asarray(pred_score, jnp.float32)
    gt_score = jnp.asarray(gt_score, jnp.float32)

    # Glue: matches `pred_score.mean(dim=1).squeeze(1)` for >2-D inputs.
    if pred_score.ndim > 2:
        pred_score = jnp.mean(pred_score, axis=1)
        if pred_score.ndim > 1 and pred_score.shape[1] == 1:
            pred_score = jnp.squeeze(pred_score, axis=1)
    elif pred_score.ndim == 2:
        if pred_score.shape[1] != 1:
            raise ValueError(
                "2-D pred_score with trailing dim > 1 is not broadcast-compatible "
                "with gt_score in the original ContrastiveLoss; got shape "
                f"{pred_score.shape}.")
        pred_score = jnp.squeeze(pred_score, axis=1)

    pred = pred_score.reshape(-1)
    gt = gt_score.reshape(-1)
    if pred.shape[0] != gt.shape[0]:
        raise ValueError(
            f"pred_score reduces to length {pred.shape[0]} but gt_score has "
            f"length {gt.shape[0]}.")
    n = pred.shape[0]

    # Algebraic refactor: (p_i - p_j) - (g_i - g_j) == d_i - d_j with d = p - g.
    d = pred - gt

    # mean over n^2 pairs then /2, folded into one exact constant multiply.
    scale = 0.5 / float(n * n)

    if n < min_pallas_n:
        # Tiny problem: pallas_call launch / per-step overhead dominates;
        # plain XLA is strictly faster here.
        diff = d[:, None] - d[None, :]
        return jnp.sum(jnp.maximum(jnp.abs(diff) - margin, 0.0)) * scale

    # Adaptive square tile: multiple of 128, no lcm blow-up, padding waste
    # bounded by one partial tile per axis.
    block_size = max(128, _round_up(int(block_size), 128))
    blk = min(block_size, _round_up(n, 128))
    n_pad = _round_up(n, blk)
    if n_pad // blk == 1 and blk > 128:
        # Ensure >= 2 row blocks so the "parallel" axis can shard across both
        # v7x TensorCores (and often reduces padded work too).
        blk = _round_up((n + 1) // 2, 128)
        n_pad = _round_up(n, blk)
    g = n_pad // blk

    d_pad = jnp.pad(d, (0, n_pad - n))
    d_col = d_pad.reshape(n_pad, 1)      # sublane-major view (row-block operand)
    d_row = d_pad.reshape(1, n_pad)      # lane-dense view (column-block operand)

    kernel = functools.partial(_contrastive_tile_kernel,
                               margin=float(margin), n=n, blk=blk)

    partials = pl.pallas_call(
        kernel,
        out_shape=jax.ShapeDtypeStruct((g, 1, blk), jnp.float32),
        grid_spec=pltpu.PrefetchScalarGridSpec(
            num_scalar_prefetch=0,
            grid=(g, g),
            in_specs=[
                pl.BlockSpec((blk, 1), lambda i, j: (i, 0)),
                pl.BlockSpec((1, blk), lambda i, j: (0, j)),
            ],
            out_specs=pl.BlockSpec((1, 1, blk), lambda i, j: (i, 0, 0)),
            scratch_shapes=[pltpu.VMEM((blk, blk), jnp.float32)],
        ),
        compiler_params=pltpu.CompilerParams(
            dimension_semantics=("parallel", "arbitrary")),
    )(d_col, d_row)

    # Final lane reduction + scale in the wrapper (tiny).
    return jnp.sum(partials) * scale


def _reference(pred_score, gt_score, margin=0.2):
    pred_score = jnp.asarray(pred_score, jnp.float32)
    gt_score = jnp.asarray(gt_score, jnp.float32)
    if pred_score.ndim > 2:
        pred_score = jnp.mean(pred_score, axis=1)
        if pred_score.ndim > 1 and pred_score.shape[1] == 1:
            pred_score = jnp.squeeze(pred_score, axis=1)
    gt_diff = gt_score[:, None] - gt_score[None, :]
    pred_diff = pred_score[:, None] - pred_score[None, :]
    loss = jnp.maximum(0.0, jnp.abs(pred_diff - gt_diff) - margin)
    return jnp.mean(loss) / 2.0


if __name__ == "__main__":
    key = jax.random.PRNGKey(0)
    k1, k2, k3, k4, k5, k6 = jax.random.split(key, 6)

    # Test 1: N not a multiple of 8/128 so padding/masking is exercised.
    # Adaptive tiling gives blk=384, n_pad=768, grid (2,2): one strictly-upper
    # block (weight 2), two diagonal blocks (weight 1), one skipped block.
    N, T = 530, 4
    pred_score = jax.random.normal(k1, (N, T, 1), dtype=jnp.float32)
    gt_score = jax.random.uniform(k2, (N,), dtype=jnp.float32)
    loss = contrastive_loss(pred_score, gt_score, margin=0.2)
    jax.block_until_ready(loss)
    ref = _reference(pred_score, gt_score, margin=0.2)
    assert jnp.allclose(loss, ref, atol=1e-5, rtol=1e-4), (loss, ref)

    # Test 2: larger 1-D input, multi-block triangle (blk=1024, grid (3,3),
    # 6 computed blocks / 3 skipped).
    N3 = 2500
    pred3 = jax.random.normal(k5, (N3,), dtype=jnp.float32)
    gt3 = jax.random.uniform(k6, (N3,), dtype=jnp.float32)
    loss3 = contrastive_loss(pred3, gt3, margin=0.2)
    jax.block_until_ready(loss3)
    ref3 = _reference(pred3, gt3, margin=0.2)
    assert jnp.allclose(loss3, ref3, atol=1e-5, rtol=1e-4), (loss3, ref3)

    # Test 3: tiny-N path (plain-XLA fallback; a kernel launch would be pure
    # overhead).
    N2, T2 = 8, 16
    pred2 = jax.random.normal(k3, (N2, T2, 1), dtype=jnp.float32)
    gt2 = jax.random.uniform(k4, (N2,), dtype=jnp.float32)
    loss2 = contrastive_loss(pred2, gt2, margin=0.2)
    jax.block_until_ready(loss2)
    ref2 = _reference(pred2, gt2, margin=0.2)
    assert jnp.allclose(loss2, ref2, atol=1e-5, rtol=1e-4), (loss2, ref2)

    print("KERNEL_OK")
</pallas_src>

<mosaic_0001>
module attributes {stable_mosaic.version = 11 : i64} {
  func.func @_contrastive_tile_kernel(%arg0: i32, %arg1: i32, %arg2: memref<384x1xf32, #tpu.memory_space<vmem>>, %arg3: memref<1x384xf32, #tpu.memory_space<vmem>>, %arg4: memref<1x1x384xf32, #tpu.memory_space<vmem>>, %arg5: memref<384x384xf32, #tpu.memory_space<vmem>>) attributes {dimension_semantics = [#tpu.dimension_semantics<parallel>, #tpu.dimension_semantics<arbitrary>], iteration_bounds = array<i64: 2, 2>, scalar_prefetch = 0 : i64, scratch_operands = 1 : i64, tpu.core_type = #tpu.core_type<tc>, window_params = [{transform_indices = @transform_0, window_bounds = array<i64: 384, 1>}, {transform_indices = @transform_1, window_bounds = array<i64: 1, 384>}, {transform_indices = @transform_2, window_bounds = array<i64: 1, 1, 384>}]} {
    %c0_i32 = arith.constant 0 : i32
    %0 = arith.cmpi eq, %arg1, %c0_i32 : i32
    %1 = arith.extui %0 : i1 to i32
    %c0_i32_0 = arith.constant 0 : i32
    %2 = arith.cmpi ne, %1, %c0_i32_0 : i32
    scf.if %2 {
      %cst = arith.constant 0.000000e+00 : f32
      %9 = vector.broadcast %cst : f32 to vector<384x384xf32>
      %c0 = arith.constant 0 : index
      %c0_3 = arith.constant 0 : index
      %10 = vector.load %arg5[%c0, %c0_3] : memref<384x384xf32, #tpu.memory_space<vmem>>, vector<384x384xf32>
      tpu.vector_store %arg5[%c0, %c0_3], %9 {strides = array<i32>} : memref<384x384xf32, #tpu.memory_space<vmem>>, vector<384x384xf32>,
    } else {
    }
    %3 = arith.cmpi sge, %arg1, %arg0 : i32
    %4 = arith.extui %3 : i1 to i32
    %c0_i32_1 = arith.constant 0 : i32
    %5 = arith.cmpi ne, %4, %c0_i32_1 : i32
    scf.if %5 {
      %c0 = arith.constant 0 : index
      %c0_3 = arith.constant 0 : index
      %9 = vector.load %arg2[%c0, %c0_3] : memref<384x1xf32, #tpu.memory_space<vmem>>, vector<384x1xf32>
      %c0_4 = arith.constant 0 : index
      %c0_5 = arith.constant 0 : index
      %10 = vector.load %arg3[%c0_4, %c0_5] : memref<1x384xf32, #tpu.memory_space<vmem>>, vector<1x384xf32>
      %11 = tpu.iota {dimensions = array<i32: 1>} : vector<1x384xi32>
      %c384_i32 = arith.constant 384 : i32
      %12 = arith.muli %arg1, %c384_i32 : i32
      %13 = vector.broadcast %12 : i32 to vector<1x384xi32>
      %14 = arith.addi %11, %13 : vector<1x384xi32>
      %c530_i32 = arith.constant 530 : i32
      %15 = vector.broadcast %c530_i32 : i32 to vector<1x384xi32>
      %16 = arith.cmpi slt, %14, %15 : vector<1x384xi32>
      %cst = arith.constant 2.000000e-01 : f32
      %cst_6 = arith.constant 1.000000e+30 : f32
      %17 = vector.broadcast %cst : f32 to vector<1x384xf32>
      %18 = vector.broadcast %cst_6 : f32 to vector<1x384xf32>
      %19 = arith.select %16, %17, %18 : vector<1x384xi1>, vector<1x384xf32>
      %20 = vector.broadcast %9 : vector<384x1xf32> to vector<384x384xf32>
      %21 = vector.broadcast %10 : vector<1x384xf32> to vector<384x384xf32>
      %22 = arith.subf %20, %21 : vector<384x384xf32>
      %23 = math.absf %22 : vector<384x384xf32>
      %24 = vector.broadcast %19 : vector<1x384xf32> to vector<384x384xf32>
      %25 = arith.subf %23, %24 : vector<384x384xf32>
      %cst_7 = arith.constant 0.000000e+00 : f32
      %26 = vector.broadcast %cst_7 : f32 to vector<384x384xf32>
      %27 = arith.maximumf %25, %26 : vector<384x384xf32>
      %28 = arith.cmpi eq, %arg1, %arg0 : i32
      %cst_8 = arith.constant 1.000000e+00 : f32
      %cst_9 = arith.constant 2.000000e+00 : f32
      %29 = arith.select %28, %cst_8, %cst_9 : f32
      %c0_10 = arith.constant 0 : index
      %c0_11 = arith.constant 0 : index
      %30 = vector.load %arg5[%c0_10, %c0_11] : memref<384x384xf32, #tpu.memory_space<vmem>>, vector<384x384xf32>
      %31 = vector.broadcast %29 : f32 to vector<384x384xf32>
      %32 = arith.mulf %31, %27 : vector<384x384xf32>
      %33 = arith.addf %30, %32 : vector<384x384xf32>
      %c0_12 = arith.constant 0 : index
      %c0_13 = arith.constant 0 : index
      %34 = vector.load %arg5[%c0_12, %c0_13] : memref<384x384xf32, #tpu.memory_space<vmem>>, vector<384x384xf32>
      tpu.vector_store %arg5[%c0_12, %c0_13], %33 {strides = array<i32>} : memref<384x384xf32, #tpu.memory_space<vmem>>, vector<384x384xf32>,
    } else {
    }
    %c1_i32 = arith.constant 1 : i32
    %6 = arith.cmpi eq, %arg1, %c1_i32 : i32
    %7 = arith.extui %6 : i1 to i32
    %c0_i32_2 = arith.constant 0 : i32
    %8 = arith.cmpi ne, %7, %c0_i32_2 : i32
    scf.if %8 {
      %9 = tpu.iota {dimensions = array<i32: 0>} : vector<384x1xi32>
      %c384_i32 = arith.constant 384 : i32
      %10 = arith.muli %arg0, %c384_i32 : i32
      %11 = vector.broadcast %10 : i32 to vector<384x1xi32>
      %12 = arith.addi %9, %11 : vector<384x1xi32>
      %c530_i32 = arith.constant 530 : i32
      %13 = vector.broadcast %c530_i32 : i32 to vector<384x1xi32>
      %14 = arith.cmpi slt, %12, %13 : vector<384x1xi32>
      %c0 = arith.constant 0 : index
      %c0_3 = arith.constant 0 : index
      %15 = vector.load %arg5[%c0, %c0_3] : memref<384x384xf32, #tpu.memory_space<vmem>>, vector<384x384xf32>
      %cst = arith.constant 0.000000e+00 : f32
      %16 = vector.shape_cast %14 : vector<384x1xi1> to vector<384x1xi1>
      %17 = vector.broadcast %16 : vector<384x1xi1> to vector<384x384xi1>
      %18 = vector.broadcast %cst : f32 to vector<384x384xf32>
      %19 = arith.select %17, %15, %18 : vector<384x384xi1>, vector<384x384xf32>
      %cst_4 = arith.constant dense<0.000000e+00> : vector<384xf32>
      %20 = vector.multi_reduction <add>, %19, %cst_4 [0] : vector<384x384xf32> to vector<384xf32>
      %21 = vector.shape_cast %20 : vector<384xf32> to vector<1x384xf32>
      %22 = vector.shape_cast %21 : vector<1x384xf32> to vector<1x1x384xf32>
      %c0_5 = arith.constant 0 : index
      %c0_6 = arith.constant 0 : index
      %c0_7 = arith.constant 0 : index
      %23 = vector.load %arg4[%c0_5, %c0_6, %c0_7] : memref<1x1x384xf32, #tpu.memory_space<vmem>>, vector<1x1x384xf32>
      tpu.vector_store %arg4[%c0_5, %c0_6, %c0_7], %22 {strides = array<i32>} : memref<1x1x384xf32, #tpu.memory_space<vmem>>, vector<1x1x384xf32>,
    } else {
    }
    return
  }
  func.func @transform_0(%arg0: i32, %arg1: i32) -> (i32, i32) {
    %c0_i32 = arith.constant 0 : i32
    %c0_i32_0 = arith.constant 0 : i32
    return %arg0, %c0_i32 : i32, i32
  }
  func.func @transform_1(%arg0: i32, %arg1: i32) -> (i32, i32) {
    %c0_i32 = arith.constant 0 : i32
    %c0_i32_0 = arith.constant 0 : i32
    return %c0_i32, %arg1 : i32, i32
  }
  func.func @transform_2(%arg0: i32, %arg1: i32) -> (i32, i32, i32) {
    %c0_i32 = arith.constant 0 : i32
    %c0_i32_0 = arith.constant 0 : i32
    %c0_i32_1 = arith.constant 0 : i32
    return %arg0, %c0_i32, %c0_i32_0 : i32, i32, i32
  }
}

</mosaic_0001>

<bundles_post_ra>
// kernel: tpu_custom_call.1
= control target key start
LH: loop header
LB: loop body
LE: loop exit
PB: predicated region body
PF: predicated region fallthrough
CT: control target
= control target key end

     0   :  { %7 = vsyncpa [#allocation4], 0  ;;  %s4179_s0 = inlined_call_operand.vmem [shape: f32[768,1], index: 0, kind: input, shape index: {}]   ;;  %s4180_s1 = inlined_call_operand.vmem [shape: f32[1,768], index: 1, kind: input, shape index: {}]   ;;  %s4181_s2 = inlined_call_operand.hbm [shape: f32[2,1,384], index: 2, kind: output, shape index: {}]  }
   0x1   :  { %9 = vsyncpa [#allocation4 + $0x1], 0  ;;  %s2801_s9 = smov 0   ;;  %s2803_s10 = smov 0  }
   0x2   :  { %s2805_s11 = smov 0   ;;  %s2807_s12 = smov 0  }
   0x3   :  { %s2809_s13 = smov 0   ;;  %s2811_s14 = smov 0  }
   0x4   :  { %s2813_s15 = smov 0   ;;  %s2815_s16 = smov 0  }
   0x5 LB: > { %s2597_s17 = sadd.s32 4294967295, %s2781_s16   ;;  %s2598_s18 = sadd.s32 4294967294, %s2781_s16   ;;  %s2781_s16 = sphi %s2815_s16, %s15_s16   ;;  %s2777_s15 = sphi %s2813_s15, %s4210_s15   ;;  %s2773_s14 = sphi %s2811_s14, %s4209_s14   ;;  %s2769_s13 = sphi %s2809_s13, %s4208_s13   ;;  %s2765_s12 = sphi %s2807_s12, %s4207_s12   ;;  %s2761_s11 = sphi %s2805_s11, %s4206_s11   ;;  %s2757_s10 = sphi %s2803_s10, %s4205_s10   ;;  %s2753_s9 = sphi %s2801_s9, %s4204_s9  }
   0x6   : > { %s24_s19 = sadd.s32 1, %s2773_s14  ;;  %s27_s20 = sadd.s32 1, %s2777_s15 }
   0x7   : > { %p25_p0 = scmp.ge.s32.totalorder %s24_s19, 2  ;;  %p96_p1 = scmp.ne.s32.totalorder %s2761_s11, %s2757_s10 }
   0x8   : > { %p97_p2 = scmp.eq.s32.totalorder %s2597_s17, 3  ;;  %p102_p4 = scmp.ne.s32.totalorder %s2757_s10, %s2753_s9 }
   0x9   : > { %s4212_s19 = smov (%p25_p0, %s24_s19), 0  ;;  %s4214_s20 = smov (!%p25_p0, %s27_s20), %s2777_s15 }
   0xa   : > { %p2850_p3 = por %p97_p2, %p96_p1  ;;  %p29_p5 = scmp.ge.s32.totalorder %s4214_s20, 2 }
   0xb   : > { %p103_p6 = scmp.eq.s32.totalorder %s2598_s18, 3  ;;  %p2601_p7 = scmp.ge.s32.totalorder %s2781_s16, 1 }
   0xc   : > { %p138_p8 = scmp.lt.s32.totalorder %s2781_s16, 5  ;;  %s4216_s20 = smov (%p29_p5, %s4214_s20), 0 }
   0xd   : > { %p2860_p9 = por %p103_p6, %p102_p4  ;;  %s83_s23 = ssub.s32 %s2777_s15, %s4216_s20 }
   0xe   : > { %p139_p10 = pnand %p2601_p7, %p138_p8  ;;  %s86_s24 = sadd.s32 1, %s2761_s11 }
   0xf   : > { %p84_p11 = scmp.eq.s32.totalorder %s83_s23, 0  ;;  %s161_s26 = sand.u32 (!%p139_p10), 1, %s2757_s10  }
  0x10   : > { %142 = sbr.rel (%p139_p10) target bundleno = 674 (0x2a2), region = 28  ;;  %p2603_p0 = scmp.ne.s32.totalorder (!%p139_p10), %s2765_s12, 0 }
  0x11   : > { %s2868_s25 = scalar_select %p84_p11, %s2761_s11, %s86_s24  }
  0x12   : > { %s164_s27 = smul.u32 (!%p139_p10), 48, %s2769_s13 }
  0x13   : > { %s2874_s28 = smul.u32 (!%p139_p10), 3, %s161_s26 }
  0x14   : > { %p165_p12 = scmp.lt.s32.totalorder (!%p139_p10), %s164_s27, 95  ;;  %s170_s29 = smul.u32 (!%p139_p10), 3, %s2765_s12 }
  0x15   : > { %s163_s17 = scalar_lea.vmem [#allocation3], %s2874_s28  ;;  %178 = sbr.rel (%p2603_p0) target bundleno = 171 (0xab), region = 32 }
  0x16   : > { %s4218_s27 = smov (!%p165_p12, %s164_s27), 95  ;;  %p171_p13 = scmp.lt.s32.totalorder %s170_s29, 5 }
  0x17   : > { %s2602_s30 = sshll.u32 %s4218_s27, 3 }
  0x18   : > { %s2880_s5 = scalar_lea.vmem %s4179_s0, %s2602_s30  ;;  %s4220_s29 = smov (!%p171_p13, %s170_s29), 5 }
  0x19   : > { %s173_s8 = scalar_lea.vmem %s4180_s1, %s4220_s29 }
  0x1a   : > { %v2783_v0 = vmov 0.0  }
  0x1b   : > { %179 = vst [vmem:[#allocation2 + $0x2b0] sm:$0xff] %v2783_v0 }
  0x1c   : > { %180 = vst [vmem:[#allocation2 + $0x3b0] sm:$0xff] %v2783_v0 }
  0x1d   : > { %181 = vst [vmem:[#allocation2 + $0x10] sm:$0xff] %v2783_v0 }
  0x1e   : > { %182 = vst [vmem:[#allocation2 + $0x448] sm:$0xff] %v2783_v0 }
  0x1f   : > { %183 = vst [vmem:[#allocation2 + $0x320] sm:$0xff] %v2783_v0 }
  0x20   : > { %184 = vst [vmem:[#allocation2 + $0x438] sm:$0xff] %v2783_v0 }
  0x21   : > { %185 = vst [vmem:[#allocation2 + $0x370] sm:$0xff] %v2783_v0 }
  0x22   : > { %186 = vst [vmem:[#allocation2 + $0x100] sm:$0xff] %v2783_v0 }
  0x23   : > { %187 = vst [vmem:[#allocation2 + $0x300] sm:$0xff] %v2783_v0 }
  0x24   : > { %188 = vst [vmem:[#allocation2 + $0x2f0] sm:$0xff] %v2783_v0 }
  0x25   : > { %189 = vst [vmem:[#allocation2 + $0x290] sm:$0xff] %v2783_v0 }
  0x26   : > { %190 = vst [vmem:[#allocation2 + $0x380] sm:$0xff] %v2783_v0 }
  0x27   : > { %191 = vst [vmem:[#allocation2 + $0x48] sm:$0xff] %v2783_v0 }
  0x28   : > { %192 = vst [vmem:[#allocation2 + $0xc0] sm:$0xff] %v2783_v0 }
  0x29   : > { %193 = vst [vmem:[#allocation2 + $0x30] sm:$0xff] %v2783_v0 }
  0x2a   : > { %194 = vst [vmem:[#allocation2 + $0x148] sm:$0xff] %v2783_v0 }
  0x2b   : > { %195 = vst [vmem:[#allocation2 + $0x208] sm:$0xff] %v2783_v0 }
  0x2c   : > { %196 = vst [vmem:[#allocation2 + $0x88] sm:$0xff] %v2783_v0 }
  0x2d   : > { %197 = vst [vmem:[#allocation2 + $0x348] sm:$0xff] %v2783_v0 }
  0x2e   : > { %198 = vst [vmem:[#allocation2 + $0xe0] sm:$0xff] %v2783_v0 }
  0x2f   : > { %199 = vst [vmem:[#allocation2 + $0x368] sm:$0xff] %v2783_v0 }
  0x30   : > { %200 = vst [vmem:[#allocation2 + $0x3e0] sm:$0xff] %v2783_v0 }
  0x31   : > { %201 = vst [vmem:[#allocation2 + $0x1a8] sm:$0xff] %v2783_v0 }
  0x32   : > { %202 = vst [vmem:[#allocation2 + $0x450] sm:$0xff] %v2783_v0 }
  0x33   : > { %203 = vst [vmem:[#allocation2 + $0x420] sm:$0xff] %v2783_v0 }
  0x34   : > { %204 = vst [vmem:[#allocation2 + $0x398] sm:$0xff] %v2783_v0 }
  0x35   : > { %205 = vst [vmem:[#allocation2 + $0x350] sm:$0xff] %v2783_v0 }
  0x36   : > { %206 = vst [vmem:[#allocation2 + $0xc8] sm:$0xff] %v2783_v0 }
  0x37   : > { %207 = vst [vmem:[#allocation2 + $0x240] sm:$0xff] %v2783_v0 }
  0x38   : > { %208 = vst [vmem:[#allocation2 + $0x390] sm:$0xff] %v2783_v0 }
  0x39   : > { %209 = vst [vmem:[#allocation2 + $0x458] sm:$0xff] %v2783_v0 }
  0x3a   : > { %210 = vst [vmem:[#allocation2 + $0x68] sm:$0xff] %v2783_v0 }
  0x3b   : > { %211 = vst [vmem:[#allocation2 + $0x470] sm:$0xff] %v2783_v0 }
  0x3c   : > { %212 = vst [vmem:[#allocation2 + $0x298] sm:$0xff] %v2783_v0 }
  0x3d   : > { %213 = vst [vmem:[#allocation2 + $0x278] sm:$0xff] %v2783_v0 }
  0x3e   : > { %214 = vst [vmem:[#allocation2 + $0x170] sm:$0xff] %v2783_v0 }
  0x3f   : > { %215 = vst [vmem:[#allocation2 + $0x198] sm:$0xff] %v2783_v0 }
  0x40   : > { %216 = vst [vmem:[#allocation2 + $0xb0] sm:$0xff] %v2783_v0 }
  0x41   : > { %217 = vst [vmem:[#allocation2 + $0x20] sm:$0xff] %v2783_v0 }
  0x42   : > { %218 = vst [vmem:[#allocation2 + $0x1e8] sm:$0xff] %v2783_v0 }
  0x43   : > { %219 = vst [vmem:[#allocation2 + $0x1f8] sm:$0xff] %v2783_v0 }
  0x44   : > { %220 = vst [vmem:[#allocation2 + $0x60] sm:$0xff] %v2783_v0 }
  0x45   : > { %221 = vst [vmem:[#allocation2 + $0x3c8] sm:$0xff] %v2783_v0 }
  0x46   : > { %222 = vst [vmem:[#allocation2 + $0x18] sm:$0xff] %v2783_v0 }
  0x47   : > { %223 = vst [vmem:[#allocation2 + $0xa0] sm:$0xff] %v2783_v0 }
  0x48   : > { %224 = vst [vmem:[#allocation2 + $0x1d0] sm:$0xff] %v2783_v0 }
  0x49   : > { %225 = vst [vmem:[#allocation2 + $0x258] sm:$0xff] %v2783_v0 }
  0x4a   : > { %226 = vst [vmem:[#allocation2 + $0xd0] sm:$0xff] %v2783_v0 }
  0x4b   : > { %227 = vst [vmem:[#allocation2 + $0x408] sm:$0xff] %v2783_v0 }
  0x4c   : > { %228 = vst [vmem:[#allocation2 + $0x2c0] sm:$0xff] %v2783_v0 }
  0x4d   : > { %229 = vst [vmem:[#allocation2 + $0x3f8] sm:$0xff] %v2783_v0 }
  0x4e   : > { %230 = vst [vmem:[#allocation2 + $0x3f0] sm:$0xff] %v2783_v0 }
  0x4f   : > { %231 = vst [vmem:[#allocation2 + $0x338] sm:$0xff] %v2783_v0 }
  0x50   : > { %232 = vst [vmem:[#allocation2 + $0x248] sm:$0xff] %v2783_v0 }
  0x51   : > { %233 = vst [vmem:[#allocation2 + $0x330] sm:$0xff] %v2783_v0 }
  0x52   : > { %234 = vst [vmem:[#allocation2 + $0x220] sm:$0xff] %v2783_v0 }
  0x53   : > { %235 = vst [vmem:[#allocation2 + $0x1b8] sm:$0xff] %v2783_v0 }
  0x54   : > { %236 = vst [vmem:[#allocation2 + $0x310] sm:$0xff] %v2783_v0 }
  0x55   : > { %237 = vst [vmem:[#allocation2 + $0x280] sm:$0xff] %v2783_v0 }
  0x56   : > { %238 = vst [vmem:[#allocation2 + $0x288] sm:$0xff] %v2783_v0 }
  0x57   : > { %239 = vst [vmem:[#allocation2 + $0x2e8] sm:$0xff] %v2783_v0 }
  0x58   : > { %240 = vst [vmem:[#allocation2 + $0x120] sm:$0xff] %v2783_v0 }
  0x59   : > { %241 = vst [vmem:[#allocation2 + $0x2c8] sm:$0xff] %v2783_v0 }
  0x5a   : > { %242 = vst [vmem:[#allocation2 + $0x3c0] sm:$0xff] %v2783_v0 }
  0x5b   : > { %243 = vst [vmem:[#allocation2 + $0x418] sm:$0xff] %v2783_v0 }
  0x5c   : > { %244 = vst [vmem:[#allocation2 + $0x70] sm:$0xff] %v2783_v0 }
  0x5d   : > { %245 = vst [vmem:[#allocation2 + $0x270] sm:$0xff] %v2783_v0 }
  0x5e   : > { %246 = vst [vmem:[#allocation2 + $0x200] sm:$0xff] %v2783_v0 }
  0x5f   : > { %247 = vst [vmem:[#allocation2 + $0x1a0] sm:$0xff] %v2783_v0 }
  0x60   : > { %248 = vst [vmem:[#allocation2 + $0x140] sm:$0xff] %v2783_v0 }
  0x61   : > { %249 = vst [vmem:[#allocation2 + $0x3a0] sm:$0xff] %v2783_v0 }
  0x62   : > { %250 = vst [vmem:[#allocation2 + $0xf8] sm:$0xff] %v2783_v0 }
  0x63   : > { %251 = vst [vmem:[#allocation2 + $0x128] sm:$0xff] %v2783_v0 }
  0x64   : > { %252 = vst [vmem:[#allocation2 + $0x160] sm:$0xff] %v2783_v0 }
  0x65   : > { %253 = vst [vmem:[#allocation2 + $0x2a8] sm:$0xff] %v2783_v0 }
  0x66   : > { %254 = vst [vmem:[#allocation2 + $0x130] sm:$0xff] %v2783_v0 }
  0x67   : > { %255 = vst [vmem:[#allocation2 + $0x318] sm:$0xff] %v2783_v0 }
  0x68   : > { %256 = vst [vmem:[#allocation2 + $0x268] sm:$0xff] %v2783_v0 }
  0x69   : > { %257 = vst [vmem:[#allocation2 + $0x228] sm:$0xff] %v2783_v0 }
  0x6a   : > { %258 = vst [vmem:[#allocation2 + $0x410] sm:$0xff] %v2783_v0 }
  0x6b   : > { %259 = vst [vmem:[#allocation2 + $0x210] sm:$0xff] %v2783_v0 }
  0x6c   : > { %260 = vst [vmem:[#allocation2 + $0x1c0] sm:$0xff] %v2783_v0 }
  0x6d   : > { %261 = vst [vmem:[#allocation2 + $0x358] sm:$0xff] %v2783_v0 }
  0x6e   : > { %262 = vst [vmem:[#allocation2 + $0x8] sm:$0xff] %v2783_v0 }
  0x6f   : > { %263 = vst [vmem:[#allocation2 + $0x400] sm:$0xff] %v2783_v0 }
  0x70   : > { %264 = vst [vmem:[#allocation2 + $0x1b0] sm:$0xff] %v2783_v0 }
  0x71   : > { %265 = vst [vmem:[#allocation2 + $0x328] sm:$0xff] %v2783_v0 }
  0x72   : > { %266 = vst [vmem:[#allocation2 + $0x230] sm:$0xff] %v2783_v0 }
  0x73   : > { %267 = vst [vmem:[#allocation2 + $0xb8] sm:$0xff] %v2783_v0 }
  0x74   : > { %268 = vst [vmem:[#allocation2 + $0x468] sm:$0xff] %v2783_v0 }
  0x75   : > { %269 = vst [vmem:[#allocation2 + $0x2d0] sm:$0xff] %v2783_v0 }
  0x76   : > { %270 = vst [vmem:[#allocation2 + $0x78] sm:$0xff] %v2783_v0 }
  0x77   : > { %271 = vst [vmem:[#allocation2 + $0x2f8] sm:$0xff] %v2783_v0 }
  0x78   : > { %272 = vst [vmem:[#allocation2 + $0x218] sm:$0xff] %v2783_v0 }
  0x79   : > { %273 = vst [vmem:[#allocation2 + $0x1f0] sm:$0xff] %v2783_v0 }
  0x7a   : > { %274 = vst [vmem:[#allocation2 + $0x178] sm:$0xff] %v2783_v0 }
  0x7b   : > { %275 = vst [vmem:[#allocation2 + $0x110] sm:$0xff] %v2783_v0 }
  0x7c   : > { %276 = vst [vmem:[#allocation2 + $0x460] sm:$0xff] %v2783_v0 }
  0x7d   : > { %277 = vst [vmem:[#allocation2 + $0x2a0] sm:$0xff] %v2783_v0 }
  0x7e   : > { %278 = vst [vmem:[#allocation2 + $0x3d8] sm:$0xff] %v2783_v0 }
  0x7f   : > { %279 = vst [vmem:[#allocation2 + $0xa8] sm:$0xff] %v2783_v0 }
  0x80   : > { %280 = vst [vmem:[#allocation2 + $0x1d8] sm:$0xff] %v2783_v0 }
  0x81   : > { %281 = vst [vmem:[#allocation2 + $0x118] sm:$0xff] %v2783_v0 }
  0x82   : > { %282 = vst [vmem:[#allocation2] sm:$0xff] %v2783_v0 }
  0x83   : > { %283 = vst [vmem:[#allocation2 + $0x478] sm:$0xff] %v2783_v0 }
  0x84   : > { %284 = vst [vmem:[#allocation2 + $0x138] sm:$0xff] %v2783_v0 }
  0x85   : > { %285 = vst [vmem:[#allocation2 + $0xd8] sm:$0xff] %v2783_v0 }
  0x86   : > { %286 = vst [vmem:[#allocation2 + $0x2d8] sm:$0xff] %v2783_v0 }
  0x87   : > { %287 = vst [vmem:[#allocation2 + $0x260] sm:$0xff] %v2783_v0 }
  0x88   : > { %288 = vst [vmem:[#allocation2 + $0x3b8] sm:$0xff] %v2783_v0 }
  0x89   : > { %289 = vst [vmem:[#allocation2 + $0x180] sm:$0xff] %v2783_v0 }
  0x8a   : > { %290 = vst [vmem:[#allocation2 + $0x28] sm:$0xff] %v2783_v0 }
  0x8b   : > { %291 = vst [vmem:[#allocation2 + $0x108] sm:$0xff] %v2783_v0 }
  0x8c   : > { %292 = vst [vmem:[#allocation2 + $0x378] sm:$0xff] %v2783_v0 }
  0x8d   : > { %293 = vst [vmem:[#allocation2 + $0x440] sm:$0xff] %v2783_v0 }
  0x8e   : > { %294 = vst [vmem:[#allocation2 + $0x158] sm:$0xff] %v2783_v0 }
  0x8f   : > { %295 = vst [vmem:[#allocation2 + $0x360] sm:$0xff] %v2783_v0 }
  0x90   : > { %296 = vst [vmem:[#allocation2 + $0x50] sm:$0xff] %v2783_v0 }
  0x91   : > { %297 = vst [vmem:[#allocation2 + $0x308] sm:$0xff] %v2783_v0 }
  0x92   : > { %298 = vst [vmem:[#allocation2 + $0x340] sm:$0xff] %v2783_v0 }
  0x93   : > { %299 = vst [vmem:[#allocation2 + $0x2e0] sm:$0xff] %v2783_v0 }
  0x94   : > { %300 = vst [vmem:[#allocation2 + $0x3e8] sm:$0xff] %v2783_v0 }
  0x95   : > { %301 = vst [vmem:[#allocation2 + $0x250] sm:$0xff] %v2783_v0 }
  0x96   : > { %302 = vst [vmem:[#allocation2 + $0x1c8] sm:$0xff] %v2783_v0 }
  0x97   : > { %303 = vst [vmem:[#allocation2 + $0x190] sm:$0xff] %v2783_v0 }
  0x98   : > { %304 = vst [vmem:[#allocation2 + $0x3d0] sm:$0xff] %v2783_v0 }
  0x99   : > { %305 = vst [vmem:[#allocation2 + $0xe8] sm:$0xff] %v2783_v0 }
  0x9a   : > { %306 = vst [vmem:[#allocation2 + $0xf0] sm:$0xff] %v2783_v0 }
  0x9b   : > { %307 = vst [vmem:[#allocation2 + $0x168] sm:$0xff] %v2783_v0 }
  0x9c   : > { %308 = vst [vmem:[#allocation2 + $0x90] sm:$0xff] %v2783_v0 }
  0x9d   : > { %309 = vst [vmem:[#allocation2 + $0x1e0] sm:$0xff] %v2783_v0 }
  0x9e   : > { %310 = vst [vmem:[#allocation2 + $0x38] sm:$0xff] %v2783_v0 }
  0x9f   : > { %311 = vst [vmem:[#allocation2 + $0x388] sm:$0xff] %v2783_v0 }
  0xa0   : > { %312 = vst [vmem:[#allocation2 + $0x430] sm:$0xff] %v2783_v0 }
  0xa1   : > { %313 = vst [vmem:[#allocation2 + $0x80] sm:$0xff] %v2783_v0 }
  0xa2   : > { %314 = vst [vmem:[#allocation2 + $0x428] sm:$0xff] %v2783_v0 }
  0xa3   : > { %315 = vst [vmem:[#allocation2 + $0x238] sm:$0xff] %v2783_v0 }
  0xa4   : > { %316 = vst [vmem:[#allocation2 + $0x2b8] sm:$0xff] %v2783_v0 }
  0xa5   : > { %317 = vst [vmem:[#allocation2 + $0x40] sm:$0xff] %v2783_v0 }
  0xa6   : > { %318 = vst [vmem:[#allocation2 + $0x150] sm:$0xff] %v2783_v0 }
  0xa7   : > { %319 = vst [vmem:[#allocation2 + $0x3a8] sm:$0xff] %v2783_v0 }
  0xa8   : > { %320 = vst [vmem:[#allocation2 + $0x98] sm:$0xff] %v2783_v0 }
  0xa9   : > { %321 = vst [vmem:[#allocation2 + $0x58] sm:$0xff] %v2783_v0 }
  0xaa   : > { %322 = vst [vmem:[#allocation2 + $0x188] sm:$0xff] %v2783_v0 }
  0xab PF: > { %p2604_p1 = scmp.lt.s32.totalorder %s2765_s12, %s2769_s13 }
  0xac   : > { %s380_s18 = smul.u32 (!%p2604_p1), 384, %s2765_s12  ;;  %p1214_p2 = scmp.eq.s32.totalorder (!%p2604_p1), %s2765_s12, %s2769_s13 }
  0xad   : > { %326 = sbr.rel (%p2604_p1) target bundleno = 506 (0x1fa), region = 36 }
  0xb2   : > { %v331_v1 = vld [vmem:[%s2880_s5 + $0x20] sm:$0xff]  ;;  %v329_v2 = vld [vmem:[%s2880_s5 + $0x10] sm:$0xff]  ;;  %v2784_v4 = vmov 0   ;;  %v332_v5 = vld [vmem:[%s2880_s5 + $0x28] sm:$0xff]  ;;  %v376_v32 = vlaneseq  ;;  %v381_v39 = vstv %s380_s18  ;;  %v2785_v51 = vmov 1e+30  }
  0xb3   : > { %v327_v3 = vld [vmem:[%s2880_s5] sm:$0xff]  ;;  %2686 = vset.pattern.permute.xlu2 %v2784_v4  ;;  %2685 = vset.pattern.permute.xlu1 %v2784_v4  ;;  %v330_v6 = vld [vmem:[%s2880_s5 + $0x18] sm:$0xff]  ;;  %v328_v7 = vld [vmem:[%s2880_s5 + $0x8] sm:$0xff]  ;;  %s1215_s27 = scalar_select %p1214_p2, 1.0, 2.0 }
  0xb4   : > { %2684 = vset.pattern.permute.xlu0 %v2784_v4  ;;  %413 = vperm.xlu2 %2686, %v331_v1   ;;  %v335_v8 = vld [vmem:[%s2880_s5 + $0x40] sm:$0xff]  ;;  %v334_v9 = vld [vmem:[%s2880_s5 + $0x38] sm:$0xff]  ;;  %v333_v10 = vld [vmem:[%s2880_s5 + $0x30] sm:$0xff]  ;;  %v377_v34 = vand.u32 127, %v376_v32 }
  0xb5   : > { %403 = vperm.xlu1 %2685, %v329_v2   ;;  %393 = vperm.xlu0 %2684, %v327_v3   ;;  %v338_v11 = vld [vmem:[%s2880_s5 + $0x58] sm:$0xff]  ;;  %v337_v12 = vld [vmem:[%s2880_s5 + $0x50] sm:$0xff]  ;;  %v336_v13 = vld [vmem:[%s2880_s5 + $0x48] sm:$0xff]  ;;  %v3101_v3 = vstv %s1215_s27 }
  0xb6   : > { %v341_v14 = vld [vmem:[%s2880_s5 + $0x70] sm:$0xff]  ;;  %v340_v15 = vld [vmem:[%s2880_s5 + $0x68] sm:$0xff]  ;;  %v339_v16 = vld [vmem:[%s2880_s5 + $0x60] sm:$0xff]  ;;  %v378_v37 = vadd.s32 128, %v377_v34  ;;  %v379_v38 = vadd.s32 256, %v377_v34  ;;  %v382_v41 = vadd.s32 %v381_v39, %v377_v34 }
  0xb7   : > { %v344_v17 = vld [vmem:[%s2880_s5 + $0x88] sm:$0xff]  ;;  %v343_v18 = vld [vmem:[%s2880_s5 + $0x80] sm:$0xff]  ;;  %v342_v19 = vld [vmem:[%s2880_s5 + $0x78] sm:$0xff] }
  0xb8   : > { %v347_v20 = vld [vmem:[%s2880_s5 + $0xa0] sm:$0xff]  ;;  %v346_v21 = vld [vmem:[%s2880_s5 + $0x98] sm:$0xff]  ;;  %v345_v22 = vld [vmem:[%s2880_s5 + $0x90] sm:$0xff]  ;;  %v383_v43 = vadd.s32 %v381_v39, %v378_v37  ;;  %v384_v44 = vadd.s32 %v381_v39, %v379_v38  ;;  %vm385_vm0 = vcmp.lt.s32.totalorder %v382_v41, 530 }
  0xb9   : > { %v350_v23 = vld [vmem:[%s2880_s5 + $0xb8] sm:$0xff]  ;;  %v349_v24 = vld [vmem:[%s2880_s5 + $0xb0] sm:$0xff]  ;;  %v348_v25 = vld [vmem:[%s2880_s5 + $0xa8] sm:$0xff]  ;;  %v3086_v52 = vsel %vm385_vm0, 0.2, %v2785_v51 }
  0xba   : > { %v353_v26 = vld [vmem:[%s2880_s5 + $0xd0] sm:$0xff]  ;;  %v352_v27 = vld [vmem:[%s2880_s5 + $0xc8] sm:$0xff]  ;;  %v351_v28 = vld [vmem:[%s2880_s5 + $0xc0] sm:$0xff]  ;;  %vm386_vm1 = vcmp.lt.s32.totalorder %v383_v43, 530  ;;  %vm387_vm2 = vcmp.lt.s32.totalorder %v384_v44, 530 }
  0xbb   : > { %v356_v29 = vld [vmem:[%s2880_s5 + $0xe8] sm:$0xff]  ;;  %v355_v30 = vld [vmem:[%s2880_s5 + $0xe0] sm:$0xff]  ;;  %v354_v31 = vld [vmem:[%s2880_s5 + $0xd8] sm:$0xff]  ;;  %v3091_v56 = vsel %vm386_vm1, 0.2, %v2785_v51 }
  0xbc   : > { %418 = vperm.xlu2 %2686, %v332_v5   ;;  %v359_v33 = vld [vmem:[%s2880_s5 + $0x100] sm:$0xff]  ;;  %v358_v35 = vld [vmem:[%s2880_s5 + $0xf8] sm:$0xff]  ;;  %v357_v36 = vld [vmem:[%s2880_s5 + $0xf0] sm:$0xff]  ;;  %v3093_v57 = vsel %vm387_vm2, 0.2, %v2785_v51 }
  0xbd   : > { %408 = vperm.xlu1 %2685, %v330_v6   ;;  %398 = vperm.xlu0 %2684, %v328_v7   ;;  %v375_v40 = vld [vmem:[%s173_s8] sm:$0x7]  ;;  %v362_v42 = vld [vmem:[%s2880_s5 + $0x118] sm:$0xff]  ;;  %v361_v45 = vld [vmem:[%s2880_s5 + $0x110] sm:$0xff] }
  0xbe   : > { %v360_v46 = vld [vmem:[%s2880_s5 + $0x108] sm:$0xff]  ;;  %v3078_v47 = vperm.slane %v375_v40, 0  ;;  %v3080_v48 = vperm.slane %v375_v40, 1  ;;  %v3082_v49 = vperm.slane %v375_v40, 2  ;;  %v365_v58 = vld [vmem:[%s2880_s5 + $0x130] sm:$0xff]  ;;  %v363_v63 = vld [vmem:[%s2880_s5 + $0x120] sm:$0xff] }
  0xbf   : > { %v364_v62 = vld [vmem:[%s2880_s5 + $0x128] sm:$0xff] }
  0xc0   : > { %v1228_v7 = vld [vmem:[#allocation2 + $0x48] sm:$0xff] }
  0xc1   : > { %v1232_v34 = vld [vmem:[#allocation2 + $0x208] sm:$0xff] }
  0xc4   : > { %433 = vperm.xlu2 %2686, %v335_v8   ;;  %v1229_v8 = vld [vmem:[#allocation2 + $0xc0] sm:$0xff] }
  0xc5   : > { %428 = vperm.xlu1 %2685, %v334_v9   ;;  %423 = vperm.xlu0 %2684, %v333_v10   ;;  %v1230_v9 = vld [vmem:[#allocation2 + $0x30] sm:$0xff] }
  0xcc   : > { %448 = vperm.xlu2 %2686, %v338_v11  }
  0xcd   : > { %443 = vperm.xlu1 %2685, %v337_v12   ;;  %438 = vperm.xlu0 %2684, %v336_v13  }
  0xd4   : > { %463 = vperm.xlu2 %2686, %v341_v14  }
  0xd5   : > { %458 = vperm.xlu1 %2685, %v340_v15   ;;  %453 = vperm.xlu0 %2684, %v339_v16  }
  0xdc   : > { %478 = vperm.xlu2 %2686, %v344_v17  }
  0xdd   : > { %473 = vperm.xlu1 %2685, %v343_v18   ;;  %468 = vperm.xlu0 %2684, %v342_v19  }
  0xe4   : > { %493 = vperm.xlu2 %2686, %v347_v20  }
  0xe5   : > { %488 = vperm.xlu1 %2685, %v346_v21   ;;  %483 = vperm.xlu0 %2684, %v345_v22   ;;  %v368_v21 = vld [vmem:[%s2880_s5 + $0x148] sm:$0xff] }
  0xec   : > { %508 = vperm.xlu2 %2686, %v350_v23  }
  0xed   : > { %503 = vperm.xlu1 %2685, %v349_v24   ;;  %498 = vperm.xlu0 %2684, %v348_v25   ;;  %v367_v24 = vld [vmem:[%s2880_s5 + $0x140] sm:$0xff]  ;;  %v366_v25 = vld [vmem:[%s2880_s5 + $0x138] sm:$0xff] }
  0xf4   : > { %523 = vperm.xlu2 %2686, %v353_v26  }
  0xf5   : > { %518 = vperm.xlu1 %2685, %v352_v27   ;;  %513 = vperm.xlu0 %2684, %v351_v28  }
  0xfc   : > { %538 = vperm.xlu2 %2686, %v356_v29  }
  0xfd   : > { %533 = vperm.xlu1 %2685, %v355_v30   ;;  %528 = vperm.xlu0 %2684, %v354_v31   ;;  %v1231_v30 = vld [vmem:[#allocation2 + $0x148] sm:$0xff] }
 0x104   : > { %553 = vperm.xlu2 %2686, %v359_v33  }
 0x105   : > { %548 = vperm.xlu1 %2685, %v358_v35   ;;  %543 = vperm.xlu0 %2684, %v357_v36   ;;  %v1233_v35 = vld [vmem:[#allocation2 + $0x88] sm:$0xff] }
 0x10c   : > { %568 = vperm.xlu2 %2686, %v362_v42   ;;  %v371_v42 = vld [vmem:[%s2880_s5 + $0x160] sm:$0xff] }
 0x10d   : > { %563 = vperm.xlu1 %2685, %v361_v45   ;;  %558 = vperm.xlu0 %2684, %v360_v46  }
 0x10e   : > { %v414_v50 = vpop.permute.xlu2 %413 }
 0x10f   : > { %v650_v53 = vsub.f32 %v414_v50, %v3078_v47  ;;  %v651_v54 = vsub.f32 %v414_v50, %v3080_v48  ;;  %v652_v55 = vsub.f32 %v414_v50, %v3082_v49 }
 0x111   : > { %v794_v59 = vand.u32 2147483647, %v650_v53  ;;  %v795_v60 = vand.u32 2147483647, %v651_v54  ;;  %v796_v61 = vand.u32 2147483647, %v652_v55 }
 0x112   : > { %v370_v53 = vld [vmem:[%s2880_s5 + $0x158] sm:$0xff]  ;;  %v369_v54 = vld [vmem:[%s2880_s5 + $0x150] sm:$0xff] }
 0x113   : > { %v938_v0 = vsub.f32 %v794_v59, %v3086_v52  ;;  %v939_v1 = vsub.f32 %v795_v60, %v3091_v56  ;;  %v940_v2 = vsub.f32 %v796_v61, %v3093_v57 }
 0x114   : > { %583 = vperm.xlu2 %2686, %v365_v58  }
 0x115   : > { %v1082_v4 = vmax.f32 %v938_v0, 0.0  ;;  %v1083_v5 = vmax.f32 %v939_v1, 0.0  ;;  %v1084_v6 = vmax.f32 %v940_v2, 0.0  ;;  %578 = vperm.xlu1 %2685, %v364_v62   ;;  %573 = vperm.xlu0 %2684, %v363_v63   ;;  %v1240_v63 = vld [vmem:[#allocation2 + $0x420] sm:$0xff]  ;;  %v1241_v0 = vld [vmem:[#allocation2 + $0x398] sm:$0xff]  ;;  %v1242_v1 = vld [vmem:[#allocation2 + $0x350] sm:$0xff] }
 0x116   : > { %v419_v10 = vpop.permute.xlu2 %418 }
 0x117   : > { %v1373_v11 = vmul.f32 %v3101_v3, %v1082_v4  ;;  %v1374_v12 = vmul.f32 %v3101_v3, %v1083_v5  ;;  %v1375_v13 = vmul.f32 %v3101_v3, %v1084_v6  ;;  %v653_v14 = vsub.f32 %v419_v10, %v3078_v47 }
 0x118   : > { %v654_v15 = vsub.f32 %v419_v10, %v3080_v48  ;;  %v655_v16 = vsub.f32 %v419_v10, %v3082_v49 }
 0x119   : > { %v1517_v17 = vadd.f32 %v1373_v11, %v1228_v7  ;;  %v1518_v18 = vadd.f32 %v1374_v12, %v1229_v8  ;;  %v1519_v19 = vadd.f32 %v1375_v13, %v1230_v9  ;;  %v797_v20 = vand.u32 2147483647, %v653_v14 }
 0x11a   : > { %v798_v22 = vand.u32 2147483647, %v654_v15  ;;  %v799_v23 = vand.u32 2147483647, %v655_v16 }
 0x11b   : > { %1661 = vst [vmem:[#allocation2 + $0x48] sm:$0xff] %v1517_v17  ;;  %v941_v26 = vsub.f32 %v797_v20, %v3086_v52  ;;  %v372_v20 = vld [vmem:[%s2880_s5 + $0x168] sm:$0xff] }
 0x11c   : > { %1662 = vst [vmem:[#allocation2 + $0xc0] sm:$0xff] %v1518_v18  ;;  %v942_v27 = vsub.f32 %v798_v22, %v3091_v56  ;;  %v943_v28 = vsub.f32 %v799_v23, %v3093_v57  ;;  %598 = vperm.xlu2 %2686, %v368_v21   ;;  %v374_v18 = vld [vmem:[%s2880_s5 + $0x178] sm:$0xff] }
 0x11d   : > { %1663 = vst [vmem:[#allocation2 + $0x30] sm:$0xff] %v1519_v19  ;;  %v1085_v29 = vmax.f32 %v941_v26, 0.0  ;;  %593 = vperm.xlu1 %2685, %v367_v24   ;;  %588 = vperm.xlu0 %2684, %v366_v25   ;;  %v373_v19 = vld [vmem:[%s2880_s5 + $0x170] sm:$0xff] }
 0x11e   : > { %v1086_v31 = vmax.f32 %v942_v27, 0.0  ;;  %v1087_v32 = vmax.f32 %v943_v28, 0.0  ;;  %v434_v33 = vpop.permute.xlu2 %433 }
 0x11f   : > { %v1376_v36 = vmul.f32 %v3101_v3, %v1085_v29  ;;  %v662_v37 = vsub.f32 %v434_v33, %v3078_v47  ;;  %v663_v38 = vsub.f32 %v434_v33, %v3080_v48  ;;  %v664_v39 = vsub.f32 %v434_v33, %v3082_v49 }
 0x120   : > { %v1377_v40 = vmul.f32 %v3101_v3, %v1086_v31  ;;  %v1378_v41 = vmul.f32 %v3101_v3, %v1087_v32 }
 0x121   : > { %v1520_v43 = vadd.f32 %v1376_v36, %v1231_v30  ;;  %v806_v44 = vand.u32 2147483647, %v662_v37  ;;  %v807_v45 = vand.u32 2147483647, %v663_v38  ;;  %v808_v46 = vand.u32 2147483647, %v664_v39 }
 0x122   : > { %v1521_v50 = vadd.f32 %v1377_v40, %v1232_v34  ;;  %v1522_v51 = vadd.f32 %v1378_v41, %v1233_v35  ;;  %v1249_v37 = vld [vmem:[#allocation2 + $0x298] sm:$0xff]  ;;  %v1251_v39 = vld [vmem:[#allocation2 + $0x170] sm:$0xff] }
 0x123   : > { %1664 = vst [vmem:[#allocation2 + $0x148] sm:$0xff] %v1520_v43  ;;  %v950_v55 = vsub.f32 %v806_v44, %v3086_v52  ;;  %v951_v58 = vsub.f32 %v807_v45, %v3091_v56  ;;  %v952_v59 = vsub.f32 %v808_v46, %v3093_v57  ;;  %v1250_v38 = vld [vmem:[#allocation2 + $0x278] sm:$0xff]  ;;  %v1222_v45 = vld [vmem:[#allocation2 + $0x370] sm:$0xff] }
 0x124   : > { %1665 = vst [vmem:[#allocation2 + $0x208] sm:$0xff] %v1521_v50  ;;  %613 = vperm.xlu2 %2686, %v371_v42  }
 0x125   : > { %1666 = vst [vmem:[#allocation2 + $0x88] sm:$0xff] %v1522_v51  ;;  %v1094_v60 = vmax.f32 %v950_v55, 0.0  ;;  %v1095_v61 = vmax.f32 %v951_v58, 0.0  ;;  %v1096_v62 = vmax.f32 %v952_v59, 0.0  ;;  %608 = vperm.xlu1 %2685, %v370_v53   ;;  %603 = vperm.xlu0 %2684, %v369_v54   ;;  %v1223_v55 = vld [vmem:[#allocation2 + $0x100] sm:$0xff] }
 0x126   : > { %v449_v2 = vpop.permute.xlu2 %448 }
 0x127   : > { %v1385_v4 = vmul.f32 %v3101_v3, %v1094_v60  ;;  %v1386_v5 = vmul.f32 %v3101_v3, %v1095_v61  ;;  %v1387_v6 = vmul.f32 %v3101_v3, %v1096_v62  ;;  %v671_v7 = vsub.f32 %v449_v2, %v3078_v47  ;;  %v404_v8 = vpop.permute.xlu1 %403  ;;  %v394_v13 = vpop.permute.xlu0 %393  ;;  %v1224_v61 = vld [vmem:[#allocation2 + $0x300] sm:$0xff] }
 0x128   : > { %v672_v9 = vsub.f32 %v449_v2, %v3080_v48  ;;  %v673_v10 = vsub.f32 %v449_v2, %v3082_v49  ;;  %v644_v11 = vsub.f32 %v404_v8, %v3078_v47  ;;  %v645_v12 = vsub.f32 %v404_v8, %v3080_v48 }
 0x129   : > { %v1529_v14 = vadd.f32 %v1385_v4, %v1240_v63  ;;  %v1530_v15 = vadd.f32 %v1386_v5, %v1241_v0  ;;  %v1531_v16 = vadd.f32 %v1387_v6, %v1242_v1  ;;  %v815_v17 = vand.u32 2147483647, %v671_v7 }
 0x12a   : > { %v816_v21 = vand.u32 2147483647, %v672_v9  ;;  %v817_v22 = vand.u32 2147483647, %v673_v10  ;;  %v646_v23 = vsub.f32 %v404_v8, %v3082_v49  ;;  %v788_v24 = vand.u32 2147483647, %v644_v11 }
 0x12b   : > { %1673 = vst [vmem:[#allocation2 + $0x420] sm:$0xff] %v1529_v14  ;;  %v959_v25 = vsub.f32 %v815_v17, %v3086_v52  ;;  %v789_v26 = vand.u32 2147483647, %v645_v12  ;;  %v638_v27 = vsub.f32 %v394_v13, %v3078_v47  ;;  %v639_v28 = vsub.f32 %v394_v13, %v3080_v48  ;;  %v1217_v14 = vld [vmem:[#allocation2 + $0x3b0] sm:$0xff] }
 0x12c   : > { %1674 = vst [vmem:[#allocation2 + $0x398] sm:$0xff] %v1530_v15  ;;  %v960_v29 = vsub.f32 %v816_v21, %v3091_v56  ;;  %v961_v30 = vsub.f32 %v817_v22, %v3093_v57  ;;  %v790_v31 = vand.u32 2147483647, %v646_v23  ;;  %v932_v32 = vsub.f32 %v788_v24, %v3086_v52  ;;  %628 = vperm.xlu2 %2686, %v374_v18   ;;  %v1218_v22 = vld [vmem:[#allocation2 + $0x10] sm:$0xff] }
 0x12d   : > { %1675 = vst [vmem:[#allocation2 + $0x350] sm:$0xff] %v1531_v16  ;;  %v1103_v33 = vmax.f32 %v959_v25, 0.0  ;;  %v933_v34 = vsub.f32 %v789_v26, %v3091_v56  ;;  %v640_v35 = vsub.f32 %v394_v13, %v3082_v49  ;;  %v782_v36 = vand.u32 2147483647, %v638_v27  ;;  %623 = vperm.xlu1 %2685, %v373_v19   ;;  %618 = vperm.xlu0 %2684, %v372_v20   ;;  %v1216_v13 = vld [vmem:[#allocation2 + $0x2b0] sm:$0xff] }
 0x12e   : > { %v1104_v40 = vmax.f32 %v960_v29, 0.0  ;;  %v1105_v41 = vmax.f32 %v961_v30, 0.0  ;;  %v934_v42 = vsub.f32 %v790_v31, %v3093_v57  ;;  %v1076_v43 = vmax.f32 %v932_v32, 0.0  ;;  %v464_v1 = vpop.permute.xlu2 %463 }
 0x12f   : > { %v1394_v44 = vmul.f32 %v3101_v3, %v1103_v33  ;;  %v1077_v46 = vmax.f32 %v933_v34, 0.0  ;;  %v783_v50 = vand.u32 2147483647, %v639_v28  ;;  %v784_v51 = vand.u32 2147483647, %v640_v35  ;;  %v409_v7 = vpop.permute.xlu1 %408  ;;  %v399_v27 = vpop.permute.xlu0 %398 }
 0x130   : > { %v1395_v53 = vmul.f32 %v3101_v3, %v1104_v40  ;;  %v1396_v54 = vmul.f32 %v3101_v3, %v1105_v41  ;;  %v1078_v58 = vmax.f32 %v934_v42, 0.0  ;;  %v1367_v59 = vmul.f32 %v3101_v3, %v1076_v43 }
 0x131   : > { %v1538_v60 = vadd.f32 %v1394_v44, %v1249_v37  ;;  %v1368_v62 = vmul.f32 %v3101_v3, %v1077_v46  ;;  %v926_v63 = vsub.f32 %v782_v36, %v3086_v52  ;;  %v927_v0 = vsub.f32 %v783_v50, %v3091_v56  ;;  %v1258_v44 = vld [vmem:[#allocation2 + $0x3c8] sm:$0xff] }
 0x132   : > { %v1539_v2 = vadd.f32 %v1395_v53, %v1250_v38  ;;  %v1540_v4 = vadd.f32 %v1396_v54, %v1251_v39  ;;  %v1369_v5 = vmul.f32 %v3101_v3, %v1078_v58  ;;  %v1511_v6 = vadd.f32 %v1367_v59, %v1222_v45  ;;  %v1259_v45 = vld [vmem:[#allocation2 + $0x18] sm:$0xff]  ;;  %v1260_v54 = vld [vmem:[#allocation2 + $0xa0] sm:$0xff]  ;;  %v1225_v59 = vld [vmem:[#allocation2 + $0x2f0] sm:$0xff] }
 0x133   : > { %1682 = vst [vmem:[#allocation2 + $0x298] sm:$0xff] %v1538_v60  ;;  %v1512_v8 = vadd.f32 %v1368_v62, %v1223_v55  ;;  %v928_v9 = vsub.f32 %v784_v51, %v3093_v57  ;;  %v1070_v10 = vmax.f32 %v926_v63, 0.0  ;;  %v1071_v11 = vmax.f32 %v927_v0, 0.0  ;;  %v1226_v63 = vld [vmem:[#allocation2 + $0x290] sm:$0xff] }
 0x134   : > { %1683 = vst [vmem:[#allocation2 + $0x278] sm:$0xff] %v1539_v2  ;;  %v1513_v12 = vadd.f32 %v1369_v5, %v1224_v61  ;;  %v680_v15 = vsub.f32 %v464_v1, %v3078_v47  ;;  %v681_v16 = vsub.f32 %v464_v1, %v3080_v48  ;;  %v682_v17 = vsub.f32 %v464_v1, %v3082_v49 }
 0x135   : > { %1684 = vst [vmem:[#allocation2 + $0x170] sm:$0xff] %v1540_v4  ;;  %v1072_v18 = vmax.f32 %v928_v9, 0.0  ;;  %v1361_v19 = vmul.f32 %v3101_v3, %v1070_v10  ;;  %v1362_v20 = vmul.f32 %v3101_v3, %v1071_v11  ;;  %v647_v21 = vsub.f32 %v409_v7, %v3078_v47 }
 0x136   : > { %1655 = vst [vmem:[#allocation2 + $0x370] sm:$0xff] %v1511_v6  ;;  %v824_v23 = vand.u32 2147483647, %v680_v15  ;;  %v825_v24 = vand.u32 2147483647, %v681_v16  ;;  %v648_v25 = vsub.f32 %v409_v7, %v3080_v48  ;;  %v649_v26 = vsub.f32 %v409_v7, %v3082_v49  ;;  %v479_v4 = vpop.permute.xlu2 %478  ;;  %v1227_v7 = vld [vmem:[#allocation2 + $0x380] sm:$0xff] }
 0x137   : > { %1656 = vst [vmem:[#allocation2 + $0x100] sm:$0xff] %v1512_v8  ;;  %v1363_v28 = vmul.f32 %v3101_v3, %v1072_v18  ;;  %v1505_v29 = vadd.f32 %v1361_v19, %v1216_v13  ;;  %v1506_v30 = vadd.f32 %v1362_v20, %v1217_v14  ;;  %v826_v31 = vand.u32 2147483647, %v682_v17  ;;  %v429_v14 = vpop.permute.xlu1 %428 }
 0x138   : > { %1657 = vst [vmem:[#allocation2 + $0x300] sm:$0xff] %v1513_v12  ;;  %v968_v32 = vsub.f32 %v824_v23, %v3086_v52  ;;  %v969_v33 = vsub.f32 %v825_v24, %v3091_v56  ;;  %v791_v34 = vand.u32 2147483647, %v647_v21  ;;  %v792_v35 = vand.u32 2147483647, %v648_v25  ;;  %v1219_v23 = vld [vmem:[#allocation2 + $0x448] sm:$0xff] }
 0x139   : > { %v1507_v36 = vadd.f32 %v1363_v28, %v1218_v22  ;;  %1649 = vst [vmem:[#allocation2 + $0x2b0] sm:$0xff] %v1505_v29  ;;  %v970_v37 = vsub.f32 %v826_v31, %v3093_v57  ;;  %v793_v38 = vand.u32 2147483647, %v649_v26  ;;  %v641_v39 = vsub.f32 %v399_v27, %v3078_v47  ;;  %v1220_v28 = vld [vmem:[#allocation2 + $0x320] sm:$0xff] }
 0x13a   : > { %1650 = vst [vmem:[#allocation2 + $0x3b0] sm:$0xff] %v1506_v30  ;;  %v1112_v40 = vmax.f32 %v968_v32, 0.0  ;;  %v1113_v41 = vmax.f32 %v969_v33, 0.0  ;;  %v935_v42 = vsub.f32 %v791_v34, %v3086_v52  ;;  %v936_v43 = vsub.f32 %v792_v35, %v3091_v56  ;;  %v1221_v33 = vld [vmem:[#allocation2 + $0x438] sm:$0xff] }
 0x13b   : > { %1651 = vst [vmem:[#allocation2 + $0x10] sm:$0xff] %v1507_v36  ;;  %v1114_v46 = vmax.f32 %v970_v37, 0.0  ;;  %v937_v50 = vsub.f32 %v793_v38, %v3093_v57  ;;  %v642_v51 = vsub.f32 %v399_v27, %v3080_v48  ;;  %v643_v53 = vsub.f32 %v399_v27, %v3082_v49 }
 0x13c   : > { %v1403_v55 = vmul.f32 %v3101_v3, %v1112_v40  ;;  %v1404_v58 = vmul.f32 %v3101_v3, %v1113_v41  ;;  %v1079_v60 = vmax.f32 %v935_v42, 0.0  ;;  %v1080_v61 = vmax.f32 %v936_v43, 0.0  ;;  %v424_v42 = vpop.permute.xlu0 %423 }
 0x13d   : > { %v1405_v62 = vmul.f32 %v3101_v3, %v1114_v46  ;;  %v1081_v0 = vmax.f32 %v937_v50, 0.0  ;;  %v785_v1 = vand.u32 2147483647, %v641_v39  ;;  %v786_v2 = vand.u32 2147483647, %v642_v51  ;;  %v1267_v51 = vld [vmem:[#allocation2 + $0x3f0] sm:$0xff] }
 0x13e   : > { %v1547_v5 = vadd.f32 %v1403_v55, %v1258_v44  ;;  %v1548_v6 = vadd.f32 %v1404_v58, %v1259_v45  ;;  %v1370_v8 = vmul.f32 %v3101_v3, %v1079_v60  ;;  %v1371_v9 = vmul.f32 %v3101_v3, %v1080_v61  ;;  %v1268_v58 = vld [vmem:[#allocation2 + $0x338] sm:$0xff] }
 0x13f   : > { %v1549_v10 = vadd.f32 %v1405_v62, %v1260_v54  ;;  %v1372_v11 = vmul.f32 %v3101_v3, %v1081_v0  ;;  %v787_v12 = vand.u32 2147483647, %v643_v53  ;;  %v929_v13 = vsub.f32 %v785_v1, %v3086_v52 }
 0x140   : > { %1691 = vst [vmem:[#allocation2 + $0x3c8] sm:$0xff] %v1547_v5  ;;  %v1514_v15 = vadd.f32 %v1370_v8, %v1225_v59  ;;  %v1515_v16 = vadd.f32 %v1371_v9, %v1226_v63  ;;  %v930_v17 = vsub.f32 %v786_v2, %v3091_v56  ;;  %v689_v18 = vsub.f32 %v479_v4, %v3078_v47  ;;  %v1269_v63 = vld [vmem:[#allocation2 + $0x248] sm:$0xff] }
 0x141   : > { %1692 = vst [vmem:[#allocation2 + $0x18] sm:$0xff] %v1548_v6  ;;  %v1516_v19 = vadd.f32 %v1372_v11, %v1227_v7  ;;  %v931_v20 = vsub.f32 %v787_v12, %v3093_v57  ;;  %v1073_v21 = vmax.f32 %v929_v13, 0.0  ;;  %v690_v22 = vsub.f32 %v479_v4, %v3080_v48  ;;  %v1237_v7 = vld [vmem:[#allocation2 + $0x3e0] sm:$0xff]  ;;  %v1238_v12 = vld [vmem:[#allocation2 + $0x1a8] sm:$0xff] }
 0x142   : > { %1693 = vst [vmem:[#allocation2 + $0xa0] sm:$0xff] %v1549_v10  ;;  %v1074_v24 = vmax.f32 %v930_v17, 0.0  ;;  %v691_v25 = vsub.f32 %v479_v4, %v3082_v49  ;;  %v833_v26 = vand.u32 2147483647, %v689_v18  ;;  %v659_v27 = vsub.f32 %v429_v14, %v3078_v47  ;;  %v494_v10 = vpop.permute.xlu2 %493  ;;  %v1239_v17 = vld [vmem:[#allocation2 + $0x450] sm:$0xff] }
 0x143   : > { %1658 = vst [vmem:[#allocation2 + $0x2f0] sm:$0xff] %v1514_v15  ;;  %v1075_v29 = vmax.f32 %v931_v20, 0.0  ;;  %v1364_v30 = vmul.f32 %v3101_v3, %v1073_v21  ;;  %v834_v31 = vand.u32 2147483647, %v690_v22  ;;  %v660_v32 = vsub.f32 %v429_v14, %v3080_v48 }
 0x144   : > { %1659 = vst [vmem:[#allocation2 + $0x290] sm:$0xff] %v1515_v16  ;;  %v1365_v34 = vmul.f32 %v3101_v3, %v1074_v24  ;;  %v835_v35 = vand.u32 2147483647, %v691_v25  ;;  %v977_v36 = vsub.f32 %v833_v26, %v3086_v52  ;;  %v661_v37 = vsub.f32 %v429_v14, %v3082_v49  ;;  %v444_v25 = vpop.permute.xlu1 %443 }
 0x145   : > { %1660 = vst [vmem:[#allocation2 + $0x380] sm:$0xff] %v1516_v19  ;;  %v1366_v38 = vmul.f32 %v3101_v3, %v1075_v29  ;;  %v1508_v39 = vadd.f32 %v1364_v30, %v1219_v23  ;;  %v978_v40 = vsub.f32 %v834_v31, %v3091_v56  ;;  %v803_v41 = vand.u32 2147483647, %v659_v27 }
 0x146   : > { %v1509_v43 = vadd.f32 %v1365_v34, %v1220_v28  ;;  %v979_v44 = vsub.f32 %v835_v35, %v3093_v57  ;;  %v1121_v45 = vmax.f32 %v977_v36, 0.0  ;;  %v804_v46 = vand.u32 2147483647, %v660_v32  ;;  %v1234_v34 = vld [vmem:[#allocation2 + $0x348] sm:$0xff] }
 0x147   : > { %v1510_v50 = vadd.f32 %v1366_v38, %v1221_v33  ;;  %1652 = vst [vmem:[#allocation2 + $0x448] sm:$0xff] %v1508_v39  ;;  %v1122_v53 = vmax.f32 %v978_v40, 0.0  ;;  %v805_v54 = vand.u32 2147483647, %v661_v37  ;;  %v947_v55 = vsub.f32 %v803_v41, %v3086_v52  ;;  %v1235_v39 = vld [vmem:[#allocation2 + $0xe0] sm:$0xff]  ;;  %v1236_v40 = vld [vmem:[#allocation2 + $0x368] sm:$0xff] }
 0x148   : > { %1653 = vst [vmem:[#allocation2 + $0x320] sm:$0xff] %v1509_v43  ;;  %v1123_v59 = vmax.f32 %v979_v44, 0.0  ;;  %v1412_v60 = vmul.f32 %v3101_v3, %v1121_v45  ;;  %v948_v61 = vsub.f32 %v804_v46, %v3091_v56  ;;  %v656_v62 = vsub.f32 %v424_v42, %v3078_v47 }
 0x149   : > { %1654 = vst [vmem:[#allocation2 + $0x438] sm:$0xff] %v1510_v50  ;;  %v1413_v0 = vmul.f32 %v3101_v3, %v1122_v53  ;;  %v949_v1 = vsub.f32 %v805_v54, %v3093_v57  ;;  %v1091_v2 = vmax.f32 %v947_v55, 0.0  ;;  %v657_v4 = vsub.f32 %v424_v42, %v3080_v48 }
 0x14a   : > { %v1414_v5 = vmul.f32 %v3101_v3, %v1123_v59  ;;  %v1556_v6 = vadd.f32 %v1412_v60, %v1267_v51  ;;  %v1092_v8 = vmax.f32 %v948_v61, 0.0  ;;  %v658_v9 = vsub.f32 %v424_v42, %v3082_v49  ;;  %v439_v59 = vpop.permute.xlu0 %438 }
 0x14b   : > { %v1557_v11 = vadd.f32 %v1413_v0, %v1268_v58  ;;  %v1093_v13 = vmax.f32 %v949_v1, 0.0  ;;  %v1382_v14 = vmul.f32 %v3101_v3, %v1091_v2  ;;  %v800_v15 = vand.u32 2147483647, %v656_v62  ;;  %v1276_v62 = vld [vmem:[#allocation2 + $0x2e8] sm:$0xff]  ;;  %v1277_v1 = vld [vmem:[#allocation2 + $0x120] sm:$0xff] }
 0x14c   : > { %v1558_v16 = vadd.f32 %v1414_v5, %v1269_v63  ;;  %1700 = vst [vmem:[#allocation2 + $0x3f0] sm:$0xff] %v1556_v6  ;;  %v1383_v18 = vmul.f32 %v3101_v3, %v1092_v8  ;;  %v801_v19 = vand.u32 2147483647, %v657_v4  ;;  %v802_v20 = vand.u32 2147483647, %v658_v9 }
 0x14d   : > { %1701 = vst [vmem:[#allocation2 + $0x338] sm:$0xff] %v1557_v11  ;;  %v1384_v21 = vmul.f32 %v3101_v3, %v1093_v13  ;;  %v1526_v22 = vadd.f32 %v1382_v14, %v1237_v7  ;;  %v944_v23 = vsub.f32 %v800_v15, %v3086_v52  ;;  %v698_v24 = vsub.f32 %v494_v10, %v3078_v47  ;;  %v1278_v7 = vld [vmem:[#allocation2 + $0x2c8] sm:$0xff] }
 0x14e   : > { %1702 = vst [vmem:[#allocation2 + $0x248] sm:$0xff] %v1558_v16  ;;  %v1527_v26 = vadd.f32 %v1383_v18, %v1238_v12  ;;  %v945_v27 = vsub.f32 %v801_v19, %v3091_v56  ;;  %v946_v28 = vsub.f32 %v802_v20, %v3093_v57  ;;  %v699_v29 = vsub.f32 %v494_v10, %v3080_v48  ;;  %v509_v16 = vpop.permute.xlu2 %508  ;;  %v1246_v18 = vld [vmem:[#allocation2 + $0x458] sm:$0xff] }
 0x14f   : > { %v1528_v30 = vadd.f32 %v1384_v21, %v1239_v17  ;;  %1670 = vst [vmem:[#allocation2 + $0x3e0] sm:$0xff] %v1526_v22  ;;  %v1088_v31 = vmax.f32 %v944_v23, 0.0  ;;  %v700_v32 = vsub.f32 %v494_v10, %v3082_v49  ;;  %v842_v33 = vand.u32 2147483647, %v698_v24  ;;  %v1247_v23 = vld [vmem:[#allocation2 + $0x68] sm:$0xff] }
 0x150   : > { %1671 = vst [vmem:[#allocation2 + $0x1a8] sm:$0xff] %v1527_v26  ;;  %v1089_v35 = vmax.f32 %v945_v27, 0.0  ;;  %v1090_v36 = vmax.f32 %v946_v28, 0.0  ;;  %v843_v37 = vand.u32 2147483647, %v699_v29  ;;  %v668_v38 = vsub.f32 %v444_v25, %v3078_v47  ;;  %v1248_v27 = vld [vmem:[#allocation2 + $0x470] sm:$0xff] }
 0x151   : > { %1672 = vst [vmem:[#allocation2 + $0x450] sm:$0xff] %v1528_v30  ;;  %v1379_v41 = vmul.f32 %v3101_v3, %v1088_v31  ;;  %v844_v42 = vand.u32 2147483647, %v700_v32  ;;  %v986_v43 = vsub.f32 %v842_v33, %v3086_v52  ;;  %v669_v44 = vsub.f32 %v444_v25, %v3080_v48 }
 0x152   : > { %v1380_v45 = vmul.f32 %v3101_v3, %v1089_v35  ;;  %v1381_v46 = vmul.f32 %v3101_v3, %v1090_v36  ;;  %v987_v50 = vsub.f32 %v843_v37, %v3091_v56  ;;  %v670_v51 = vsub.f32 %v444_v25, %v3082_v49  ;;  %v459_v36 = vpop.permute.xlu1 %458 }
 0x153   : > { %v1523_v53 = vadd.f32 %v1379_v41, %v1234_v34  ;;  %v988_v54 = vsub.f32 %v844_v42, %v3093_v57  ;;  %v1130_v55 = vmax.f32 %v986_v43, 0.0  ;;  %v812_v58 = vand.u32 2147483647, %v668_v38  ;;  %v1243_v38 = vld [vmem:[#allocation2 + $0xc8] sm:$0xff] }
 0x154   : > { %v1524_v60 = vadd.f32 %v1380_v45, %v1235_v39  ;;  %v1525_v61 = vadd.f32 %v1381_v46, %v1236_v40  ;;  %v1131_v63 = vmax.f32 %v987_v50, 0.0  ;;  %v813_v0 = vand.u32 2147483647, %v669_v44  ;;  %v1244_v46 = vld [vmem:[#allocation2 + $0x240] sm:$0xff] }
 0x155   : > { %1667 = vst [vmem:[#allocation2 + $0x348] sm:$0xff] %v1523_v53  ;;  %v1132_v2 = vmax.f32 %v988_v54, 0.0  ;;  %v1421_v4 = vmul.f32 %v3101_v3, %v1130_v55  ;;  %v814_v5 = vand.u32 2147483647, %v670_v51  ;;  %v956_v6 = vsub.f32 %v812_v58, %v3086_v52  ;;  %v1245_v55 = vld [vmem:[#allocation2 + $0x390] sm:$0xff] }
 0x156   : > { %1668 = vst [vmem:[#allocation2 + $0xe0] sm:$0xff] %v1524_v60  ;;  %v1422_v8 = vmul.f32 %v3101_v3, %v1131_v63  ;;  %v957_v9 = vsub.f32 %v813_v0, %v3091_v56  ;;  %v665_v10 = vsub.f32 %v439_v59, %v3078_v47  ;;  %v666_v11 = vsub.f32 %v439_v59, %v3080_v48 }
 0x157   : > { %1669 = vst [vmem:[#allocation2 + $0x368] sm:$0xff] %v1525_v61  ;;  %v1423_v12 = vmul.f32 %v3101_v3, %v1132_v2  ;;  %v1565_v13 = vadd.f32 %v1421_v4, %v1276_v62  ;;  %v958_v14 = vsub.f32 %v814_v5, %v3093_v57  ;;  %v1100_v15 = vmax.f32 %v956_v6, 0.0  ;;  %v454_v2 = vpop.permute.xlu0 %453  ;;  %v1285_v5 = vld [vmem:[#allocation2 + $0x140] sm:$0xff] }
 0x158   : > { %v1566_v17 = vadd.f32 %v1422_v8, %v1277_v1  ;;  %v1101_v19 = vmax.f32 %v957_v9, 0.0  ;;  %v667_v20 = vsub.f32 %v439_v59, %v3082_v49  ;;  %v809_v21 = vand.u32 2147483647, %v665_v10  ;;  %v1286_v6 = vld [vmem:[#allocation2 + $0x3a0] sm:$0xff] }
 0x159   : > { %v1567_v22 = vadd.f32 %v1423_v12, %v1278_v7  ;;  %1709 = vst [vmem:[#allocation2 + $0x2e8] sm:$0xff] %v1565_v13  ;;  %v1102_v24 = vmax.f32 %v958_v14, 0.0  ;;  %v1391_v25 = vmul.f32 %v3101_v3, %v1100_v15  ;;  %v810_v26 = vand.u32 2147483647, %v666_v11  ;;  %v1287_v14 = vld [vmem:[#allocation2 + $0xf8] sm:$0xff] }
 0x15a   : > { %1710 = vst [vmem:[#allocation2 + $0x120] sm:$0xff] %v1566_v17  ;;  %v1392_v28 = vmul.f32 %v3101_v3, %v1101_v19  ;;  %v811_v29 = vand.u32 2147483647, %v667_v20  ;;  %v953_v30 = vsub.f32 %v809_v21, %v3086_v52  ;;  %v707_v31 = vsub.f32 %v509_v16, %v3078_v47 }
 0x15b   : > { %1711 = vst [vmem:[#allocation2 + $0x2c8] sm:$0xff] %v1567_v22  ;;  %v1393_v32 = vmul.f32 %v3101_v3, %v1102_v24  ;;  %v1535_v33 = vadd.f32 %v1391_v25, %v1246_v18  ;;  %v954_v34 = vsub.f32 %v810_v26, %v3091_v56  ;;  %v708_v35 = vsub.f32 %v509_v16, %v3080_v48 }
 0x15c   : > { %v1536_v37 = vadd.f32 %v1392_v28, %v1247_v23  ;;  %v955_v39 = vsub.f32 %v811_v29, %v3093_v57  ;;  %v1097_v40 = vmax.f32 %v953_v30, 0.0  ;;  %v709_v41 = vsub.f32 %v509_v16, %v3082_v49  ;;  %v524_v23 = vpop.permute.xlu2 %523  ;;  %v1255_v29 = vld [vmem:[#allocation2 + $0x1e8] sm:$0xff]  ;;  %v1256_v30 = vld [vmem:[#allocation2 + $0x1f8] sm:$0xff] }
 0x15d   : > { %v1537_v42 = vadd.f32 %v1393_v32, %v1248_v27  ;;  %1679 = vst [vmem:[#allocation2 + $0x458] sm:$0xff] %v1535_v33  ;;  %v1098_v43 = vmax.f32 %v954_v34, 0.0  ;;  %v851_v44 = vand.u32 2147483647, %v707_v31  ;;  %v852_v45 = vand.u32 2147483647, %v708_v35 }
 0x15e   : > { %1680 = vst [vmem:[#allocation2 + $0x68] sm:$0xff] %v1536_v37  ;;  %v1099_v50 = vmax.f32 %v955_v39, 0.0  ;;  %v1388_v51 = vmul.f32 %v3101_v3, %v1097_v40  ;;  %v853_v53 = vand.u32 2147483647, %v709_v41  ;;  %v677_v54 = vsub.f32 %v459_v36, %v3078_v47  ;;  %v1257_v34 = vld [vmem:[#allocation2 + $0x60] sm:$0xff] }
 0x15f   : > { %1681 = vst [vmem:[#allocation2 + $0x470] sm:$0xff] %v1537_v42  ;;  %v1389_v58 = vmul.f32 %v3101_v3, %v1098_v43  ;;  %v995_v59 = vsub.f32 %v851_v44, %v3086_v52  ;;  %v996_v60 = vsub.f32 %v852_v45, %v3091_v56  ;;  %v678_v61 = vsub.f32 %v459_v36, %v3080_v48  ;;  %v474_v43 = vpop.permute.xlu1 %473 }
 0x160   : > { %v1390_v62 = vmul.f32 %v3101_v3, %v1099_v50  ;;  %v1532_v63 = vadd.f32 %v1388_v51, %v1243_v38  ;;  %v997_v0 = vsub.f32 %v853_v53, %v3093_v57  ;;  %v679_v1 = vsub.f32 %v459_v36, %v3082_v49 }
 0x161   : > { %v1533_v4 = vadd.f32 %v1389_v58, %v1244_v46  ;;  %v1139_v7 = vmax.f32 %v995_v59, 0.0  ;;  %v1140_v8 = vmax.f32 %v996_v60, 0.0  ;;  %v821_v9 = vand.u32 2147483647, %v677_v54  ;;  %v1252_v58 = vld [vmem:[#allocation2 + $0x198] sm:$0xff] }
 0x162   : > { %v1534_v10 = vadd.f32 %v1390_v62, %v1245_v55  ;;  %1676 = vst [vmem:[#allocation2 + $0xc8] sm:$0xff] %v1532_v63  ;;  %v1141_v11 = vmax.f32 %v997_v0, 0.0  ;;  %v822_v12 = vand.u32 2147483647, %v678_v61  ;;  %v823_v13 = vand.u32 2147483647, %v679_v1 }
 0x163   : > { %1677 = vst [vmem:[#allocation2 + $0x240] sm:$0xff] %v1533_v4  ;;  %v1430_v15 = vmul.f32 %v3101_v3, %v1139_v7  ;;  %v1431_v16 = vmul.f32 %v3101_v3, %v1140_v8  ;;  %v965_v17 = vsub.f32 %v821_v9, %v3086_v52  ;;  %v674_v18 = vsub.f32 %v454_v2, %v3078_v47  ;;  %v1253_v63 = vld [vmem:[#allocation2 + $0xb0] sm:$0xff]  ;;  %v1254_v0 = vld [vmem:[#allocation2 + $0x20] sm:$0xff] }
 0x164   : > { %1678 = vst [vmem:[#allocation2 + $0x390] sm:$0xff] %v1534_v10  ;;  %v1432_v19 = vmul.f32 %v3101_v3, %v1141_v11  ;;  %v966_v20 = vsub.f32 %v822_v12, %v3091_v56  ;;  %v967_v21 = vsub.f32 %v823_v13, %v3093_v57  ;;  %v675_v22 = vsub.f32 %v454_v2, %v3080_v48 }
 0x165   : > { %v1574_v24 = vadd.f32 %v1430_v15, %v1285_v5  ;;  %v1575_v25 = vadd.f32 %v1431_v16, %v1286_v6  ;;  %v1109_v26 = vmax.f32 %v965_v17, 0.0  ;;  %v676_v27 = vsub.f32 %v454_v2, %v3082_v49  ;;  %v1294_v17 = vld [vmem:[#allocation2 + $0x228] sm:$0xff] }
 0x166   : > { %v1576_v28 = vadd.f32 %v1432_v19, %v1287_v14  ;;  %v1110_v31 = vmax.f32 %v966_v20, 0.0  ;;  %v1111_v32 = vmax.f32 %v967_v21, 0.0  ;;  %v818_v33 = vand.u32 2147483647, %v674_v18  ;;  %v469_v14 = vpop.permute.xlu0 %468  ;;  %v1295_v20 = vld [vmem:[#allocation2 + $0x410] sm:$0xff] }
 0x167   : > { %1718 = vst [vmem:[#allocation2 + $0x140] sm:$0xff] %v1574_v24  ;;  %v1400_v35 = vmul.f32 %v3101_v3, %v1109_v26  ;;  %v819_v36 = vand.u32 2147483647, %v675_v22  ;;  %v820_v37 = vand.u32 2147483647, %v676_v27  ;;  %v716_v38 = vsub.f32 %v524_v23, %v3078_v47 }
 0x168   : > { %1719 = vst [vmem:[#allocation2 + $0x3a0] sm:$0xff] %v1575_v25  ;;  %v1401_v39 = vmul.f32 %v3101_v3, %v1110_v31  ;;  %v1402_v40 = vmul.f32 %v3101_v3, %v1111_v32  ;;  %v962_v41 = vsub.f32 %v818_v33, %v3086_v52  ;;  %v717_v42 = vsub.f32 %v524_v23, %v3080_v48  ;;  %v1296_v25 = vld [vmem:[#allocation2 + $0x210] sm:$0xff] }
 0x169   : > { %1720 = vst [vmem:[#allocation2 + $0xf8] sm:$0xff] %v1576_v28  ;;  %v1544_v44 = vadd.f32 %v1400_v35, %v1255_v29  ;;  %v963_v45 = vsub.f32 %v819_v36, %v3091_v56  ;;  %v964_v46 = vsub.f32 %v820_v37, %v3093_v57  ;;  %v718_v50 = vsub.f32 %v524_v23, %v3082_v49  ;;  %v1264_v36 = vld [vmem:[#allocation2 + $0x408] sm:$0xff] }
 0x16a   : > { %v1545_v51 = vadd.f32 %v1401_v39, %v1256_v30  ;;  %v1546_v53 = vadd.f32 %v1402_v40, %v1257_v34  ;;  %v1106_v54 = vmax.f32 %v962_v41, 0.0  ;;  %v860_v55 = vand.u32 2147483647, %v716_v38  ;;  %v539_v34 = vpop.permute.xlu2 %538  ;;  %v1265_v41 = vld [vmem:[#allocation2 + $0x2c0] sm:$0xff] }
 0x16b   : > { %1688 = vst [vmem:[#allocation2 + $0x1e8] sm:$0xff] %v1544_v44  ;;  %v1107_v59 = vmax.f32 %v963_v45, 0.0  ;;  %v1108_v60 = vmax.f32 %v964_v46, 0.0  ;;  %v861_v61 = vand.u32 2147483647, %v717_v42  ;;  %v686_v62 = vsub.f32 %v474_v43, %v3078_v47  ;;  %v1266_v45 = vld [vmem:[#allocation2 + $0x3f8] sm:$0xff] }
 0x16c   : > { %1689 = vst [vmem:[#allocation2 + $0x1f8] sm:$0xff] %v1545_v51  ;;  %v1397_v1 = vmul.f32 %v3101_v3, %v1106_v54  ;;  %v862_v2 = vand.u32 2147483647, %v718_v50  ;;  %v1004_v4 = vsub.f32 %v860_v55, %v3086_v52  ;;  %v687_v5 = vsub.f32 %v474_v43, %v3080_v48 }
 0x16d   : > { %1690 = vst [vmem:[#allocation2 + $0x60] sm:$0xff] %v1546_v53  ;;  %v1398_v6 = vmul.f32 %v3101_v3, %v1107_v59  ;;  %v1399_v7 = vmul.f32 %v3101_v3, %v1108_v60  ;;  %v1005_v8 = vsub.f32 %v861_v61, %v3091_v56  ;;  %v688_v9 = vsub.f32 %v474_v43, %v3082_v49  ;;  %v489_v60 = vpop.permute.xlu1 %488 }
 0x16e   : > { %v1541_v10 = vadd.f32 %v1397_v1, %v1252_v58  ;;  %v1006_v11 = vsub.f32 %v862_v2, %v3093_v57  ;;  %v1148_v12 = vmax.f32 %v1004_v4, 0.0  ;;  %v830_v13 = vand.u32 2147483647, %v686_v62  ;;  %v1261_v62 = vld [vmem:[#allocation2 + $0x1d0] sm:$0xff] }
 0x16f   : > { %v1542_v15 = vadd.f32 %v1398_v6, %v1253_v63  ;;  %v1543_v16 = vadd.f32 %v1399_v7, %v1254_v0  ;;  %v1149_v18 = vmax.f32 %v1005_v8, 0.0  ;;  %v831_v19 = vand.u32 2147483647, %v687_v5  ;;  %v1262_v7 = vld [vmem:[#allocation2 + $0x258] sm:$0xff] }
 0x170   : > { %1685 = vst [vmem:[#allocation2 + $0x198] sm:$0xff] %v1541_v10  ;;  %v1150_v21 = vmax.f32 %v1006_v11, 0.0  ;;  %v1439_v22 = vmul.f32 %v3101_v3, %v1148_v12  ;;  %v832_v23 = vand.u32 2147483647, %v688_v9  ;;  %v974_v24 = vsub.f32 %v830_v13, %v3086_v52  ;;  %v1263_v12 = vld [vmem:[#allocation2 + $0xd0] sm:$0xff] }
 0x171   : > { %1686 = vst [vmem:[#allocation2 + $0xb0] sm:$0xff] %v1542_v15  ;;  %v1440_v26 = vmul.f32 %v3101_v3, %v1149_v18  ;;  %v975_v27 = vsub.f32 %v831_v19, %v3091_v56  ;;  %v683_v28 = vsub.f32 %v469_v14, %v3078_v47  ;;  %v684_v29 = vsub.f32 %v469_v14, %v3080_v48 }
 0x172   : > { %1687 = vst [vmem:[#allocation2 + $0x20] sm:$0xff] %v1543_v16  ;;  %v1441_v30 = vmul.f32 %v3101_v3, %v1150_v21  ;;  %v1583_v31 = vadd.f32 %v1439_v22, %v1294_v17  ;;  %v976_v32 = vsub.f32 %v832_v23, %v3093_v57  ;;  %v1118_v33 = vmax.f32 %v974_v24, 0.0  ;;  %v484_v21 = vpop.permute.xlu0 %483  ;;  %v1303_v23 = vld [vmem:[#allocation2 + $0x230] sm:$0xff]  ;;  %v1304_v24 = vld [vmem:[#allocation2 + $0xb8] sm:$0xff] }
 0x173   : > { %v1584_v35 = vadd.f32 %v1440_v26, %v1295_v20  ;;  %v1119_v37 = vmax.f32 %v975_v27, 0.0  ;;  %v685_v38 = vsub.f32 %v469_v14, %v3082_v49  ;;  %v827_v39 = vand.u32 2147483647, %v683_v28 }
 0x174   : > { %v1585_v40 = vadd.f32 %v1441_v30, %v1296_v25  ;;  %1727 = vst [vmem:[#allocation2 + $0x228] sm:$0xff] %v1583_v31  ;;  %v1120_v42 = vmax.f32 %v976_v32, 0.0  ;;  %v1409_v43 = vmul.f32 %v3101_v3, %v1118_v33  ;;  %v828_v44 = vand.u32 2147483647, %v684_v29  ;;  %v1305_v32 = vld [vmem:[#allocation2 + $0x468] sm:$0xff] }
 0x175   : > { %1728 = vst [vmem:[#allocation2 + $0x410] sm:$0xff] %v1584_v35  ;;  %v1410_v46 = vmul.f32 %v3101_v3, %v1119_v37  ;;  %v829_v50 = vand.u32 2147483647, %v685_v38  ;;  %v971_v51 = vsub.f32 %v827_v39, %v3086_v52  ;;  %v725_v53 = vsub.f32 %v539_v34, %v3078_v47 }
 0x176   : > { %1729 = vst [vmem:[#allocation2 + $0x210] sm:$0xff] %v1585_v40  ;;  %v1411_v54 = vmul.f32 %v3101_v3, %v1120_v42  ;;  %v1553_v55 = vadd.f32 %v1409_v43, %v1264_v36  ;;  %v972_v58 = vsub.f32 %v828_v44, %v3091_v56  ;;  %v726_v59 = vsub.f32 %v539_v34, %v3080_v48 }
 0x177   : > { %v1554_v61 = vadd.f32 %v1410_v46, %v1265_v41  ;;  %v973_v63 = vsub.f32 %v829_v50, %v3093_v57  ;;  %v1115_v0 = vmax.f32 %v971_v51, 0.0  ;;  %v727_v1 = vsub.f32 %v539_v34, %v3082_v49  ;;  %v554_v41 = vpop.permute.xlu2 %553  ;;  %v1273_v50 = vld [vmem:[#allocation2 + $0x310] sm:$0xff]  ;;  %v1274_v51 = vld [vmem:[#allocation2 + $0x280] sm:$0xff] }
 0x178   : > { %v1555_v2 = vadd.f32 %v1411_v54, %v1266_v45  ;;  %1697 = vst [vmem:[#allocation2 + $0x408] sm:$0xff] %v1553_v55  ;;  %v1116_v4 = vmax.f32 %v972_v58, 0.0  ;;  %v869_v5 = vand.u32 2147483647, %v725_v53  ;;  %v870_v6 = vand.u32 2147483647, %v726_v59 }
 0x179   : > { %1698 = vst [vmem:[#allocation2 + $0x2c0] sm:$0xff] %v1554_v61  ;;  %v1117_v8 = vmax.f32 %v973_v63, 0.0  ;;  %v1406_v9 = vmul.f32 %v3101_v3, %v1115_v0  ;;  %v871_v10 = vand.u32 2147483647, %v727_v1  ;;  %v695_v11 = vsub.f32 %v489_v60, %v3078_v47  ;;  %v1275_v58 = vld [vmem:[#allocation2 + $0x288] sm:$0xff] }
 0x17a   : > { %1699 = vst [vmem:[#allocation2 + $0x3f8] sm:$0xff] %v1555_v2  ;;  %v1407_v13 = vmul.f32 %v3101_v3, %v1116_v4  ;;  %v1013_v14 = vsub.f32 %v869_v5, %v3086_v52  ;;  %v1014_v15 = vsub.f32 %v870_v6, %v3091_v56  ;;  %v696_v16 = vsub.f32 %v489_v60, %v3080_v48  ;;  %v504_v4 = vpop.permute.xlu1 %503 }
 0x17b   : > { %v1408_v17 = vmul.f32 %v3101_v3, %v1117_v8  ;;  %v1550_v18 = vadd.f32 %v1406_v9, %v1261_v62  ;;  %v1015_v19 = vsub.f32 %v871_v10, %v3093_v57  ;;  %v697_v20 = vsub.f32 %v489_v60, %v3082_v49 }
 0x17c   : > { %v1551_v22 = vadd.f32 %v1407_v13, %v1262_v7  ;;  %v1157_v25 = vmax.f32 %v1013_v14, 0.0  ;;  %v1158_v26 = vmax.f32 %v1014_v15, 0.0  ;;  %v839_v27 = vand.u32 2147483647, %v695_v11  ;;  %v1270_v13 = vld [vmem:[#allocation2 + $0x330] sm:$0xff] }
 0x17d   : > { %v1552_v28 = vadd.f32 %v1408_v17, %v1263_v12  ;;  %1694 = vst [vmem:[#allocation2 + $0x1d0] sm:$0xff] %v1550_v18  ;;  %v1159_v29 = vmax.f32 %v1015_v19, 0.0  ;;  %v840_v30 = vand.u32 2147483647, %v696_v16  ;;  %v841_v31 = vand.u32 2147483647, %v697_v20 }
 0x17e   : > { %1695 = vst [vmem:[#allocation2 + $0x258] sm:$0xff] %v1551_v22  ;;  %v1448_v33 = vmul.f32 %v3101_v3, %v1157_v25  ;;  %v1449_v34 = vmul.f32 %v3101_v3, %v1158_v26  ;;  %v983_v35 = vsub.f32 %v839_v27, %v3086_v52  ;;  %v692_v36 = vsub.f32 %v484_v21, %v3078_v47  ;;  %v1271_v18 = vld [vmem:[#allocation2 + $0x220] sm:$0xff]  ;;  %v1272_v19 = vld [vmem:[#allocation2 + $0x1b8] sm:$0xff] }
 0x17f   : > { %1696 = vst [vmem:[#allocation2 + $0xd0] sm:$0xff] %v1552_v28  ;;  %v1450_v37 = vmul.f32 %v3101_v3, %v1159_v29  ;;  %v984_v38 = vsub.f32 %v840_v30, %v3091_v56  ;;  %v985_v39 = vsub.f32 %v841_v31, %v3093_v57  ;;  %v693_v40 = vsub.f32 %v484_v21, %v3080_v48 }
 0x180   : > { %v1592_v42 = vadd.f32 %v1448_v33, %v1303_v23  ;;  %v1593_v43 = vadd.f32 %v1449_v34, %v1304_v24  ;;  %v1127_v44 = vmax.f32 %v983_v35, 0.0  ;;  %v694_v45 = vsub.f32 %v484_v21, %v3082_v49  ;;  %v1312_v35 = vld [vmem:[#allocation2 + $0x110] sm:$0xff] }
 0x181   : > { %v1594_v46 = vadd.f32 %v1450_v37, %v1305_v32  ;;  %v1128_v53 = vmax.f32 %v984_v38, 0.0  ;;  %v1129_v54 = vmax.f32 %v985_v39, 0.0  ;;  %v836_v55 = vand.u32 2147483647, %v692_v36  ;;  %v499_v32 = vpop.permute.xlu0 %498  ;;  %v1313_v38 = vld [vmem:[#allocation2 + $0x460] sm:$0xff] }
 0x182   : > { %1736 = vst [vmem:[#allocation2 + $0x230] sm:$0xff] %v1592_v42  ;;  %v1418_v59 = vmul.f32 %v3101_v3, %v1127_v44  ;;  %v837_v60 = vand.u32 2147483647, %v693_v40  ;;  %v838_v61 = vand.u32 2147483647, %v694_v45  ;;  %v734_v62 = vsub.f32 %v554_v41, %v3078_v47 }
 0x183   : > { %1737 = vst [vmem:[#allocation2 + $0xb8] sm:$0xff] %v1593_v43  ;;  %v1419_v63 = vmul.f32 %v3101_v3, %v1128_v53  ;;  %v1420_v0 = vmul.f32 %v3101_v3, %v1129_v54  ;;  %v980_v1 = vsub.f32 %v836_v55, %v3086_v52  ;;  %v735_v2 = vsub.f32 %v554_v41, %v3080_v48  ;;  %v1314_v43 = vld [vmem:[#allocation2 + $0x2a0] sm:$0xff] }
 0x184   : > { %1738 = vst [vmem:[#allocation2 + $0x468] sm:$0xff] %v1594_v46  ;;  %v1562_v5 = vadd.f32 %v1418_v59, %v1273_v50  ;;  %v981_v6 = vsub.f32 %v837_v60, %v3091_v56  ;;  %v982_v7 = vsub.f32 %v838_v61, %v3093_v57  ;;  %v736_v8 = vsub.f32 %v554_v41, %v3082_v49  ;;  %v1282_v60 = vld [vmem:[#allocation2 + $0x270] sm:$0xff] }
 0x185   : > { %v1563_v9 = vadd.f32 %v1419_v63, %v1274_v51  ;;  %v1564_v10 = vadd.f32 %v1420_v0, %v1275_v58  ;;  %v1124_v11 = vmax.f32 %v980_v1, 0.0  ;;  %v878_v12 = vand.u32 2147483647, %v734_v62  ;;  %v569_v58 = vpop.permute.xlu2 %568  ;;  %v1283_v1 = vld [vmem:[#allocation2 + $0x200] sm:$0xff] }
 0x186   : > { %1706 = vst [vmem:[#allocation2 + $0x310] sm:$0xff] %v1562_v5  ;;  %v1125_v14 = vmax.f32 %v981_v6, 0.0  ;;  %v1126_v15 = vmax.f32 %v982_v7, 0.0  ;;  %v879_v16 = vand.u32 2147483647, %v735_v2  ;;  %v704_v17 = vsub.f32 %v504_v4, %v3078_v47  ;;  %v1284_v6 = vld [vmem:[#allocation2 + $0x1a0] sm:$0xff] }
 0x187   : > { %1707 = vst [vmem:[#allocation2 + $0x280] sm:$0xff] %v1563_v9  ;;  %v1415_v20 = vmul.f32 %v3101_v3, %v1124_v11  ;;  %v880_v21 = vand.u32 2147483647, %v736_v8  ;;  %v1022_v22 = vsub.f32 %v878_v12, %v3086_v52  ;;  %v705_v23 = vsub.f32 %v504_v4, %v3080_v48 }
 0x188   : > { %1708 = vst [vmem:[#allocation2 + $0x288] sm:$0xff] %v1564_v10  ;;  %v1416_v24 = vmul.f32 %v3101_v3, %v1125_v14  ;;  %v1417_v25 = vmul.f32 %v3101_v3, %v1126_v15  ;;  %v1023_v26 = vsub.f32 %v879_v16, %v3091_v56  ;;  %v706_v27 = vsub.f32 %v504_v4, %v3082_v49  ;;  %v519_v15 = vpop.permute.xlu1 %518 }
 0x189   : > { %v1559_v28 = vadd.f32 %v1415_v20, %v1270_v13  ;;  %v1024_v29 = vsub.f32 %v880_v21, %v3093_v57  ;;  %v1166_v30 = vmax.f32 %v1022_v22, 0.0  ;;  %v848_v31 = vand.u32 2147483647, %v704_v17  ;;  %v1279_v17 = vld [vmem:[#allocation2 + $0x3c0] sm:$0xff] }
 0x18a   : > { %v1560_v33 = vadd.f32 %v1416_v24, %v1271_v18  ;;  %v1561_v34 = vadd.f32 %v1417_v25, %v1272_v19  ;;  %v1167_v36 = vmax.f32 %v1023_v26, 0.0  ;;  %v849_v37 = vand.u32 2147483647, %v705_v23  ;;  %v1280_v25 = vld [vmem:[#allocation2 + $0x418] sm:$0xff] }
 0x18b   : > { %1703 = vst [vmem:[#allocation2 + $0x330] sm:$0xff] %v1559_v28  ;;  %v1168_v39 = vmax.f32 %v1024_v29, 0.0  ;;  %v1457_v40 = vmul.f32 %v3101_v3, %v1166_v30  ;;  %v850_v41 = vand.u32 2147483647, %v706_v27  ;;  %v992_v42 = vsub.f32 %v848_v31, %v3086_v52  ;;  %v1281_v30 = vld [vmem:[#allocation2 + $0x70] sm:$0xff] }
 0x18c   : > { %1704 = vst [vmem:[#allocation2 + $0x220] sm:$0xff] %v1560_v33  ;;  %v1458_v44 = vmul.f32 %v3101_v3, %v1167_v36  ;;  %v993_v45 = vsub.f32 %v849_v37, %v3091_v56  ;;  %v701_v46 = vsub.f32 %v499_v32, %v3078_v47  ;;  %v702_v50 = vsub.f32 %v499_v32, %v3080_v48 }
 0x18d   : > { %1705 = vst [vmem:[#allocation2 + $0x1b8] sm:$0xff] %v1561_v34  ;;  %v1459_v51 = vmul.f32 %v3101_v3, %v1168_v39  ;;  %v1601_v53 = vadd.f32 %v1457_v40, %v1312_v35  ;;  %v994_v54 = vsub.f32 %v850_v41, %v3093_v57  ;;  %v1136_v55 = vmax.f32 %v992_v42, 0.0  ;;  %v514_v39 = vpop.permute.xlu0 %513  ;;  %v1321_v41 = vld [vmem:[#allocation2 + $0x138] sm:$0xff] }
 0x18e   : > { %v1602_v59 = vadd.f32 %v1458_v44, %v1313_v38  ;;  %v1137_v61 = vmax.f32 %v993_v45, 0.0  ;;  %v703_v62 = vsub.f32 %v499_v32, %v3082_v49  ;;  %v845_v63 = vand.u32 2147483647, %v701_v46  ;;  %v1322_v42 = vld [vmem:[#allocation2 + $0xd8] sm:$0xff] }
 0x18f   : > { %v1603_v0 = vadd.f32 %v1459_v51, %v1314_v43  ;;  %1745 = vst [vmem:[#allocation2 + $0x110] sm:$0xff] %v1601_v53  ;;  %v1138_v2 = vmax.f32 %v994_v54, 0.0  ;;  %v1427_v4 = vmul.f32 %v3101_v3, %v1136_v55  ;;  %v846_v5 = vand.u32 2147483647, %v702_v50  ;;  %v1323_v54 = vld [vmem:[#allocation2 + $0x2d8] sm:$0xff] }
 0x190   : > { %1746 = vst [vmem:[#allocation2 + $0x460] sm:$0xff] %v1602_v59  ;;  %v1428_v7 = vmul.f32 %v3101_v3, %v1137_v61  ;;  %v847_v8 = vand.u32 2147483647, %v703_v62  ;;  %v989_v9 = vsub.f32 %v845_v63, %v3086_v52  ;;  %v743_v10 = vsub.f32 %v569_v58, %v3078_v47 }
 0x191   : > { %1747 = vst [vmem:[#allocation2 + $0x2a0] sm:$0xff] %v1603_v0  ;;  %v1429_v11 = vmul.f32 %v3101_v3, %v1138_v2  ;;  %v1571_v12 = vadd.f32 %v1427_v4, %v1282_v60  ;;  %v990_v13 = vsub.f32 %v846_v5, %v3091_v56  ;;  %v744_v14 = vsub.f32 %v569_v58, %v3080_v48 }
 0x192   : > { %v1572_v16 = vadd.f32 %v1428_v7, %v1283_v1  ;;  %v991_v18 = vsub.f32 %v847_v8, %v3093_v57  ;;  %v1133_v19 = vmax.f32 %v989_v9, 0.0  ;;  %v745_v20 = vsub.f32 %v569_v58, %v3082_v49  ;;  %v584_v1 = vpop.permute.xlu2 %583  ;;  %v1291_v8 = vld [vmem:[#allocation2 + $0x130] sm:$0xff]  ;;  %v1292_v9 = vld [vmem:[#allocation2 + $0x318] sm:$0xff] }
 0x193   : > { %v1573_v21 = vadd.f32 %v1429_v11, %v1284_v6  ;;  %1715 = vst [vmem:[#allocation2 + $0x270] sm:$0xff] %v1571_v12  ;;  %v1134_v22 = vmax.f32 %v990_v13, 0.0  ;;  %v887_v23 = vand.u32 2147483647, %v743_v10  ;;  %v888_v24 = vand.u32 2147483647, %v744_v14 }
 0x194   : > { %1716 = vst [vmem:[#allocation2 + $0x200] sm:$0xff] %v1572_v16  ;;  %v1135_v26 = vmax.f32 %v991_v18, 0.0  ;;  %v1424_v27 = vmul.f32 %v3101_v3, %v1133_v19  ;;  %v889_v28 = vand.u32 2147483647, %v745_v20  ;;  %v713_v29 = vsub.f32 %v519_v15, %v3078_v47  ;;  %v1293_v13 = vld [vmem:[#allocation2 + $0x268] sm:$0xff] }
 0x195   : > { %1717 = vst [vmem:[#allocation2 + $0x1a0] sm:$0xff] %v1573_v21  ;;  %v1425_v31 = vmul.f32 %v3101_v3, %v1134_v22  ;;  %v1031_v32 = vsub.f32 %v887_v23, %v3086_v52  ;;  %v1032_v33 = vsub.f32 %v888_v24, %v3091_v56  ;;  %v714_v34 = vsub.f32 %v519_v15, %v3080_v48  ;;  %v534_v22 = vpop.permute.xlu1 %533 }
 0x196   : > { %v1426_v35 = vmul.f32 %v3101_v3, %v1135_v26  ;;  %v1568_v36 = vadd.f32 %v1424_v27, %v1279_v17  ;;  %v1033_v37 = vsub.f32 %v889_v28, %v3093_v57  ;;  %v715_v38 = vsub.f32 %v519_v15, %v3082_v49 }
 0x197   : > { %v1569_v40 = vadd.f32 %v1425_v31, %v1280_v25  ;;  %v1175_v43 = vmax.f32 %v1031_v32, 0.0  ;;  %v1176_v44 = vmax.f32 %v1032_v33, 0.0  ;;  %v857_v45 = vand.u32 2147483647, %v713_v29  ;;  %v1288_v31 = vld [vmem:[#allocation2 + $0x128] sm:$0xff] }
 0x198   : > { %v1570_v46 = vadd.f32 %v1426_v35, %v1281_v30  ;;  %1712 = vst [vmem:[#allocation2 + $0x3c0] sm:$0xff] %v1568_v36  ;;  %v1177_v50 = vmax.f32 %v1033_v37, 0.0  ;;  %v858_v51 = vand.u32 2147483647, %v714_v34  ;;  %v859_v53 = vand.u32 2147483647, %v715_v38 }
 0x199   : > { %1713 = vst [vmem:[#allocation2 + $0x418] sm:$0xff] %v1569_v40  ;;  %v1466_v55 = vmul.f32 %v3101_v3, %v1175_v43  ;;  %v1467_v58 = vmul.f32 %v3101_v3, %v1176_v44  ;;  %v1001_v59 = vsub.f32 %v857_v45, %v3086_v52  ;;  %v710_v60 = vsub.f32 %v514_v39, %v3078_v47  ;;  %v1289_v36 = vld [vmem:[#allocation2 + $0x160] sm:$0xff]  ;;  %v1290_v37 = vld [vmem:[#allocation2 + $0x2a8] sm:$0xff] }
 0x19a   : > { %1714 = vst [vmem:[#allocation2 + $0x70] sm:$0xff] %v1570_v46  ;;  %v1468_v61 = vmul.f32 %v3101_v3, %v1177_v50  ;;  %v1002_v62 = vsub.f32 %v858_v51, %v3091_v56  ;;  %v1003_v63 = vsub.f32 %v859_v53, %v3093_v57  ;;  %v711_v0 = vsub.f32 %v514_v39, %v3080_v48 }
 0x19b   : > { %v1610_v2 = vadd.f32 %v1466_v55, %v1321_v41  ;;  %v1611_v4 = vadd.f32 %v1467_v58, %v1322_v42  ;;  %v1145_v5 = vmax.f32 %v1001_v59, 0.0  ;;  %v712_v6 = vsub.f32 %v514_v39, %v3082_v49  ;;  %v1330_v59 = vld [vmem:[#allocation2 + $0x440] sm:$0xff] }
 0x19c   : > { %v1612_v7 = vadd.f32 %v1468_v61, %v1323_v54  ;;  %v1146_v10 = vmax.f32 %v1002_v62, 0.0  ;;  %v1147_v11 = vmax.f32 %v1003_v63, 0.0  ;;  %v854_v12 = vand.u32 2147483647, %v710_v60  ;;  %v529_v54 = vpop.permute.xlu0 %528  ;;  %v1331_v62 = vld [vmem:[#allocation2 + $0x158] sm:$0xff] }
 0x19d   : > { %1754 = vst [vmem:[#allocation2 + $0x138] sm:$0xff] %v1610_v2  ;;  %v1436_v14 = vmul.f32 %v3101_v3, %v1145_v5  ;;  %v855_v15 = vand.u32 2147483647, %v711_v0  ;;  %v856_v16 = vand.u32 2147483647, %v712_v6  ;;  %v752_v17 = vsub.f32 %v584_v1, %v3078_v47 }
 0x19e   : > { %1755 = vst [vmem:[#allocation2 + $0xd8] sm:$0xff] %v1611_v4  ;;  %v1437_v18 = vmul.f32 %v3101_v3, %v1146_v10  ;;  %v1438_v19 = vmul.f32 %v3101_v3, %v1147_v11  ;;  %v998_v20 = vsub.f32 %v854_v12, %v3086_v52  ;;  %v753_v21 = vsub.f32 %v584_v1, %v3080_v48  ;;  %v1332_v4 = vld [vmem:[#allocation2 + $0x360] sm:$0xff] }
 0x19f   : > { %1756 = vst [vmem:[#allocation2 + $0x2d8] sm:$0xff] %v1612_v7  ;;  %v1580_v23 = vadd.f32 %v1436_v14, %v1291_v8  ;;  %v999_v24 = vsub.f32 %v855_v15, %v3091_v56  ;;  %v1000_v25 = vsub.f32 %v856_v16, %v3093_v57  ;;  %v754_v26 = vsub.f32 %v584_v1, %v3082_v49  ;;  %v1300_v15 = vld [vmem:[#allocation2 + $0x400] sm:$0xff] }
 0x1a0   : > { %v1581_v27 = vadd.f32 %v1437_v18, %v1292_v9  ;;  %v1582_v28 = vadd.f32 %v1438_v19, %v1293_v13  ;;  %v1142_v29 = vmax.f32 %v998_v20, 0.0  ;;  %v896_v30 = vand.u32 2147483647, %v752_v17  ;;  %v599_v13 = vpop.permute.xlu2 %598  ;;  %v1301_v20 = vld [vmem:[#allocation2 + $0x1b0] sm:$0xff] }
 0x1a1   : > { %1724 = vst [vmem:[#allocation2 + $0x130] sm:$0xff] %v1580_v23  ;;  %v1143_v32 = vmax.f32 %v999_v24, 0.0  ;;  %v1144_v33 = vmax.f32 %v1000_v25, 0.0  ;;  %v897_v34 = vand.u32 2147483647, %v753_v21  ;;  %v722_v35 = vsub.f32 %v534_v22, %v3078_v47  ;;  %v1302_v24 = vld [vmem:[#allocation2 + $0x328] sm:$0xff] }
 0x1a2   : > { %1725 = vst [vmem:[#allocation2 + $0x318] sm:$0xff] %v1581_v27  ;;  %v1433_v38 = vmul.f32 %v3101_v3, %v1142_v29  ;;  %v898_v39 = vand.u32 2147483647, %v754_v26  ;;  %v1040_v40 = vsub.f32 %v896_v30, %v3086_v52  ;;  %v723_v41 = vsub.f32 %v534_v22, %v3080_v48 }
 0x1a3   : > { %1726 = vst [vmem:[#allocation2 + $0x268] sm:$0xff] %v1582_v28  ;;  %v1434_v42 = vmul.f32 %v3101_v3, %v1143_v32  ;;  %v1435_v43 = vmul.f32 %v3101_v3, %v1144_v33  ;;  %v1041_v44 = vsub.f32 %v897_v34, %v3091_v56  ;;  %v724_v45 = vsub.f32 %v534_v22, %v3082_v49  ;;  %v549_v33 = vpop.permute.xlu1 %548 }
 0x1a4   : > { %v1577_v46 = vadd.f32 %v1433_v38, %v1288_v31  ;;  %v1042_v50 = vsub.f32 %v898_v39, %v3093_v57  ;;  %v1184_v51 = vmax.f32 %v1040_v40, 0.0  ;;  %v866_v53 = vand.u32 2147483647, %v722_v35  ;;  %v1297_v35 = vld [vmem:[#allocation2 + $0x1c0] sm:$0xff] }
 0x1a5   : > { %v1578_v55 = vadd.f32 %v1434_v42, %v1289_v36  ;;  %v1579_v58 = vadd.f32 %v1435_v43, %v1290_v37  ;;  %v1185_v60 = vmax.f32 %v1041_v44, 0.0  ;;  %v867_v61 = vand.u32 2147483647, %v723_v41  ;;  %v1298_v43 = vld [vmem:[#allocation2 + $0x358] sm:$0xff] }
 0x1a6   : > { %1721 = vst [vmem:[#allocation2 + $0x128] sm:$0xff] %v1577_v46  ;;  %v1186_v63 = vmax.f32 %v1042_v50, 0.0  ;;  %v1475_v0 = vmul.f32 %v3101_v3, %v1184_v51  ;;  %v868_v1 = vand.u32 2147483647, %v724_v45  ;;  %v1010_v2 = vsub.f32 %v866_v53, %v3086_v52  ;;  %v1299_v51 = vld [vmem:[#allocation2 + $0x8] sm:$0xff] }
 0x1a7   : > { %1722 = vst [vmem:[#allocation2 + $0x160] sm:$0xff] %v1578_v55  ;;  %v1476_v5 = vmul.f32 %v3101_v3, %v1185_v60  ;;  %v1011_v6 = vsub.f32 %v867_v61, %v3091_v56  ;;  %v719_v7 = vsub.f32 %v529_v54, %v3078_v47  ;;  %v720_v8 = vsub.f32 %v529_v54, %v3080_v48 }
 0x1a8   : > { %1723 = vst [vmem:[#allocation2 + $0x2a8] sm:$0xff] %v1579_v58  ;;  %v1477_v9 = vmul.f32 %v3101_v3, %v1186_v63  ;;  %v1619_v10 = vadd.f32 %v1475_v0, %v1330_v59  ;;  %v1012_v11 = vsub.f32 %v868_v1, %v3093_v57  ;;  %v1154_v12 = vmax.f32 %v1010_v2, 0.0  ;;  %v544_v63 = vpop.permute.xlu0 %543  ;;  %v1339_v1 = vld [vmem:[#allocation2 + $0x1c8] sm:$0xff]  ;;  %v1340_v2 = vld [vmem:[#allocation2 + $0x190] sm:$0xff] }
 0x1a9   : > { %v1620_v14 = vadd.f32 %v1476_v5, %v1331_v62  ;;  %v1155_v16 = vmax.f32 %v1011_v6, 0.0  ;;  %v721_v17 = vsub.f32 %v529_v54, %v3082_v49  ;;  %v863_v18 = vand.u32 2147483647, %v719_v7 }
 0x1aa   : > { %v1621_v19 = vadd.f32 %v1477_v9, %v1332_v4  ;;  %1763 = vst [vmem:[#allocation2 + $0x440] sm:$0xff] %v1619_v10  ;;  %v1156_v21 = vmax.f32 %v1012_v11, 0.0  ;;  %v1445_v22 = vmul.f32 %v3101_v3, %v1154_v12  ;;  %v864_v23 = vand.u32 2147483647, %v720_v8  ;;  %v1341_v11 = vld [vmem:[#allocation2 + $0x3d0] sm:$0xff] }
 0x1ab   : > { %1764 = vst [vmem:[#allocation2 + $0x158] sm:$0xff] %v1620_v14  ;;  %v1446_v25 = vmul.f32 %v3101_v3, %v1155_v16  ;;  %v865_v26 = vand.u32 2147483647, %v721_v17  ;;  %v1007_v27 = vsub.f32 %v863_v18, %v3086_v52  ;;  %v761_v28 = vsub.f32 %v599_v13, %v3078_v47 }
 0x1ac   : > { %1765 = vst [vmem:[#allocation2 + $0x360] sm:$0xff] %v1621_v19  ;;  %v1447_v29 = vmul.f32 %v3101_v3, %v1156_v21  ;;  %v1589_v30 = vadd.f32 %v1445_v22, %v1300_v15  ;;  %v1008_v31 = vsub.f32 %v864_v23, %v3091_v56  ;;  %v762_v32 = vsub.f32 %v599_v13, %v3080_v48 }
 0x1ad   : > { %v1590_v34 = vadd.f32 %v1446_v25, %v1301_v20  ;;  %v1009_v36 = vsub.f32 %v865_v26, %v3093_v57  ;;  %v1151_v37 = vmax.f32 %v1007_v27, 0.0  ;;  %v763_v38 = vsub.f32 %v599_v13, %v3082_v49  ;;  %v614_v20 = vpop.permute.xlu2 %613  ;;  %v1309_v26 = vld [vmem:[#allocation2 + $0x218] sm:$0xff]  ;;  %v1310_v27 = vld [vmem:[#allocation2 + $0x1f0] sm:$0xff] }
 0x1ae   : > { %v1591_v39 = vadd.f32 %v1447_v29, %v1302_v24  ;;  %1733 = vst [vmem:[#allocation2 + $0x400] sm:$0xff] %v1589_v30  ;;  %v1152_v40 = vmax.f32 %v1008_v31, 0.0  ;;  %v905_v41 = vand.u32 2147483647, %v761_v28  ;;  %v906_v42 = vand.u32 2147483647, %v762_v32 }
 0x1af   : > { %1734 = vst [vmem:[#allocation2 + $0x1b0] sm:$0xff] %v1590_v34  ;;  %v1153_v44 = vmax.f32 %v1009_v36, 0.0  ;;  %v1442_v45 = vmul.f32 %v3101_v3, %v1151_v37  ;;  %v907_v46 = vand.u32 2147483647, %v763_v38  ;;  %v731_v50 = vsub.f32 %v549_v33, %v3078_v47  ;;  %v1311_v31 = vld [vmem:[#allocation2 + $0x178] sm:$0xff] }
 0x1b0   : > { %1735 = vst [vmem:[#allocation2 + $0x328] sm:$0xff] %v1591_v39  ;;  %v1443_v53 = vmul.f32 %v3101_v3, %v1152_v40  ;;  %v1049_v54 = vsub.f32 %v905_v41, %v3086_v52  ;;  %v1050_v55 = vsub.f32 %v906_v42, %v3091_v56  ;;  %v732_v58 = vsub.f32 %v549_v33, %v3080_v48  ;;  %v564_v40 = vpop.permute.xlu1 %563 }
 0x1b1   : > { %v1444_v59 = vmul.f32 %v3101_v3, %v1153_v44  ;;  %v1586_v60 = vadd.f32 %v1442_v45, %v1297_v35  ;;  %v1051_v61 = vsub.f32 %v907_v46, %v3093_v57  ;;  %v733_v62 = vsub.f32 %v549_v33, %v3082_v49 }
 0x1b2   : > { %v1587_v0 = vadd.f32 %v1443_v53, %v1298_v43  ;;  %v1193_v4 = vmax.f32 %v1049_v54, 0.0  ;;  %v1194_v5 = vmax.f32 %v1050_v55, 0.0  ;;  %v875_v6 = vand.u32 2147483647, %v731_v50  ;;  %v1306_v53 = vld [vmem:[#allocation2 + $0x2d0] sm:$0xff] }
 0x1b3   : > { %v1588_v7 = vadd.f32 %v1444_v59, %v1299_v51  ;;  %1730 = vst [vmem:[#allocation2 + $0x1c0] sm:$0xff] %v1586_v60  ;;  %v1195_v8 = vmax.f32 %v1051_v61, 0.0  ;;  %v876_v9 = vand.u32 2147483647, %v732_v58  ;;  %v877_v10 = vand.u32 2147483647, %v733_v62 }
 0x1b4   : > { %1731 = vst [vmem:[#allocation2 + $0x358] sm:$0xff] %v1587_v0  ;;  %v1484_v12 = vmul.f32 %v3101_v3, %v1193_v4  ;;  %v1485_v13 = vmul.f32 %v3101_v3, %v1194_v5  ;;  %v1019_v14 = vsub.f32 %v875_v6, %v3086_v52  ;;  %v728_v15 = vsub.f32 %v544_v63, %v3078_v47  ;;  %v1307_v60 = vld [vmem:[#allocation2 + $0x78] sm:$0xff] }
 0x1b5   : > { %1732 = vst [vmem:[#allocation2 + $0x8] sm:$0xff] %v1588_v7  ;;  %v1486_v16 = vmul.f32 %v3101_v3, %v1195_v8  ;;  %v1020_v17 = vsub.f32 %v876_v9, %v3091_v56  ;;  %v1021_v18 = vsub.f32 %v877_v10, %v3093_v57  ;;  %v729_v19 = vsub.f32 %v544_v63, %v3080_v48  ;;  %v1308_v61 = vld [vmem:[#allocation2 + $0x2f8] sm:$0xff] }
 0x1b6   : > { %v1628_v21 = vadd.f32 %v1484_v12, %v1339_v1  ;;  %v1629_v22 = vadd.f32 %v1485_v13, %v1340_v2  ;;  %v1163_v23 = vmax.f32 %v1019_v14, 0.0  ;;  %v730_v24 = vsub.f32 %v544_v63, %v3082_v49  ;;  %v1348_v14 = vld [vmem:[#allocation2 + $0x388] sm:$0xff] }
 0x1b7   : > { %v1630_v25 = vadd.f32 %v1486_v16, %v1341_v11  ;;  %v1164_v28 = vmax.f32 %v1020_v17, 0.0  ;;  %v1165_v29 = vmax.f32 %v1021_v18, 0.0  ;;  %v872_v30 = vand.u32 2147483647, %v728_v15  ;;  %v559_v11 = vpop.permute.xlu0 %558  ;;  %v1349_v17 = vld [vmem:[#allocation2 + $0x430] sm:$0xff] }
 0x1b8   : > { %1772 = vst [vmem:[#allocation2 + $0x1c8] sm:$0xff] %v1628_v21  ;;  %v1454_v32 = vmul.f32 %v3101_v3, %v1163_v23  ;;  %v873_v33 = vand.u32 2147483647, %v729_v19  ;;  %v874_v34 = vand.u32 2147483647, %v730_v24  ;;  %v770_v35 = vsub.f32 %v614_v20, %v3078_v47 }
 0x1b9   : > { %1773 = vst [vmem:[#allocation2 + $0x190] sm:$0xff] %v1629_v22  ;;  %v1455_v36 = vmul.f32 %v3101_v3, %v1164_v28  ;;  %v1456_v37 = vmul.f32 %v3101_v3, %v1165_v29  ;;  %v1016_v38 = vsub.f32 %v872_v30, %v3086_v52  ;;  %v771_v39 = vsub.f32 %v614_v20, %v3080_v48  ;;  %v1350_v22 = vld [vmem:[#allocation2 + $0x80] sm:$0xff] }
 0x1ba   : > { %1774 = vst [vmem:[#allocation2 + $0x3d0] sm:$0xff] %v1630_v25  ;;  %v1598_v41 = vadd.f32 %v1454_v32, %v1309_v26  ;;  %v1017_v42 = vsub.f32 %v873_v33, %v3091_v56  ;;  %v1018_v43 = vsub.f32 %v874_v34, %v3093_v57  ;;  %v772_v44 = vsub.f32 %v614_v20, %v3082_v49  ;;  %v1318_v33 = vld [vmem:[#allocation2 + $0x118] sm:$0xff] }
 0x1bb   : > { %v1599_v45 = vadd.f32 %v1455_v36, %v1310_v27  ;;  %v1600_v46 = vadd.f32 %v1456_v37, %v1311_v31  ;;  %v1160_v50 = vmax.f32 %v1016_v38, 0.0  ;;  %v914_v51 = vand.u32 2147483647, %v770_v35  ;;  %v629_v31 = vpop.permute.xlu2 %628  ;;  %v579_v37 = vpop.permute.xlu1 %578 }
 0x1bc   : > { %1742 = vst [vmem:[#allocation2 + $0x218] sm:$0xff] %v1598_v41  ;;  %v1161_v54 = vmax.f32 %v1017_v42, 0.0  ;;  %v1162_v55 = vmax.f32 %v1018_v43, 0.0  ;;  %v915_v58 = vand.u32 2147483647, %v771_v39  ;;  %v740_v59 = vsub.f32 %v564_v40, %v3078_v47  ;;  %v1319_v39 = vld [vmem:[#allocation2] sm:$0xff] }
 0x1bd   : > { %1743 = vst [vmem:[#allocation2 + $0x1f0] sm:$0xff] %v1599_v45  ;;  %v1451_v62 = vmul.f32 %v3101_v3, %v1160_v50  ;;  %v916_v63 = vand.u32 2147483647, %v772_v44  ;;  %v1058_v0 = vsub.f32 %v914_v51, %v3086_v52  ;;  %v741_v1 = vsub.f32 %v564_v40, %v3080_v48  ;;  %v1320_v43 = vld [vmem:[#allocation2 + $0x478] sm:$0xff] }
 0x1be   : > { %1744 = vst [vmem:[#allocation2 + $0x178] sm:$0xff] %v1600_v46  ;;  %v1452_v2 = vmul.f32 %v3101_v3, %v1161_v54  ;;  %v1453_v4 = vmul.f32 %v3101_v3, %v1162_v55  ;;  %v1059_v5 = vsub.f32 %v915_v58, %v3091_v56  ;;  %v742_v6 = vsub.f32 %v564_v40, %v3082_v49 }
 0x1bf   : > { %v1595_v7 = vadd.f32 %v1451_v62, %v1306_v53  ;;  %v1060_v8 = vsub.f32 %v916_v63, %v3093_v57  ;;  %v1202_v9 = vmax.f32 %v1058_v0, 0.0  ;;  %v884_v10 = vand.u32 2147483647, %v740_v59  ;;  %v1315_v59 = vld [vmem:[#allocation2 + $0x3d8] sm:$0xff] }
 0x1c0   : > { %v1596_v12 = vadd.f32 %v1452_v2, %v1307_v60  ;;  %v1597_v13 = vadd.f32 %v1453_v4, %v1308_v61  ;;  %v1203_v15 = vmax.f32 %v1059_v5, 0.0  ;;  %v885_v16 = vand.u32 2147483647, %v741_v1  ;;  %v574_v4 = vpop.permute.xlu0 %573  ;;  %v1316_v5 = vld [vmem:[#allocation2 + $0xa8] sm:$0xff] }
 0x1c1   : > { %1739 = vst [vmem:[#allocation2 + $0x2d0] sm:$0xff] %v1595_v7  ;;  %v1204_v18 = vmax.f32 %v1060_v8, 0.0  ;;  %v1493_v19 = vmul.f32 %v3101_v3, %v1202_v9  ;;  %v886_v20 = vand.u32 2147483647, %v742_v6  ;;  %v1028_v21 = vsub.f32 %v884_v10, %v3086_v52  ;;  %v1317_v10 = vld [vmem:[#allocation2 + $0x1d8] sm:$0xff] }
 0x1c2   : > { %1740 = vst [vmem:[#allocation2 + $0x78] sm:$0xff] %v1596_v12  ;;  %v1494_v23 = vmul.f32 %v3101_v3, %v1203_v15  ;;  %v1029_v24 = vsub.f32 %v885_v16, %v3091_v56  ;;  %v737_v25 = vsub.f32 %v559_v11, %v3078_v47  ;;  %v738_v26 = vsub.f32 %v559_v11, %v3080_v48 }
 0x1c3   : > { %1741 = vst [vmem:[#allocation2 + $0x2f8] sm:$0xff] %v1597_v13  ;;  %v1495_v27 = vmul.f32 %v3101_v3, %v1204_v18  ;;  %v1637_v28 = vadd.f32 %v1493_v19, %v1348_v14  ;;  %v1030_v29 = vsub.f32 %v886_v20, %v3093_v57  ;;  %v1172_v30 = vmax.f32 %v1028_v21, 0.0  ;;  %v1357_v20 = vld [vmem:[#allocation2 + $0x98] sm:$0xff] }
 0x1c4   : > { %v1638_v32 = vadd.f32 %v1494_v23, %v1349_v17  ;;  %v1173_v34 = vmax.f32 %v1029_v24, 0.0  ;;  %v739_v35 = vsub.f32 %v559_v11, %v3082_v49  ;;  %v881_v36 = vand.u32 2147483647, %v737_v25  ;;  %v1358_v21 = vld [vmem:[#allocation2 + $0x58] sm:$0xff] }
 0x1c5   : > { %v1639_v38 = vadd.f32 %v1495_v27, %v1350_v22  ;;  %1781 = vst [vmem:[#allocation2 + $0x388] sm:$0xff] %v1637_v28  ;;  %v1174_v40 = vmax.f32 %v1030_v29, 0.0  ;;  %v1463_v41 = vmul.f32 %v3101_v3, %v1172_v30  ;;  %v882_v42 = vand.u32 2147483647, %v738_v26  ;;  %v594_v29 = vpop.permute.xlu1 %593  ;;  %v1359_v30 = vld [vmem:[#allocation2 + $0x188] sm:$0xff] }
 0x1c6   : > { %1782 = vst [vmem:[#allocation2 + $0x430] sm:$0xff] %v1638_v32  ;;  %v1464_v44 = vmul.f32 %v3101_v3, %v1173_v34  ;;  %v883_v45 = vand.u32 2147483647, %v739_v35  ;;  %v1025_v46 = vsub.f32 %v881_v36, %v3086_v52  ;;  %v779_v50 = vsub.f32 %v629_v31, %v3078_v47 }
 0x1c7   : > { %1783 = vst [vmem:[#allocation2 + $0x80] sm:$0xff] %v1639_v38  ;;  %v1465_v51 = vmul.f32 %v3101_v3, %v1174_v40  ;;  %v1607_v53 = vadd.f32 %v1463_v41, %v1318_v33  ;;  %v1026_v54 = vsub.f32 %v882_v42, %v3091_v56  ;;  %v780_v55 = vsub.f32 %v629_v31, %v3080_v48 }
 0x1c8   : > { %v1608_v58 = vadd.f32 %v1464_v44, %v1319_v39  ;;  %v1027_v60 = vsub.f32 %v883_v45, %v3093_v57  ;;  %v1169_v61 = vmax.f32 %v1025_v46, 0.0  ;;  %v781_v62 = vsub.f32 %v629_v31, %v3082_v49  ;;  %v1327_v44 = vld [vmem:[#allocation2 + $0x28] sm:$0xff] }
 0x1c9   : > { %v1609_v63 = vadd.f32 %v1465_v51, %v1320_v43  ;;  %1751 = vst [vmem:[#allocation2 + $0x118] sm:$0xff] %v1607_v53  ;;  %v1170_v0 = vmax.f32 %v1026_v54, 0.0  ;;  %v923_v1 = vand.u32 2147483647, %v779_v50  ;;  %v924_v2 = vand.u32 2147483647, %v780_v55 }
 0x1ca   : > { %1752 = vst [vmem:[#allocation2] sm:$0xff] %v1608_v58  ;;  %v1171_v6 = vmax.f32 %v1027_v60, 0.0  ;;  %v1460_v7 = vmul.f32 %v3101_v3, %v1169_v61  ;;  %v925_v8 = vand.u32 2147483647, %v781_v62  ;;  %v749_v9 = vsub.f32 %v579_v37, %v3078_v47  ;;  %v1328_v45 = vld [vmem:[#allocation2 + $0x108] sm:$0xff]  ;;  %v1329_v53 = vld [vmem:[#allocation2 + $0x378] sm:$0xff]  ;;  %v589_v60 = vpop.permute.xlu0 %588 }
 0x1cb   : > { %1753 = vst [vmem:[#allocation2 + $0x478] sm:$0xff] %v1609_v63  ;;  %v1461_v11 = vmul.f32 %v3101_v3, %v1170_v0  ;;  %v1067_v12 = vsub.f32 %v923_v1, %v3086_v52  ;;  %v1068_v13 = vsub.f32 %v924_v2, %v3091_v56  ;;  %v750_v14 = vsub.f32 %v579_v37, %v3080_v48 }
 0x1cc   : > { %v1462_v15 = vmul.f32 %v3101_v3, %v1171_v6  ;;  %v1604_v16 = vadd.f32 %v1460_v7, %v1315_v59  ;;  %v1069_v17 = vsub.f32 %v925_v8, %v3093_v57  ;;  %v751_v18 = vsub.f32 %v579_v37, %v3082_v49 }
 0x1cd   : > { %v1605_v19 = vadd.f32 %v1461_v11, %v1316_v5  ;;  %v1211_v22 = vmax.f32 %v1067_v12, 0.0  ;;  %v1212_v23 = vmax.f32 %v1068_v13, 0.0  ;;  %v893_v24 = vand.u32 2147483647, %v749_v9 }
 0x1ce   : > { %v1606_v25 = vadd.f32 %v1462_v15, %v1317_v10  ;;  %1748 = vst [vmem:[#allocation2 + $0x3d8] sm:$0xff] %v1604_v16  ;;  %v1213_v26 = vmax.f32 %v1069_v17, 0.0  ;;  %v894_v27 = vand.u32 2147483647, %v750_v14  ;;  %v895_v28 = vand.u32 2147483647, %v751_v18 }
 0x1cf   : > { %1749 = vst [vmem:[#allocation2 + $0xa8] sm:$0xff] %v1605_v19  ;;  %v1502_v31 = vmul.f32 %v3101_v3, %v1211_v22  ;;  %v1503_v32 = vmul.f32 %v3101_v3, %v1212_v23  ;;  %v1037_v33 = vsub.f32 %v893_v24, %v3086_v52  ;;  %v746_v34 = vsub.f32 %v574_v4, %v3078_v47  ;;  %v1324_v10 = vld [vmem:[#allocation2 + $0x260] sm:$0xff]  ;;  %v1325_v15 = vld [vmem:[#allocation2 + $0x3b8] sm:$0xff] }
 0x1d0   : > { %1750 = vst [vmem:[#allocation2 + $0x1d8] sm:$0xff] %v1606_v25  ;;  %v1504_v35 = vmul.f32 %v3101_v3, %v1213_v26  ;;  %v1038_v36 = vsub.f32 %v894_v27, %v3091_v56  ;;  %v1039_v37 = vsub.f32 %v895_v28, %v3093_v57  ;;  %v747_v38 = vsub.f32 %v574_v4, %v3080_v48  ;;  %v1326_v16 = vld [vmem:[#allocation2 + $0x180] sm:$0xff] }
 0x1d1   : > { %v1646_v39 = vadd.f32 %v1502_v31, %v1357_v20  ;;  %v1647_v40 = vadd.f32 %v1503_v32, %v1358_v21  ;;  %v1181_v41 = vmax.f32 %v1037_v33, 0.0  ;;  %v748_v42 = vsub.f32 %v574_v4, %v3082_v49  ;;  %v609_v21 = vpop.permute.xlu1 %608  ;;  %v1336_v32 = vld [vmem:[#allocation2 + $0x2e0] sm:$0xff] }
 0x1d2   : > { %v1648_v43 = vadd.f32 %v1504_v35, %v1359_v30  ;;  %v1182_v46 = vmax.f32 %v1038_v36, 0.0  ;;  %v1183_v50 = vmax.f32 %v1039_v37, 0.0  ;;  %v890_v51 = vand.u32 2147483647, %v746_v34  ;;  %v1337_v35 = vld [vmem:[#allocation2 + $0x3e8] sm:$0xff] }
 0x1d3   : > { %1790 = vst [vmem:[#allocation2 + $0x98] sm:$0xff] %v1646_v39  ;;  %v1472_v54 = vmul.f32 %v3101_v3, %v1181_v41  ;;  %v891_v55 = vand.u32 2147483647, %v747_v38  ;;  %v892_v58 = vand.u32 2147483647, %v748_v42  ;;  %v758_v59 = vsub.f32 %v594_v29, %v3078_v47 }
 0x1d4   : > { %1791 = vst [vmem:[#allocation2 + $0x58] sm:$0xff] %v1647_v40  ;;  %v1473_v61 = vmul.f32 %v3101_v3, %v1182_v46  ;;  %v1474_v62 = vmul.f32 %v3101_v3, %v1183_v50  ;;  %v1034_v63 = vsub.f32 %v890_v51, %v3086_v52  ;;  %v759_v0 = vsub.f32 %v594_v29, %v3080_v48  ;;  %v1338_v40 = vld [vmem:[#allocation2 + $0x250] sm:$0xff] }
 0x1d5   : > { %1792 = vst [vmem:[#allocation2 + $0x188] sm:$0xff] %v1648_v43  ;;  %v1616_v1 = vadd.f32 %v1472_v54, %v1327_v44  ;;  %v1035_v2 = vsub.f32 %v891_v55, %v3091_v56  ;;  %v1036_v4 = vsub.f32 %v892_v58, %v3093_v57  ;;  %v760_v5 = vsub.f32 %v594_v29, %v3082_v49  ;;  %v1333_v55 = vld [vmem:[#allocation2 + $0x50] sm:$0xff] }
 0x1d6   : > { %v1617_v6 = vadd.f32 %v1473_v61, %v1328_v45  ;;  %v1618_v7 = vadd.f32 %v1474_v62, %v1329_v53  ;;  %v1178_v8 = vmax.f32 %v1034_v63, 0.0  ;;  %v902_v9 = vand.u32 2147483647, %v758_v59  ;;  %v604_v45 = vpop.permute.xlu0 %603  ;;  %v1334_v62 = vld [vmem:[#allocation2 + $0x308] sm:$0xff] }
 0x1d7   : > { %1760 = vst [vmem:[#allocation2 + $0x28] sm:$0xff] %v1616_v1  ;;  %v1179_v11 = vmax.f32 %v1035_v2, 0.0  ;;  %v1180_v12 = vmax.f32 %v1036_v4, 0.0  ;;  %v903_v13 = vand.u32 2147483647, %v759_v0  ;;  %v755_v14 = vsub.f32 %v589_v60, %v3078_v47  ;;  %v1335_v2 = vld [vmem:[#allocation2 + $0x340] sm:$0xff] }
 0x1d8   : > { %1761 = vst [vmem:[#allocation2 + $0x108] sm:$0xff] %v1617_v6  ;;  %v1469_v17 = vmul.f32 %v3101_v3, %v1178_v8  ;;  %v904_v18 = vand.u32 2147483647, %v760_v5  ;;  %v1046_v19 = vsub.f32 %v902_v9, %v3086_v52  ;;  %v756_v20 = vsub.f32 %v589_v60, %v3080_v48 }
 0x1d9   : > { %1762 = vst [vmem:[#allocation2 + $0x378] sm:$0xff] %v1618_v7  ;;  %v1470_v22 = vmul.f32 %v3101_v3, %v1179_v11  ;;  %v1471_v23 = vmul.f32 %v3101_v3, %v1180_v12  ;;  %v1047_v24 = vsub.f32 %v903_v13, %v3091_v56  ;;  %v757_v25 = vsub.f32 %v589_v60, %v3082_v49  ;;  %v624_v12 = vpop.permute.xlu1 %623 }
 0x1da   : > { %v1613_v26 = vadd.f32 %v1469_v17, %v1324_v10  ;;  %v1048_v27 = vsub.f32 %v904_v18, %v3093_v57  ;;  %v1190_v28 = vmax.f32 %v1046_v19, 0.0  ;;  %v899_v29 = vand.u32 2147483647, %v755_v14  ;;  %v1345_v14 = vld [vmem:[#allocation2 + $0x90] sm:$0xff] }
 0x1db   : > { %v1614_v30 = vadd.f32 %v1470_v22, %v1325_v15  ;;  %v1615_v31 = vadd.f32 %v1471_v23, %v1326_v16  ;;  %v1191_v33 = vmax.f32 %v1047_v24, 0.0  ;;  %v900_v34 = vand.u32 2147483647, %v756_v20  ;;  %v1346_v22 = vld [vmem:[#allocation2 + $0x1e0] sm:$0xff] }
 0x1dc   : > { %1757 = vst [vmem:[#allocation2 + $0x260] sm:$0xff] %v1613_v26  ;;  %v1192_v36 = vmax.f32 %v1048_v27, 0.0  ;;  %v1481_v37 = vmul.f32 %v3101_v3, %v1190_v28  ;;  %v901_v38 = vand.u32 2147483647, %v757_v25  ;;  %v1043_v39 = vsub.f32 %v899_v29, %v3086_v52  ;;  %v1347_v27 = vld [vmem:[#allocation2 + $0x38] sm:$0xff] }
 0x1dd   : > { %1758 = vst [vmem:[#allocation2 + $0x3b8] sm:$0xff] %v1614_v30  ;;  %v1482_v41 = vmul.f32 %v3101_v3, %v1191_v33  ;;  %v1044_v42 = vsub.f32 %v900_v34, %v3091_v56  ;;  %v767_v43 = vsub.f32 %v609_v21, %v3078_v47  ;;  %v768_v44 = vsub.f32 %v609_v21, %v3080_v48 }
 0x1de   : > { %1759 = vst [vmem:[#allocation2 + $0x180] sm:$0xff] %v1615_v31  ;;  %v1483_v46 = vmul.f32 %v3101_v3, %v1192_v36  ;;  %v1625_v50 = vadd.f32 %v1481_v37, %v1336_v32  ;;  %v1045_v51 = vsub.f32 %v901_v38, %v3093_v57  ;;  %v1187_v53 = vmax.f32 %v1043_v39, 0.0  ;;  %v619_v36 = vpop.permute.xlu0 %618  ;;  %v1342_v38 = vld [vmem:[#allocation2 + $0xe8] sm:$0xff]  ;;  %v1343_v39 = vld [vmem:[#allocation2 + $0xf0] sm:$0xff] }
 0x1df   : > { %v1626_v54 = vadd.f32 %v1482_v41, %v1337_v35  ;;  %v1188_v58 = vmax.f32 %v1044_v42, 0.0  ;;  %v769_v59 = vsub.f32 %v609_v21, %v3082_v49  ;;  %v911_v60 = vand.u32 2147483647, %v767_v43 }
 0x1e0   : > { %v1627_v61 = vadd.f32 %v1483_v46, %v1338_v40  ;;  %1769 = vst [vmem:[#allocation2 + $0x2e0] sm:$0xff] %v1625_v50  ;;  %v1189_v63 = vmax.f32 %v1045_v51, 0.0  ;;  %v1478_v0 = vmul.f32 %v3101_v3, %v1187_v53  ;;  %v912_v1 = vand.u32 2147483647, %v768_v44  ;;  %v1344_v50 = vld [vmem:[#allocation2 + $0x168] sm:$0xff] }
 0x1e1   : > { %1770 = vst [vmem:[#allocation2 + $0x3e8] sm:$0xff] %v1626_v54  ;;  %v1479_v4 = vmul.f32 %v3101_v3, %v1188_v58  ;;  %v913_v5 = vand.u32 2147483647, %v769_v59  ;;  %v1055_v6 = vsub.f32 %v911_v60, %v3086_v52  ;;  %v764_v7 = vsub.f32 %v604_v45, %v3078_v47 }
 0x1e2   : > { %1771 = vst [vmem:[#allocation2 + $0x250] sm:$0xff] %v1627_v61  ;;  %v1480_v8 = vmul.f32 %v3101_v3, %v1189_v63  ;;  %v1622_v9 = vadd.f32 %v1478_v0, %v1333_v55  ;;  %v1056_v10 = vsub.f32 %v912_v1, %v3091_v56  ;;  %v765_v11 = vsub.f32 %v604_v45, %v3080_v48 }
 0x1e3   : > { %v1623_v13 = vadd.f32 %v1479_v4, %v1334_v62  ;;  %v1057_v15 = vsub.f32 %v913_v5, %v3093_v57  ;;  %v1199_v16 = vmax.f32 %v1055_v6, 0.0  ;;  %v766_v17 = vsub.f32 %v604_v45, %v3082_v49  ;;  %v1354_v4 = vld [vmem:[#allocation2 + $0x40] sm:$0xff]  ;;  %v1355_v5 = vld [vmem:[#allocation2 + $0x150] sm:$0xff] }
 0x1e4   : > { %v1624_v18 = vadd.f32 %v1480_v8, %v1335_v2  ;;  %1766 = vst [vmem:[#allocation2 + $0x50] sm:$0xff] %v1622_v9  ;;  %v1200_v19 = vmax.f32 %v1056_v10, 0.0  ;;  %v908_v20 = vand.u32 2147483647, %v764_v7  ;;  %v909_v21 = vand.u32 2147483647, %v765_v11 }
 0x1e5   : > { %1767 = vst [vmem:[#allocation2 + $0x308] sm:$0xff] %v1623_v13  ;;  %v1201_v23 = vmax.f32 %v1057_v15, 0.0  ;;  %v1490_v24 = vmul.f32 %v3101_v3, %v1199_v16  ;;  %v910_v25 = vand.u32 2147483647, %v766_v17  ;;  %v776_v26 = vsub.f32 %v624_v12, %v3078_v47  ;;  %v1356_v8 = vld [vmem:[#allocation2 + $0x3a8] sm:$0xff] }
 0x1e6   : > { %1768 = vst [vmem:[#allocation2 + $0x340] sm:$0xff] %v1624_v18  ;;  %v1491_v28 = vmul.f32 %v3101_v3, %v1200_v19  ;;  %v1052_v29 = vsub.f32 %v908_v20, %v3086_v52  ;;  %v1053_v30 = vsub.f32 %v909_v21, %v3091_v56  ;;  %v777_v31 = vsub.f32 %v624_v12, %v3080_v48  ;;  %v1351_v19 = vld [vmem:[#allocation2 + $0x428] sm:$0xff] }
 0x1e7   : > { %v1492_v32 = vmul.f32 %v3101_v3, %v1201_v23  ;;  %v1634_v33 = vadd.f32 %v1490_v24, %v1345_v14  ;;  %v1054_v34 = vsub.f32 %v910_v25, %v3093_v57  ;;  %v778_v35 = vsub.f32 %v624_v12, %v3082_v49  ;;  %v1353_v23 = vld [vmem:[#allocation2 + $0x2b8] sm:$0xff] }
 0x1e8   : > { %v1635_v37 = vadd.f32 %v1491_v28, %v1346_v22  ;;  %v1196_v40 = vmax.f32 %v1052_v29, 0.0  ;;  %v1197_v41 = vmax.f32 %v1053_v30, 0.0  ;;  %v920_v42 = vand.u32 2147483647, %v776_v26  ;;  %v1352_v22 = vld [vmem:[#allocation2 + $0x238] sm:$0xff] }
 0x1e9   : > { %v1636_v43 = vadd.f32 %v1492_v32, %v1347_v27  ;;  %1778 = vst [vmem:[#allocation2 + $0x90] sm:$0xff] %v1634_v33  ;;  %v1198_v44 = vmax.f32 %v1054_v34, 0.0  ;;  %v921_v45 = vand.u32 2147483647, %v777_v31  ;;  %v922_v46 = vand.u32 2147483647, %v778_v35 }
 0x1ea   : > { %1779 = vst [vmem:[#allocation2 + $0x1e0] sm:$0xff] %v1635_v37  ;;  %v1487_v51 = vmul.f32 %v3101_v3, %v1196_v40  ;;  %v1488_v53 = vmul.f32 %v3101_v3, %v1197_v41  ;;  %v1064_v54 = vsub.f32 %v920_v42, %v3086_v52  ;;  %v773_v55 = vsub.f32 %v619_v36, %v3078_v47 }
 0x1eb   : > { %1780 = vst [vmem:[#allocation2 + $0x38] sm:$0xff] %v1636_v43  ;;  %v1489_v58 = vmul.f32 %v3101_v3, %v1198_v44  ;;  %v1065_v59 = vsub.f32 %v921_v45, %v3091_v56  ;;  %v1066_v60 = vsub.f32 %v922_v46, %v3093_v57  ;;  %v774_v61 = vsub.f32 %v619_v36, %v3080_v48 }
 0x1ec   : > { %v1631_v62 = vadd.f32 %v1487_v51, %v1342_v38  ;;  %v1632_v63 = vadd.f32 %v1488_v53, %v1343_v39  ;;  %v1208_v0 = vmax.f32 %v1064_v54, 0.0  ;;  %v775_v1 = vsub.f32 %v619_v36, %v3082_v49 }
 0x1ed   : > { %v1633_v2 = vadd.f32 %v1489_v58, %v1344_v50  ;;  %v1209_v6 = vmax.f32 %v1065_v59, 0.0  ;;  %v1210_v7 = vmax.f32 %v1066_v60, 0.0  ;;  %v917_v47 = vand.u32 2147483647, %v773_v55 }
 0x1ee   : > { %1775 = vst [vmem:[#allocation2 + $0xe8] sm:$0xff] %v1631_v62  ;;  %v1499_v9 = vmul.f32 %v3101_v3, %v1208_v0  ;;  %v918_v10 = vand.u32 2147483647, %v774_v61  ;;  %v919_v11 = vand.u32 2147483647, %v775_v1 }
 0x1ef   : > { %1776 = vst [vmem:[#allocation2 + $0xf0] sm:$0xff] %v1632_v63  ;;  %v1500_v48 = vmul.f32 %v3101_v3, %v1209_v6  ;;  %v1501_v12 = vmul.f32 %v3101_v3, %v1210_v7  ;;  %v1061_v13 = vsub.f32 %v917_v47, %v3086_v52 }
 0x1f0   : > { %1777 = vst [vmem:[#allocation2 + $0x168] sm:$0xff] %v1633_v2  ;;  %v1643_v49 = vadd.f32 %v1499_v9, %v1354_v4  ;;  %v1062_v14 = vsub.f32 %v918_v10, %v3091_v56  ;;  %v1063_v15 = vsub.f32 %v919_v11, %v3093_v57 }
 0x1f1   : > { %v1644_v16 = vadd.f32 %v1500_v48, %v1355_v5  ;;  %v1645_v17 = vadd.f32 %v1501_v12, %v1356_v8  ;;  %v1205_v18 = vmax.f32 %v1061_v13, 0.0 }
 0x1f2   : > { %1787 = vst [vmem:[#allocation2 + $0x40] sm:$0xff] %v1643_v49  ;;  %v1206_v20 = vmax.f32 %v1062_v14, 0.0  ;;  %v1207_v21 = vmax.f32 %v1063_v15, 0.0 }
 0x1f3   : > { %1788 = vst [vmem:[#allocation2 + $0x150] sm:$0xff] %v1644_v16  ;;  %v1496_v24 = vmul.f32 %v3101_v3, %v1205_v18 }
 0x1f4   : > { %1789 = vst [vmem:[#allocation2 + $0x3a8] sm:$0xff] %v1645_v17  ;;  %v1497_v52 = vmul.f32 %v3101_v3, %v1206_v20  ;;  %v1498_v25 = vmul.f32 %v3101_v3, %v1207_v21 }
 0x1f5   : > { %v1640_v56 = vadd.f32 %v1496_v24, %v1351_v19 }
 0x1f6   : > { %v1641_v26 = vadd.f32 %v1497_v52, %v1352_v22  ;;  %v1642_v57 = vadd.f32 %v1498_v25, %v1353_v23 }
 0x1f7   : > { %1784 = vst [vmem:[#allocation2 + $0x428] sm:$0xff] %v1640_v56 }
 0x1f8   : > { %1785 = vst [vmem:[#allocation2 + $0x238] sm:$0xff] %v1641_v26 }
 0x1f9   : > { %1786 = vst [vmem:[#allocation2 + $0x2b8] sm:$0xff] %v1642_v57 }
 0x1fa PF: > { %p2605_p4 = scmp.ne.s32.totalorder %s2765_s12, 1 }
 0x1fc   : > { %1796 = sbr.rel (%p2605_p4) target bundleno = 658 (0x292), region = 40 }
 0x201   : > { %v4182_v27 = vlaneseq  ;;  %s1846_s29 = smul.u32 384, %s2769_s13  ;;  %v1944_v6 = vld [vmem:[#allocation2 + $0x2b0] sm:$0xff]  ;;  %v1947_v7 = vld [vmem:[#allocation2 + $0x448] sm:$0xff]  ;;  %v1948_v12 = vld [vmem:[#allocation2 + $0x320] sm:$0xff] }
 0x202   : > { %v1950_v11 = vld [vmem:[#allocation2 + $0x370] sm:$0xff]  ;;  %v1951_v19 = vld [vmem:[#allocation2 + $0x100] sm:$0xff]  ;;  %v1956_v52 = vld [vmem:[#allocation2 + $0x48] sm:$0xff] }
 0x203   : > { %v3540_v28 = vshrl.u32 %v4182_v27, 7  ;;  %v3558_v43 = vstv %s1846_s29  ;;  %v1945_v48 = vld [vmem:[#allocation2 + $0x3b0] sm:$0xff] }
 0x204   : > { %v1953_v16 = vld [vmem:[#allocation2 + $0x2f0] sm:$0xff] }
 0x205   : > { %v1831_v29 = vadd.s32 264, %v3540_v28  ;;  %v1832_v3 = vadd.s32 272, %v3540_v28  ;;  %v1833_v30 = vadd.s32 280, %v3540_v28  ;;  %v1834_v31 = vadd.s32 288, %v3540_v28  ;;  %v1954_v56 = vld [vmem:[#allocation2 + $0x290] sm:$0xff] }
 0x206   : > { %v1835_v32 = vadd.s32 296, %v3540_v28  ;;  %v1836_v33 = vadd.s32 304, %v3540_v28  ;;  %v1837_v34 = vadd.s32 312, %v3540_v28  ;;  %v1838_v35 = vadd.s32 320, %v3540_v28 }
 0x207   : > { %v1839_v36 = vadd.s32 328, %v3540_v28  ;;  %v1840_v37 = vadd.s32 336, %v3540_v28  ;;  %v1841_v38 = vadd.s32 344, %v3540_v28  ;;  %v1842_v39 = vadd.s32 352, %v3540_v28 }
 0x208   : > { %v1843_v40 = vadd.s32 360, %v3540_v28  ;;  %v1844_v41 = vadd.s32 368, %v3540_v28  ;;  %v1845_v42 = vadd.s32 376, %v3540_v28  ;;  %v3561_v44 = vadd.s32 %v3558_v43, %v1831_v29 }
 0x209   : > { %v3564_v45 = vadd.s32 %v3558_v43, %v1832_v3  ;;  %v3567_v46 = vadd.s32 %v3558_v43, %v1833_v30  ;;  %v3570_v50 = vadd.s32 %v3558_v43, %v1834_v31  ;;  %v3573_v51 = vadd.s32 %v3558_v43, %v1835_v32  ;;  %v1959_v31 = vld [vmem:[#allocation2 + $0x148] sm:$0xff] }
 0x20a   : > { %v3576_v53 = vadd.s32 %v3558_v43, %v1836_v33  ;;  %v3579_v54 = vadd.s32 %v3558_v43, %v1837_v34  ;;  %v3582_v55 = vadd.s32 %v3558_v43, %v1838_v35  ;;  %v3585_v58 = vadd.s32 %v3558_v43, %v1839_v36  ;;  %v1957_v33 = vld [vmem:[#allocation2 + $0xc0] sm:$0xff] }
 0x20b   : > { %v3588_v59 = vadd.s32 %v3558_v43, %v1840_v37  ;;  %v3591_v60 = vadd.s32 %v3558_v43, %v1841_v38  ;;  %v3594_v61 = vadd.s32 %v3558_v43, %v1842_v39  ;;  %v3597_v62 = vadd.s32 %v3558_v43, %v1843_v40  ;;  %v1962_v39 = vld [vmem:[#allocation2 + $0x348] sm:$0xff] }
 0x20c   : > { %v3600_v63 = vadd.s32 %v3558_v43, %v1844_v41  ;;  %v3603_v0 = vadd.s32 %v3558_v43, %v1845_v42  ;;  %v1799_v1 = vadd.s32 8, %v3540_v28  ;;  %v1800_v2 = vadd.s32 16, %v3540_v28 }
 0x20d   : > { %4191 = vst [vmem:[#allocation6_spill] sm:$0xff] %v3588_v59  ;;  %v3609_v4 = vadd.s32 %v3558_v43, %v3540_v28  ;;  %v1801_v47 = vadd.s32 24, %v3540_v28  ;;  %v1802_v13 = vadd.s32 32, %v3540_v28  ;;  %v1803_v20 = vadd.s32 40, %v3540_v28  ;;  %v1980_v59 = vld [vmem:[#allocation2 + $0x198] sm:$0xff] }
 0x20e   : > { %4192 = vst [vmem:[#allocation7_spill] sm:$0xff] %v3591_v60  ;;  %v3612_v5 = vadd.s32 %v3558_v43, %v1799_v1  ;;  %v3616_v8 = vadd.s32 %v3558_v43, %v1800_v2  ;;  %v1804_v26 = vadd.s32 48, %v3540_v28  ;;  %v1805_v34 = vadd.s32 56, %v3540_v28  ;;  %v1960_v1 = vld [vmem:[#allocation2 + $0x208] sm:$0xff] }
 0x20f   : > { %4193 = vst [vmem:[#allocation8_spill] sm:$0xff] %v3594_v61  ;;  %vm1896_vm3 = vcmp.lt.s32.totalorder %v3609_v4, 530  ;;  %v3626_v49 = vadd.s32 %v3558_v43, %v1801_v47  ;;  %v3637_v21 = vadd.s32 %v3558_v43, %v1802_v13  ;;  %v3646_v57 = vadd.s32 %v3558_v43, %v1803_v20  ;;  %v1963_v20 = vld [vmem:[#allocation2 + $0xe0] sm:$0xff] }
 0x210   : > { %4194 = vst [vmem:[#allocation9_spill] sm:$0xff] %v3597_v62  ;;  %vm1897_vm4 = vcmp.lt.s32.totalorder %v3612_v5, 530  ;;  %v2184_v9 = vsel %vm1896_vm3, %v1944_v6, 0.0  ;;  %vm1898_vm5 = vcmp.lt.s32.totalorder %v3616_v8, 530  ;;  %v2185_v17 = vsel %vm1896_vm3, %v1945_v48, 0.0  ;;  %v1977_v5 = vld [vmem:[#allocation2 + $0x298] sm:$0xff] }
 0x211   : > { %4195 = vst [vmem:[#allocation10_spill] sm:$0xff] %v3600_v63  ;;  %v2187_v10 = vsel %vm1897_vm4, %v1947_v7, 0.0  ;;  %v2190_v15 = vsel %vm1898_vm5, %v1950_v11, 0.0  ;;  %v2188_v18 = vsel %vm1897_vm4, %v1948_v12, 0.0  ;;  %vm1899_vm6 = vcmp.lt.s32.totalorder %v3626_v49, 530  ;;  %v1975_v62 = vld [vmem:[#allocation2 + $0x68] sm:$0xff] }
 0x212   : > { %4196 = vst [vmem:[#allocation11_spill] sm:$0xff] %v3603_v0  ;;  %v2328_v14 = vadd.f32 %v2187_v10, %v2184_v9  ;;  %v2193_v23 = vsel %vm1899_vm6, %v1953_v16, 0.0  ;;  %v2381_v24 = vadd.f32 %v2188_v18, %v2185_v17  ;;  %v2191_v25 = vsel %vm1898_vm5, %v1951_v19, 0.0 }
 0x213   : > { %vm1900_vm7 = vcmp.lt.s32.totalorder %v3637_v21, 530  ;;  %v2194_v32 = vsel %vm1899_vm6, %v1954_v56, 0.0  ;;  %v3655_v35 = vadd.s32 %v3558_v43, %v1804_v26  ;;  %vm1901_vm8 = vcmp.lt.s32.totalorder %v3646_v57, 530 }
 0x214   : > { %v2329_v22 = vadd.f32 %v2328_v14, %v2190_v15  ;;  %v2196_v3 = vsel %vm1900_vm7, %v1956_v52, 0.0  ;;  %v2382_v30 = vadd.f32 %v2381_v24, %v2191_v25  ;;  %v2199_v37 = vsel %vm1901_vm8, %v1959_v31, 0.0  ;;  %v1965_v14 = vld [vmem:[#allocation2 + $0x3e0] sm:$0xff]  ;;  %v1946_v31 = vld [vmem:[#allocation2 + $0x10] sm:$0xff] }
 0x215   : > { %v2197_v40 = vsel %vm1900_vm7, %v1957_v33, 0.0  ;;  %v1806_v41 = vadd.s32 64, %v3540_v28  ;;  %v1807_v42 = vadd.s32 72, %v3540_v28  ;;  %v1808_v2 = vadd.s32 80, %v3540_v28 }
 0x216   : > { %v2330_v29 = vadd.f32 %v2329_v22, %v2193_v23  ;;  %v2383_v38 = vadd.f32 %v2382_v30, %v2194_v32  ;;  %v3666_v6 = vadd.s32 %v3558_v43, %v1805_v34  ;;  %vm1902_vm9 = vcmp.lt.s32.totalorder %v3655_v35, 530  ;;  %v1968_v32 = vld [vmem:[#allocation2 + $0x420] sm:$0xff] }
 0x217   : > { %v1809_v47 = vadd.s32 88, %v3540_v28  ;;  %v1810_v9 = vadd.s32 96, %v3540_v28  ;;  %v2202_v10 = vsel %vm1902_vm9, %v1962_v39, 0.0  ;;  %v1811_v48 = vadd.s32 104, %v3540_v28  ;;  %v1949_v39 = vld [vmem:[#allocation2 + $0x438] sm:$0xff] }
 0x218   : > { %v2331_v36 = vadd.f32 %v2330_v29, %v2196_v3  ;;  %v2384_v11 = vadd.f32 %v2383_v38, %v2197_v40  ;;  %v3675_v12 = vadd.s32 112, %v3540_v28  ;;  %v3678_v13 = vadd.s32 120, %v3540_v28  ;;  %v1966_v40 = vld [vmem:[#allocation2 + $0x1a8] sm:$0xff] }
 0x219   : > { %v2200_v15 = vsel %vm1901_vm8, %v1960_v1, 0.0  ;;  %v3683_v16 = vadd.s32 128, %v3540_v28  ;;  %v3686_v17 = vadd.s32 136, %v3540_v28  ;;  %v3689_v18 = vadd.s32 144, %v3540_v28  ;;  %v1971_v1 = vld [vmem:[#allocation2 + $0xc8] sm:$0xff] }
 0x21a   : > { %v2332_v7 = vadd.f32 %v2331_v36, %v2199_v37  ;;  %v3692_v19 = vadd.s32 152, %v3540_v28  ;;  %v3695_v22 = vadd.s32 160, %v3540_v28  ;;  %v3698_v23 = vadd.s32 %v3558_v43, %v1806_v41 }
 0x21b   : > { %vm1903_vm10 = vcmp.lt.s32.totalorder %v3666_v6, 530  ;;  %v3702_v52 = vadd.s32 168, %v3540_v28  ;;  %v3705_v25 = vadd.s32 176, %v3540_v28  ;;  %v2385_v26 = vadd.f32 %v2384_v11, %v2200_v15  ;;  %v1969_v15 = vld [vmem:[#allocation2 + $0x398] sm:$0xff] }
 0x21c   : > { %v2333_v24 = vadd.f32 %v2332_v7, %v2202_v10  ;;  %v2205_v56 = vsel %vm1903_vm10, %v1965_v14, 0.0  ;;  %v3710_v29 = vadd.s32 184, %v3540_v28  ;;  %v3713_v3 = vadd.s32 192, %v3540_v28  ;;  %v1952_v14 = vld [vmem:[#allocation2 + $0x300] sm:$0xff] }
 0x21d   : > { %v3716_v30 = vadd.s32 %v3558_v43, %v1807_v42  ;;  %v2203_v33 = vsel %vm1902_vm9, %v1963_v20, 0.0  ;;  %v3721_v34 = vadd.s32 200, %v3540_v28  ;;  %v3724_v36 = vadd.s32 208, %v3540_v28 }
 0x21e   : > { %v3727_v37 = vadd.s32 216, %v3540_v28  ;;  %v3730_v38 = vadd.s32 224, %v3540_v28  ;;  %v3733_v41 = vadd.s32 232, %v3540_v28  ;;  %v3736_v42 = vadd.s32 %v3558_v43, %v1808_v2  ;;  %v1974_v2 = vld [vmem:[#allocation2 + $0x458] sm:$0xff] }
 0x21f   : > { %vm1904_vm11 = vcmp.lt.s32.totalorder %v3698_v23, 530  ;;  %v2334_v7 = vadd.f32 %v2333_v24, %v2205_v56  ;;  %v3740_v10 = vadd.s32 240, %v3540_v28  ;;  %v3743_v11 = vadd.s32 %v3558_v43, %v1809_v47 }
 0x220   : > { %v2208_v20 = vsel %vm1904_vm11, %v1968_v32, 0.0  ;;  %v2386_v27 = vadd.f32 %v2385_v26, %v2203_v33  ;;  %vm1905_vm12 = vcmp.lt.s32.totalorder %v3716_v30, 530  ;;  %v2186_v0 = vsel %vm1896_vm3, %v1946_v31, 0.0  ;;  %v1955_v32 = vld [vmem:[#allocation2 + $0x380] sm:$0xff] }
 0x221   : > { %v2189_v24 = vsel %vm1897_vm4, %v1949_v39, 0.0  ;;  %v2206_v56 = vsel %vm1903_vm10, %v1966_v40, 0.0  ;;  %v3755_v47 = vadd.s32 248, %v3540_v28  ;;  %v3758_v63 = vadd.s32 256, %v3540_v28  ;;  %v1972_v33 = vld [vmem:[#allocation2 + $0x240] sm:$0xff] }
 0x222   : > { %v3761_v26 = vadd.s32 %v3558_v43, %v1810_v9  ;;  %v2211_v4 = vsel %vm1905_vm12, %v1971_v1, 0.0  ;;  %vm1906_vm13 = vcmp.lt.s32.totalorder %v3736_v42, 530  ;;  %v2192_v31 = vsel %vm1898_vm5, %v1952_v14, 0.0  ;;  %v1958_v9 = vld [vmem:[#allocation2 + $0x30] sm:$0xff] }
 0x223   : > { %v2209_v39 = vsel %vm1904_vm11, %v1969_v15, 0.0  ;;  %v2335_v40 = vadd.f32 %v2334_v7, %v2208_v20  ;;  %v3771_v28 = vadd.s32 %v3558_v43, %v1811_v48  ;;  %v2214_v61 = vsel %vm1906_vm13, %v1974_v2, 0.0  ;;  %v1961_v15 = vld [vmem:[#allocation2 + $0x88] sm:$0xff]  ;;  %v1978_v20 = vld [vmem:[#allocation2 + $0x278] sm:$0xff] }
 0x224   : > { %v2387_v60 = vadd.f32 %v2386_v27, %v2206_v56  ;;  %v2434_v1 = vadd.f32 %v2189_v24, %v2186_v0  ;;  %vm1907_vm14 = vcmp.lt.s32.totalorder %v3743_v11, 530  ;;  %v2195_v8 = vsel %vm1899_vm6, %v1955_v32, 0.0  ;;  %v1983_v24 = vld [vmem:[#allocation2 + $0x1e8] sm:$0xff] }
 0x225   : > { %v2212_v14 = vsel %vm1905_vm12, %v1972_v33, 0.0  ;;  %v2336_v7 = vadd.f32 %v2335_v40, %v2211_v4  ;;  %v3782_v48 = vadd.s32 %v3558_v43, %v3675_v12  ;;  %v2217_v27 = vsel %vm1907_vm14, %v1977_v5, 0.0  ;;  %v1964_v33 = vld [vmem:[#allocation2 + $0x368] sm:$0xff]  ;;  %v1981_v4 = vld [vmem:[#allocation2 + $0xb0] sm:$0xff] }
 0x226   : > { %v2388_v0 = vadd.f32 %v2387_v60, %v2209_v39  ;;  %v2435_v2 = vadd.f32 %v2434_v1, %v2192_v31  ;;  %vm1908_vm15 = vcmp.lt.s32.totalorder %v3761_v26, 530  ;;  %v2198_v49 = vsel %vm1900_vm7, %v1958_v9, 0.0  ;;  %v1986_v39 = vld [vmem:[#allocation2 + $0x3c8] sm:$0xff]  ;;  %v1967_v40 = vld [vmem:[#allocation2 + $0x450] sm:$0xff]  ;;  %v1984_v9 = vld [vmem:[#allocation2 + $0x1f8] sm:$0xff] }
 0x227   : > { %v2215_v56 = vsel %vm1906_vm13, %v1975_v62, 0.0  ;;  %v2337_v32 = vadd.f32 %v2336_v7, %v2214_v61  ;;  %v3793_v12 = vadd.s32 %v3558_v43, %v3678_v13  ;;  %v2220_v60 = vsel %vm1908_vm15, %v1980_v59, 0.0 }
 0x228   : > { %v2389_v5 = vadd.f32 %v2388_v0, %v2212_v14  ;;  %v2436_v31 = vadd.f32 %v2435_v2, %v2195_v8  ;;  %vm1909_vm0 = vcmp.lt.s32.totalorder %v3771_v28, 530  ;;  %v2201_v21 = vsel %vm1901_vm8, %v1961_v15, 0.0  ;;  %v1989_v14 = vld [vmem:[#allocation2 + $0x1d0] sm:$0xff] }
 0x229   : > { %v2218_v61 = vsel %vm1907_vm14, %v1978_v20, 0.0  ;;  %v2338_v62 = vadd.f32 %v2337_v32, %v2217_v27  ;;  %v3804_v13 = vadd.s32 %v3558_v43, %v3683_v16  ;;  %v2223_v59 = vsel %vm1909_vm0, %v1983_v24, 0.0  ;;  %v1970_v20 = vld [vmem:[#allocation2 + $0x350] sm:$0xff]  ;;  %v1987_v27 = vld [vmem:[#allocation2 + $0x18] sm:$0xff] }
 0x22a   : > { %v2390_v1 = vadd.f32 %v2389_v5, %v2215_v56  ;;  %v2437_v8 = vadd.f32 %v2436_v31, %v2198_v49  ;;  %vm1910_vm1 = vcmp.lt.s32.totalorder %v3782_v48, 530  ;;  %v2204_v57 = vsel %vm1902_vm9, %v1964_v33, 0.0  ;;  %v1992_v49 = vld [vmem:[#allocation2 + $0x408] sm:$0xff]  ;;  %v1973_v33 = vld [vmem:[#allocation2 + $0x390] sm:$0xff] }
 0x22b   : > { %v2221_v7 = vsel %vm1908_vm15, %v1981_v4, 0.0  ;;  %v2339_v15 = vadd.f32 %v2338_v62, %v2220_v60  ;;  %v3815_v16 = vadd.s32 %v3558_v43, %v3686_v17  ;;  %v2226_v0 = vsel %vm1910_vm1, %v1986_v39, 0.0  ;;  %v1990_v4 = vld [vmem:[#allocation2 + $0x258] sm:$0xff]  ;;  %v1995_v39 = vld [vmem:[#allocation2 + $0x3f0] sm:$0xff] }
 0x22c   : > { %v2391_v2 = vadd.f32 %v2390_v1, %v2218_v61  ;;  %v2438_v24 = vadd.f32 %v2437_v8, %v2201_v21  ;;  %vm1911_vm2 = vcmp.lt.s32.totalorder %v3793_v12, 530  ;;  %v2207_v35 = vsel %vm1903_vm10, %v1967_v40, 0.0  ;;  %v1976_v62 = vld [vmem:[#allocation2 + $0x470] sm:$0xff]  ;;  %v1993_v40 = vld [vmem:[#allocation2 + $0x2c0] sm:$0xff] }
 0x22d   : > { %v2224_v56 = vsel %vm1909_vm0, %v1984_v9, 0.0  ;;  %v2340_v32 = vadd.f32 %v2339_v15, %v2223_v59  ;;  %v3826_v17 = vadd.s32 %v3558_v43, %v3689_v18  ;;  %v2229_v60 = vsel %vm1911_vm2, %v1989_v14, 0.0  ;;  %v1998_v8 = vld [vmem:[#allocation2 + $0x330] sm:$0xff]  ;;  %v1996_v15 = vld [vmem:[#allocation2 + $0x338] sm:$0xff] }
 0x22e   : > { %v2392_v5 = vadd.f32 %v2391_v2, %v2221_v7  ;;  %v2439_v31 = vadd.f32 %v2438_v24, %v2204_v57  ;;  %vm1912_vm3 = vcmp.lt.s32.totalorder %v3804_v13, 530  ;;  %v2210_v6 = vsel %vm1904_vm11, %v1970_v20, 0.0  ;;  %v1979_v7 = vld [vmem:[#allocation2 + $0x170] sm:$0xff] }
 0x22f   : > { %v2227_v21 = vsel %vm1910_vm1, %v1987_v27, 0.0  ;;  %v2341_v61 = vadd.f32 %v2340_v32, %v2226_v0  ;;  %v3837_v18 = vadd.s32 %v3558_v43, %v3692_v19  ;;  %v2232_v9 = vsel %vm1912_vm3, %v1992_v49, 0.0  ;;  %v2001_v2 = vld [vmem:[#allocation2 + $0x310] sm:$0xff] }
 0x230   : > { %v2393_v59 = vadd.f32 %v2392_v5, %v2224_v56  ;;  %v2440_v1 = vadd.f32 %v2439_v31, %v2207_v35  ;;  %vm1913_vm4 = vcmp.lt.s32.totalorder %v3815_v16, 530  ;;  %v2213_v23 = vsel %vm1905_vm12, %v1973_v33, 0.0  ;;  %v1982_v35 = vld [vmem:[#allocation2 + $0x20] sm:$0xff] }
 0x231   : > { %v2230_v14 = vsel %vm1911_vm2, %v1990_v4, 0.0  ;;  %v2342_v57 = vadd.f32 %v2341_v61, %v2229_v60  ;;  %v3848_v19 = vadd.s32 %v3558_v43, %v3695_v22  ;;  %v2235_v20 = vsel %vm1913_vm4, %v1995_v39, 0.0  ;;  %v1999_v56 = vld [vmem:[#allocation2 + $0x220] sm:$0xff]  ;;  %v2004_v60 = vld [vmem:[#allocation2 + $0x2e8] sm:$0xff] }
 0x232   : > { %v2394_v27 = vadd.f32 %v2393_v59, %v2227_v21  ;;  %v2441_v0 = vadd.f32 %v2440_v1, %v2210_v6  ;;  %vm1914_vm5 = vcmp.lt.s32.totalorder %v3826_v17, 530  ;;  %v2216_v30 = vsel %vm1906_vm13, %v1976_v62, 0.0  ;;  %v1985_v39 = vld [vmem:[#allocation2 + $0x60] sm:$0xff] }
 0x233   : > { %v2233_v24 = vsel %vm1912_vm3, %v1993_v40, 0.0  ;;  %v2343_v49 = vadd.f32 %v2342_v57, %v2232_v9  ;;  %v3859_v22 = vadd.s32 %v3558_v43, %v3702_v52  ;;  %v2238_v32 = vsel %vm1914_vm5, %v1998_v8, 0.0  ;;  %v2002_v6 = vld [vmem:[#allocation2 + $0x280] sm:$0xff] }
 0x234   : > { %v2395_v33 = vadd.f32 %v2394_v27, %v2230_v14  ;;  %v2442_v4 = vadd.f32 %v2441_v0, %v2213_v23  ;;  %vm1915_vm6 = vcmp.lt.s32.totalorder %v3837_v18, 530  ;;  %v2219_v42 = vsel %vm1907_vm14, %v1979_v7, 0.0  ;;  %v2007_v40 = vld [vmem:[#allocation2 + $0x3c0] sm:$0xff]  ;;  %v2010_v7 = vld [vmem:[#allocation2 + $0x270] sm:$0xff]  ;;  %v2008_v0 = vld [vmem:[#allocation2 + $0x418] sm:$0xff] }
 0x235   : > { %v2236_v5 = vsel %vm1913_vm4, %v1996_v15, 0.0  ;;  %v2344_v31 = vadd.f32 %v2343_v49, %v2235_v20  ;;  %v3870_v52 = vadd.s32 %v3558_v43, %v3705_v25  ;;  %v2241_v21 = vsel %vm1915_vm6, %v2001_v2, 0.0  ;;  %v1988_v1 = vld [vmem:[#allocation2 + $0xa0] sm:$0xff]  ;;  %v1991_v27 = vld [vmem:[#allocation2 + $0xd0] sm:$0xff] }
 0x236   : > { %v2396_v61 = vadd.f32 %v2395_v33, %v2233_v24  ;;  %v2443_v62 = vadd.f32 %v2442_v4, %v2216_v30  ;;  %vm1916_vm7 = vcmp.lt.s32.totalorder %v3848_v19, 530  ;;  %v2222_v11 = vsel %vm1908_vm15, %v1982_v35, 0.0  ;;  %v2005_v8 = vld [vmem:[#allocation2 + $0x120] sm:$0xff] }
 0x237   : > { %v2239_v9 = vsel %vm1914_vm5, %v1999_v56, 0.0  ;;  %v2345_v59 = vadd.f32 %v2344_v31, %v2238_v32  ;;  %v3881_v25 = vadd.s32 %v3558_v43, %v3710_v29  ;;  %v2244_v23 = vsel %vm1916_vm7, %v2004_v60, 0.0  ;;  %v2013_v49 = vld [vmem:[#allocation2 + $0x140] sm:$0xff]  ;;  %v1994_v32 = vld [vmem:[#allocation2 + $0x3f8] sm:$0xff] }
 0x238   : > { %v2397_v14 = vadd.f32 %v2396_v61, %v2236_v5  ;;  %v2444_v57 = vadd.f32 %v2443_v62, %v2219_v42  ;;  %vm1917_vm8 = vcmp.lt.s32.totalorder %v3859_v22, 530  ;;  %v2225_v26 = vsel %vm1909_vm0, %v1985_v39, 0.0  ;;  %v2011_v33 = vld [vmem:[#allocation2 + $0x200] sm:$0xff]  ;;  %v2016_v5 = vld [vmem:[#allocation2 + $0x128] sm:$0xff] }
 0x239   : > { %v2242_v15 = vsel %vm1915_vm6, %v2002_v6, 0.0  ;;  %v2346_v20 = vadd.f32 %v2345_v59, %v2241_v21  ;;  %v3892_v29 = vadd.s32 %v3558_v43, %v3713_v3  ;;  %v2247_v2 = vsel %vm1917_vm8, %v2007_v40, 0.0  ;;  %v1997_v6 = vld [vmem:[#allocation2 + $0x248] sm:$0xff]  ;;  %v2014_v21 = vld [vmem:[#allocation2 + $0x3a0] sm:$0xff] }
 0x23a   : > { %v2398_v30 = vadd.f32 %v2397_v14, %v2239_v9  ;;  %v2445_v24 = vadd.f32 %v2444_v57, %v2222_v11  ;;  %vm1918_vm9 = vcmp.lt.s32.totalorder %v3870_v52, 530  ;;  %v2228_v28 = vsel %vm1910_vm1, %v1988_v1, 0.0  ;;  %v2019_v11 = vld [vmem:[#allocation2 + $0x130] sm:$0xff]  ;;  %v2000_v1 = vld [vmem:[#allocation2 + $0x1b8] sm:$0xff] }
 0x23b   : > { %v2245_v35 = vsel %vm1916_vm7, %v2005_v8, 0.0  ;;  %v2347_v56 = vadd.f32 %v2346_v20, %v2244_v23  ;;  %v3903_v3 = vadd.s32 %v3558_v43, %v3721_v34  ;;  %v2250_v4 = vsel %vm1918_vm9, %v2010_v7, 0.0  ;;  %v2017_v8 = vld [vmem:[#allocation2 + $0x160] sm:$0xff]  ;;  %v2022_v7 = vld [vmem:[#allocation2 + $0x228] sm:$0xff] }
 0x23c   : > { %v2399_v60 = vadd.f32 %v2398_v30, %v2242_v15  ;;  %v2446_v42 = vadd.f32 %v2445_v24, %v2225_v26  ;;  %vm1919_vm10 = vcmp.lt.s32.totalorder %v3881_v25, 530  ;;  %v2231_v48 = vsel %vm1911_vm2, %v1991_v27, 0.0  ;;  %v2003_v20 = vld [vmem:[#allocation2 + $0x288] sm:$0xff]  ;;  %v2020_v27 = vld [vmem:[#allocation2 + $0x318] sm:$0xff]  ;;  %v2025_v24 = vld [vmem:[#allocation2 + $0x1c0] sm:$0xff] }
 0x23d   : > { %v2248_v31 = vsel %vm1917_vm8, %v2008_v0, 0.0  ;;  %v2348_v39 = vadd.f32 %v2347_v56, %v2247_v2  ;;  %v3914_v34 = vadd.s32 %v3558_v43, %v3724_v36  ;;  %v2253_v61 = vsel %vm1919_vm10, %v2013_v49, 0.0  ;;  %v2023_v56 = vld [vmem:[#allocation2 + $0x410] sm:$0xff] }
 0x23e   : > { %v2400_v62 = vadd.f32 %v2399_v60, %v2245_v35  ;;  %v2447_v40 = vadd.f32 %v2446_v42, %v2228_v28  ;;  %vm1920_vm11 = vcmp.lt.s32.totalorder %v3892_v29, 530  ;;  %v2234_v12 = vsel %vm1912_vm3, %v1994_v32, 0.0  ;;  %v2006_v35 = vld [vmem:[#allocation2 + $0x2c8] sm:$0xff]  ;;  %v2028_v60 = vld [vmem:[#allocation2 + $0x400] sm:$0xff] }
 0x23f   : > { %v2251_v9 = vsel %vm1918_vm9, %v2011_v33, 0.0  ;;  %v2349_v59 = vadd.f32 %v2348_v39, %v2250_v4  ;;  %v3925_v36 = vadd.s32 %v3558_v43, %v3727_v37  ;;  %v2256_v23 = vsel %vm1920_vm11, %v2016_v5, 0.0 }
 0x240   : > { %v2401_v14 = vadd.f32 %v2400_v62, %v2248_v31  ;;  %v2448_v57 = vadd.f32 %v2447_v40, %v2231_v48  ;;  %vm1921_vm12 = vcmp.lt.s32.totalorder %v3903_v3, 530  ;;  %v2237_v13 = vsel %vm1913_vm4, %v1997_v6, 0.0  ;;  %v2009_v48 = vld [vmem:[#allocation2 + $0x70] sm:$0xff]  ;;  %v2026_v31 = vld [vmem:[#allocation2 + $0x358] sm:$0xff] }
 0x241   : > { %v2254_v26 = vsel %vm1919_vm10, %v2014_v21, 0.0  ;;  %v2350_v15 = vadd.f32 %v2349_v59, %v2253_v61  ;;  %v3936_v37 = vadd.s32 %v3558_v43, %v3730_v38  ;;  %v2259_v0 = vsel %vm1921_vm12, %v2019_v11, 0.0  ;;  %v2031_v61 = vld [vmem:[#allocation2 + $0x230] sm:$0xff]  ;;  %v2012_v11 = vld [vmem:[#allocation2 + $0x1a0] sm:$0xff] }
 0x242   : > { %v2402_v2 = vadd.f32 %v2401_v14, %v2251_v9  ;;  %v2449_v30 = vadd.f32 %v2448_v57, %v2234_v12  ;;  %vm1922_vm13 = vcmp.lt.s32.totalorder %v3914_v34, 530  ;;  %v2240_v16 = vsel %vm1914_vm5, %v2000_v1, 0.0  ;;  %v2029_v12 = vld [vmem:[#allocation2 + $0x1b0] sm:$0xff]  ;;  %v2015_v57 = vld [vmem:[#allocation2 + $0xf8] sm:$0xff] }
 0x243   : > { %v2257_v49 = vsel %vm1920_vm11, %v2017_v8, 0.0  ;;  %v2351_v28 = vadd.f32 %v2350_v15, %v2256_v23  ;;  %v3947_v38 = vadd.s32 %v3558_v43, %v3733_v41  ;;  %v2262_v32 = vsel %vm1922_vm13, %v2022_v7, 0.0  ;;  %v2034_v8 = vld [vmem:[#allocation2 + $0x2d0] sm:$0xff]  ;;  %v2032_v7 = vld [vmem:[#allocation2 + $0xb8] sm:$0xff] }
 0x244   : > { %v2403_v33 = vadd.f32 %v2402_v2, %v2254_v26  ;;  %v2450_v4 = vadd.f32 %v2449_v30, %v2237_v13  ;;  %vm1923_vm14 = vcmp.lt.s32.totalorder %v3925_v36, 530  ;;  %v2243_v17 = vsel %vm1915_vm6, %v2003_v20, 0.0  ;;  %v2037_v20 = vld [vmem:[#allocation2 + $0x218] sm:$0xff]  ;;  %v2018_v2 = vld [vmem:[#allocation2 + $0x2a8] sm:$0xff] }
 0x245   : > { %v2260_v42 = vsel %vm1921_vm12, %v2020_v27, 0.0  ;;  %v2352_v5 = vadd.f32 %v2351_v28, %v2259_v0  ;;  %v3958_v41 = vadd.s32 %v3558_v43, %v3740_v10  ;;  %v2265_v39 = vsel %vm1923_vm14, %v2025_v24, 0.0 }
 0x246   : > { %v2404_v6 = vadd.f32 %v2403_v33, %v2257_v49  ;;  %v2451_v21 = vadd.f32 %v2450_v4, %v2240_v16  ;;  %vm1924_vm15 = vcmp.lt.s32.totalorder %v3936_v37, 530  ;;  %v2246_v18 = vsel %vm1916_vm7, %v2006_v35, 0.0  ;;  %v2040_v16 = vld [vmem:[#allocation2 + $0x110] sm:$0xff]  ;;  %v2021_v35 = vld [vmem:[#allocation2 + $0x268] sm:$0xff] }
 0x247   : > { %v2263_v62 = vsel %vm1922_vm13, %v2023_v56, 0.0  ;;  %v2353_v40 = vadd.f32 %v2352_v5, %v2262_v32  ;;  %v3969_v10 = vadd.s32 %v3558_v43, %v3755_v47  ;;  %v2268_v9 = vsel %vm1924_vm15, %v2028_v60, 0.0  ;;  %v2038_v56 = vld [vmem:[#allocation2 + $0x1f0] sm:$0xff]  ;;  %v2043_v60 = vld [vmem:[#allocation2 + $0x3d8] sm:$0xff] }
 0x248   : > { %v2405_v59 = vadd.f32 %v2404_v6, %v2260_v42  ;;  %v2452_v1 = vadd.f32 %v2451_v21, %v2243_v17  ;;  %vm1925_vm0 = vcmp.lt.s32.totalorder %v3947_v38, 530  ;;  %v2249_v19 = vsel %vm1917_vm8, %v2009_v48, 0.0  ;;  %v2024_v5 = vld [vmem:[#allocation2 + $0x210] sm:$0xff]  ;;  %v2041_v48 = vld [vmem:[#allocation2 + $0x460] sm:$0xff]  ;;  %v2046_v21 = vld [vmem:[#allocation2 + $0x118] sm:$0xff] }
 0x249   : > { %v2266_v23 = vsel %vm1923_vm14, %v2026_v31, 0.0  ;;  %v2354_v14 = vadd.f32 %v2353_v40, %v2265_v39  ;;  %v3980_v47 = vadd.s32 %v3558_v43, %v3758_v63  ;;  %v2271_v13 = vsel %vm1925_vm0, %v2031_v61, 0.0  ;;  %v2035_v43 = vld [vmem:[#allocation2 + $0x78] sm:$0xff]  ;;  %v2044_v40 = vld [vmem:[#allocation2 + $0xa8] sm:$0xff] }
 0x24a   : > { %v2406_v26 = vadd.f32 %v2405_v59, %v2263_v62  ;;  %v2453_v15 = vadd.f32 %v2452_v1, %v2246_v18  ;;  %vm1926_vm1 = vcmp.lt.s32.totalorder %v3958_v41, 530  ;;  %v2252_v22 = vsel %vm1918_vm9, %v2012_v11, 0.0  ;;  %v2027_v62 = vld [vmem:[#allocation2 + $0x8] sm:$0xff]  ;;  %v2049_v59 = vld [vmem:[#allocation2 + $0x138] sm:$0xff] }
 0x24b   : > { %v2269_v27 = vsel %vm1924_vm15, %v2029_v12, 0.0  ;;  %v2355_v0 = vadd.f32 %v2354_v14, %v2268_v9  ;;  %v2274_v63 = vsel %vm1926_vm1, %v2034_v8, 0.0  ;;  %vm1927_vm2 = vcmp.lt.s32.totalorder %v3969_v10, 530 }
 0x24c   : > { %v2407_v30 = vadd.f32 %v2406_v26, %v2266_v23  ;;  %v2454_v24 = vadd.f32 %v2453_v15, %v2249_v19  ;;  %v2255_v49 = vsel %vm1919_vm10, %v2015_v57, 0.0  ;;  %v2272_v52 = vsel %vm1925_vm0, %v2032_v7, 0.0  ;;  %v2030_v19 = vld [vmem:[#allocation2 + $0x328] sm:$0xff]  ;;  %v2047_v23 = vld [vmem:[#allocation2] sm:$0xff] }
 0x24d   : > { %v2356_v28 = vadd.f32 %v2355_v0, %v2271_v13  ;;  %v2277_v32 = vsel %vm1927_vm2, %v2037_v20, 0.0  ;;  %vm1928_vm3 = vcmp.lt.s32.totalorder %v3980_v47, 530  ;;  %v2258_v17 = vsel %vm1920_vm11, %v2018_v2, 0.0  ;;  %v2052_v13 = vld [vmem:[#allocation2 + $0x260] sm:$0xff]  ;;  %v2033_v20 = vld [vmem:[#allocation2 + $0x468] sm:$0xff] }
 0x24e   : > { %v2408_v33 = vadd.f32 %v2407_v30, %v2269_v27  ;;  %v2455_v4 = vadd.f32 %v2454_v24, %v2252_v22  ;;  %v2275_v25 = vsel %vm1926_vm1, %v2035_v43, 0.0  ;;  %v2280_v31 = vsel %vm1928_vm3, %v2040_v16, 0.0  ;;  %v2050_v22 = vld [vmem:[#allocation2 + $0xd8] sm:$0xff]  ;;  %v2055_v43 = vld [vmem:[#allocation2 + $0x28] sm:$0xff] }
 0x24f   : > { %v2357_v42 = vadd.f32 %v2356_v28, %v2274_v63  ;;  %vm1929_vm4 = vcmp.lt.s32.totalorder %v3561_v44, 530  ;;  %v2261_v61 = vsel %vm1921_vm12, %v2021_v35, 0.0  ;;  %v2278_v29 = vsel %vm1927_vm2, %v2038_v56, 0.0  ;;  %v2036_v24 = vld [vmem:[#allocation2 + $0x2f8] sm:$0xff]  ;;  %v2058_v35 = vld [vmem:[#allocation2 + $0x440] sm:$0xff] }
 0x250   : > { %v2409_v39 = vadd.f32 %v2408_v33, %v2272_v52  ;;  %v2456_v6 = vadd.f32 %v2455_v4, %v2255_v49  ;;  %v2283_v11 = vsel %vm1929_vm4, %v2043_v60, 0.0  ;;  %vm1930_vm5 = vcmp.lt.s32.totalorder %v3564_v45, 530  ;;  %v2053_v16 = vld [vmem:[#allocation2 + $0x3b8] sm:$0xff]  ;;  %v2056_v4 = vld [vmem:[#allocation2 + $0x108] sm:$0xff] }
 0x251   : > { %v2358_v18 = vadd.f32 %v2357_v42, %v2277_v32  ;;  %v2264_v1 = vsel %vm1922_vm13, %v2024_v5, 0.0  ;;  %v2281_v3 = vsel %vm1928_vm3, %v2041_v48, 0.0  ;;  %v2286_v14 = vsel %vm1930_vm5, %v2046_v21, 0.0  ;;  %v2039_v33 = vld [vmem:[#allocation2 + $0x178] sm:$0xff]  ;;  %v2061_v42 = vld [vmem:[#allocation2 + $0x50] sm:$0xff] }
 0x252   : > { %v2410_v12 = vadd.f32 %v2409_v39, %v2275_v25  ;;  %v2457_v9 = vadd.f32 %v2456_v6, %v2258_v17  ;;  %vm1931_vm6 = vcmp.lt.s32.totalorder %v3567_v46, 530  ;;  %v2267_v26 = vsel %vm1923_vm14, %v2027_v62, 0.0  ;;  %v2059_v39 = vld [vmem:[#allocation2 + $0x158] sm:$0xff] }
 0x253   : > { %v2359_v8 = vadd.f32 %v2358_v18, %v2280_v31  ;;  %v2284_v34 = vsel %vm1929_vm4, %v2044_v40, 0.0  ;;  %v2289_v27 = vsel %vm1931_vm6, %v2049_v59, 0.0  ;;  %vm1932_vm7 = vcmp.lt.s32.totalorder %v3570_v50, 530  ;;  %v2042_v31 = vld [vmem:[#allocation2 + $0x2a0] sm:$0xff]  ;;  %v2045_v40 = vld [vmem:[#allocation2 + $0x1d8] sm:$0xff] }
 0x254   : > { %v2411_v57 = vadd.f32 %v2410_v12, %v2278_v29  ;;  %v2458_v7 = vadd.f32 %v2457_v9, %v2261_v61  ;;  %v2270_v63 = vsel %vm1924_vm15, %v2030_v19, 0.0  ;;  %v2287_v36 = vsel %vm1930_vm5, %v2047_v23, 0.0  ;;  %v2064_v29 = vld [vmem:[#allocation2 + $0x2e0] sm:$0xff]  ;;  %v2048_v19 = vld [vmem:[#allocation2 + $0x478] sm:$0xff]  ;;  %v2065_v23 = vld [vmem:[#allocation2 + $0x3e8] sm:$0xff] }
 0x255   : > { %v2360_v15 = vadd.f32 %v2359_v8, %v2283_v11  ;;  %v2292_v49 = vsel %vm1932_vm7, %v2052_v13, 0.0  ;;  %vm1933_vm8 = vcmp.lt.s32.totalorder %v3573_v51, 530  ;;  %v2273_v56 = vsel %vm1925_vm0, %v2033_v20, 0.0  ;;  %v2062_v11 = vld [vmem:[#allocation2 + $0x308] sm:$0xff]  ;;  %v2068_v20 = vld [vmem:[#allocation2 + $0x190] sm:$0xff] }
 0x256   : > { %v2412_v0 = vadd.f32 %v2411_v57, %v2281_v3  ;;  %v2459_v2 = vadd.f32 %v2458_v7, %v2264_v1  ;;  %v2290_v37 = vsel %vm1931_vm6, %v2050_v22, 0.0  ;;  %v2295_v60 = vsel %vm1933_vm8, %v2055_v43, 0.0  ;;  %v2067_v1 = vld [vmem:[#allocation2 + $0x1c8] sm:$0xff]  ;;  %v2073_v43 = vld [vmem:[#allocation2 + $0x90] sm:$0xff] }
 0x257   : > { %v2361_v30 = vadd.f32 %v2360_v15, %v2286_v14  ;;  %vm1934_vm9 = vcmp.lt.s32.totalorder %v3576_v53, 530  ;;  %v2276_v5 = vsel %vm1926_vm1, %v2036_v24, 0.0  ;;  %v2293_v38 = vsel %vm1932_vm7, %v2053_v16, 0.0  ;;  %v2070_v13 = vld [vmem:[#allocation2 + $0xe8] sm:$0xff]  ;;  %v2051_v15 = vld [vmem:[#allocation2 + $0x2d8] sm:$0xff]  ;;  %v2071_v24 = vld [vmem:[#allocation2 + $0xf0] sm:$0xff] }
 0x258   : > { %v2413_v52 = vadd.f32 %v2412_v0, %v2284_v34  ;;  %v2460_v28 = vadd.f32 %v2459_v2, %v2267_v26  ;;  %v2298_v6 = vsel %vm1934_vm9, %v2058_v35, 0.0  ;;  %vm1935_vm10 = vcmp.lt.s32.totalorder %v3579_v54, 530  ;;  %v4197_v2 = vld [vmem:[#allocation6_spill] sm:$0xff] }
 0x259   : > { %v2362_v32 = vadd.f32 %v2361_v30, %v2289_v27  ;;  %v2279_v18 = vsel %vm1927_vm2, %v2039_v33, 0.0  ;;  %v2296_v41 = vsel %vm1933_vm8, %v2056_v4, 0.0  ;;  %v2301_v12 = vsel %vm1935_vm10, %v2061_v42, 0.0  ;;  %v2054_v30 = vld [vmem:[#allocation2 + $0x180] sm:$0xff]  ;;  %v2076_v35 = vld [vmem:[#allocation2 + $0x388] sm:$0xff] }
 0x25a   : > { %v2414_v17 = vadd.f32 %v2413_v52, %v2287_v36  ;;  %v2461_v25 = vadd.f32 %v2460_v28, %v2270_v63  ;;  %vm1936_vm11 = vcmp.lt.s32.totalorder %v3582_v55, 530  ;;  %v2282_v3 = vsel %vm1928_vm3, %v2042_v31, 0.0  ;;  %v4198_v28 = vld [vmem:[#allocation7_spill] sm:$0xff]  ;;  %v2074_v33 = vld [vmem:[#allocation2 + $0x1e0] sm:$0xff] }
 0x25b   : > { %v2363_v48 = vadd.f32 %v2362_v32, %v2292_v49  ;;  %v2299_v10 = vsel %vm1934_vm9, %v2059_v39, 0.0  ;;  %v2304_v14 = vsel %vm1936_vm11, %v2064_v29, 0.0  ;;  %vm1937_vm12 = vcmp.lt.s32.totalorder %v3585_v58, 530  ;;  %v2057_v32 = vld [vmem:[#allocation2 + $0x378] sm:$0xff]  ;;  %v2079_v42 = vld [vmem:[#allocation2 + $0x428] sm:$0xff]  ;;  %v2077_v31 = vld [vmem:[#allocation2 + $0x430] sm:$0xff] }
 0x25c   : > { %v2415_v21 = vadd.f32 %v2414_v17, %v2290_v37  ;;  %v2462_v61 = vadd.f32 %v2461_v25, %v2273_v56  ;;  %v2285_v26 = vsel %vm1929_vm4, %v2045_v40, 0.0  ;;  %v2302_v47 = vsel %vm1935_vm10, %v2062_v11, 0.0  ;;  %v4199_v25 = vld [vmem:[#allocation8_spill] sm:$0xff]  ;;  %v2082_v29 = vld [vmem:[#allocation2 + $0x40] sm:$0xff]  ;;  %v2072_v54 = vld [vmem:[#allocation2 + $0x168] sm:$0xff] }
 0x25d   : > { %v2364_v62 = vadd.f32 %v2363_v48, %v2295_v60  ;;  %v2307_v22 = vsel %vm1937_vm12, %v2067_v1, 0.0  ;;  %vm1938_vm13 = vcmp.lt.s32.totalorder %v4197_v2, 530  ;;  %v2288_v63 = vsel %vm1930_vm5, %v2048_v19, 0.0  ;;  %v2060_v48 = vld [vmem:[#allocation2 + $0x360] sm:$0xff]  ;;  %v2080_v40 = vld [vmem:[#allocation2 + $0x238] sm:$0xff]  ;;  %v2083_v19 = vld [vmem:[#allocation2 + $0x150] sm:$0xff] }
 0x25e   : > { %v2416_v9 = vadd.f32 %v2415_v21, %v2293_v38  ;;  %v2463_v59 = vadd.f32 %v2462_v61, %v2276_v5  ;;  %v2305_v44 = vsel %vm1936_vm11, %v2065_v23, 0.0  ;;  %v2310_v16 = vsel %vm1938_vm13, %v2070_v13, 0.0  ;;  %v4200_v61 = vld [vmem:[#allocation9_spill] sm:$0xff] }
 0x25f   : > { %v2365_v8 = vadd.f32 %v2364_v62, %v2298_v6  ;;  %vm1939_vm14 = vcmp.lt.s32.totalorder %v4198_v28, 530  ;;  %v2291_v56 = vsel %vm1931_vm6, %v2051_v15, 0.0  ;;  %v2308_v45 = vsel %vm1937_vm12, %v2068_v20, 0.0  ;;  %v2063_v62 = vld [vmem:[#allocation2 + $0x340] sm:$0xff]  ;;  %v2085_v1 = vld [vmem:[#allocation2 + $0x98] sm:$0xff] }
 0x260   : > { %v2417_v57 = vadd.f32 %v2416_v9, %v2296_v41  ;;  %v2464_v7 = vadd.f32 %v2463_v59, %v2279_v18  ;;  %v2313_v4 = vsel %vm1939_vm14, %v2073_v43, 0.0  ;;  %vm1940_vm15 = vcmp.lt.s32.totalorder %v4199_v25, 530  ;;  %v4201_v59 = vld [vmem:[#allocation10_spill] sm:$0xff]  ;;  %v2081_v58 = vld [vmem:[#allocation2 + $0x2b8] sm:$0xff] }
 0x261   : > { %v2366_v34 = vadd.f32 %v2365_v8, %v2301_v12  ;;  %v2294_v5 = vsel %vm1932_vm7, %v2054_v30, 0.0  ;;  %v2311_v46 = vsel %vm1938_vm13, %v2071_v24, 0.0  ;;  %v2316_v39 = vsel %vm1940_vm15, %v2076_v35, 0.0  ;;  %v2066_v8 = vld [vmem:[#allocation2 + $0x250] sm:$0xff] }
 0x262   : > { %v2418_v27 = vadd.f32 %v2417_v57, %v2299_v10  ;;  %v2465_v0 = vadd.f32 %v2464_v7, %v2282_v3  ;;  %vm1941_vm0 = vcmp.lt.s32.totalorder %v4200_v61, 530  ;;  %v2297_v18 = vsel %vm1933_vm8, %v2057_v32, 0.0  ;;  %v4202_v7 = vld [vmem:[#allocation11_spill] sm:$0xff] }
 0x263   : > { %v2367_v36 = vadd.f32 %v2366_v34, %v2304_v14  ;;  %v2314_v50 = vsel %vm1939_vm14, %v2074_v33, 0.0  ;;  %v2319_v11 = vsel %vm1941_vm0, %v2079_v42, 0.0  ;;  %vm1942_vm1 = vcmp.lt.s32.totalorder %v4201_v59, 530  ;;  %v2086_v34 = vld [vmem:[#allocation2 + $0x58] sm:$0xff] }
 0x264   : > { %v2419_v49 = vadd.f32 %v2418_v27, %v2302_v47  ;;  %v2466_v52 = vadd.f32 %v2465_v0, %v2285_v26  ;;  %v2300_v3 = vsel %vm1934_vm9, %v2060_v48, 0.0  ;;  %v2317_v51 = vsel %vm1940_vm15, %v2077_v31, 0.0  ;;  %v2069_v47 = vld [vmem:[#allocation2 + $0x3d0] sm:$0xff]  ;;  %v2087_v31 = vld [vmem:[#allocation2 + $0x188] sm:$0xff] }
 0x265   : > { %v2368_v37 = vadd.f32 %v2367_v36, %v2307_v22  ;;  %v2322_v23 = vsel %vm1942_vm1, %v2082_v29, 0.0  ;;  %vm1943_vm2 = vcmp.lt.s32.totalorder %v4202_v7, 530  ;;  %v2303_v13 = vsel %vm1935_vm10, %v2063_v62, 0.0 }
 0x266   : > { %v2420_v60 = vadd.f32 %v2419_v49, %v2305_v44  ;;  %v2467_v17 = vadd.f32 %v2466_v52, %v2288_v63  ;;  %v2320_v53 = vsel %vm1941_vm0, %v2080_v40, 0.0  ;;  %v2325_v15 = vsel %vm1943_vm2, %v2085_v1, 0.0 }
 0x267   : > { %v2369_v38 = vadd.f32 %v2368_v37, %v2310_v16  ;;  %v2306_v27 = vsel %vm1936_vm11, %v2066_v8, 0.0  ;;  %v2323_v0 = vsel %vm1942_vm1, %v2083_v19, 0.0  ;;  %v2309_v36 = vsel %vm1937_vm12, %v2069_v47, 0.0  ;;  %v2075_v16 = vld [vmem:[#allocation2 + $0x38] sm:$0xff] }
 0x268   : > { %v2421_v6 = vadd.f32 %v2420_v60, %v2308_v45  ;;  %v2468_v21 = vadd.f32 %v2467_v17, %v2291_v56  ;;  %v2326_v30 = vsel %vm1943_vm2, %v2086_v34, 0.0  ;;  %v2312_v55 = vsel %vm1938_vm13, %v2072_v54, 0.0  ;;  %v2078_v56 = vld [vmem:[#allocation2 + $0x80] sm:$0xff] }
 0x269   : > { %v2370_v41 = vadd.f32 %v2369_v38, %v2313_v4  ;;  %v2315_v32 = vsel %vm1939_vm14, %v2075_v16, 0.0  ;;  %v2318_v17 = vsel %vm1940_vm15, %v2078_v56, 0.0  ;;  %v2321_v2 = vsel %vm1941_vm0, %v2081_v58, 0.0 }
 0x26a   : > { %v2422_v12 = vadd.f32 %v2421_v6, %v2311_v46  ;;  %v2469_v9 = vadd.f32 %v2468_v21, %v2294_v5  ;;  %v2084_v5 = vld [vmem:[#allocation2 + $0x3a8] sm:$0xff]  ;;  %v2327_v25 = vsel %vm1943_vm2, %v2087_v31, 0.0  ;;  %vm2492_vm3 = vcmask 1040384  }
 0x26b   : > { %v2371_v10 = vadd.f32 %v2370_v41, %v2316_v39  ;;  %v2324_v28 = vsel %vm1942_vm1, %v2084_v5, 0.0  ;;  %vm2494_vm4 = vcmask 1041408   ;;  %v4203_v19 = vlaneseq }
 0x26c   : > { %v2423_v14 = vadd.f32 %v2422_v12, %v2314_v50  ;;  %v2470_v57 = vadd.f32 %v2469_v9, %v2297_v18 }
 0x26d   : > { %v2372_v26 = vadd.f32 %v2371_v10, %v2319_v11  ;;  %vm2499_vm5 = vcmp.lt.s32.totalorder %v4203_v19, 384 }
 0x26e   : > { %v2424_v20 = vadd.f32 %v2423_v14, %v2317_v51  ;;  %v2471_v22 = vadd.f32 %v2470_v57, %v2300_v3 }
 0x26f   : > { %v2373_v43 = vadd.f32 %v2372_v26, %v2322_v23 }
 0x270   : > { %v2425_v63 = vadd.f32 %v2424_v20, %v2320_v53  ;;  %v2472_v44 = vadd.f32 %v2471_v22, %v2303_v13 }
 0x271   : > { %v2374_v24 = vadd.f32 %v2373_v43, %v2325_v15 }
 0x272   : > { %v2426_v49 = vadd.f32 %v2425_v63, %v2323_v0  ;;  %v2473_v52 = vadd.f32 %v2472_v44, %v2306_v27 }
 0x273   : > { %v2375_v35 = vrot.slane %v2374_v24, 4 }
 0x274   : > { %v2427_v45 = vadd.f32 %v2426_v49, %v2326_v30  ;;  %v2474_v37 = vadd.f32 %v2473_v52, %v2309_v36 }
 0x275   : > { %v2376_v33 = vadd.f32 %v2375_v35, %v2374_v24 }
 0x276   : > { %v2428_v4 = vrot.slane %v2427_v45, 4  ;;  %v2475_v60 = vadd.f32 %v2474_v37, %v2312_v55 }
 0x277   : > { %v2377_v42 = vrot.slane %v2376_v33, 2 }
 0x278   : > { %v2429_v46 = vadd.f32 %v2428_v4, %v2427_v45  ;;  %v2476_v38 = vadd.f32 %v2475_v60, %v2315_v32 }
 0x279   : > { %v2378_v48 = vadd.f32 %v2377_v42, %v2376_v33 }
 0x27a   : > { %v2430_v39 = vrot.slane %v2429_v46, 2  ;;  %v2477_v6 = vadd.f32 %v2476_v38, %v2318_v17 }
 0x27b   : > { %v2379_v21 = vrot.slane %v2378_v48, 1 }
 0x27c   : > { %v2431_v29 = vadd.f32 %v2430_v39, %v2429_v46  ;;  %v2478_v18 = vadd.f32 %v2477_v6, %v2321_v2 }
 0x27d   : > { %v2380_v62 = vadd.f32 %v2379_v21, %v2378_v48 }
 0x27e   : > { %v2432_v50 = vrot.slane %v2431_v29, 1  ;;  %v2479_v41 = vadd.f32 %v2478_v18, %v2324_v28 }
 0x280   : > { %v2433_v40 = vadd.f32 %v2432_v50, %v2431_v29  ;;  %v2480_v61 = vadd.f32 %v2479_v41, %v2327_v25 }
 0x282   : > { %v2481_v11 = vrot.slane %v2480_v61, 4  ;;  %v2490_v12 = vrot.slane %v2433_v40, 7 }
 0x284   : > { %v2482_v9 = vadd.f32 %v2481_v11, %v2480_v61  ;;  %v2493_v1 = vsel %vm2492_vm3, %v2380_v62, %v2490_v12 }
 0x286   : > { %v2483_v3 = vrot.slane %v2482_v9, 2 }
 0x288   : > { %v2484_v59 = vadd.f32 %v2483_v3, %v2482_v9 }
 0x28a   : > { %v2485_v51 = vrot.slane %v2484_v59, 1 }
 0x28c   : > { %v2486_v10 = vadd.f32 %v2485_v51, %v2484_v59 }
 0x28e   : > { %v2491_v8 = vrot.slane %v2486_v10, 6 }
 0x290   : > { %v2495_v23 = vsel %vm2494_vm4, %v2493_v1, %v2491_v8 }
 0x291   : > { %2501 = vst.msk [vmem:[%s163_s17] sm:$0x7] %vm2499_vm5, %v2495_v23 }
 0x292 PF: > { %s2609_s12 = smul.u32 3, %s2769_s13  ;;  %s2515_s30 = sshll.u32 %s163_s17, 4  ;;  %s2516_s30 = int_to_ptr.vmem [resolvable:$true] %s2515_s30 }
 0x293   : > { %s2503_s7 = scalar_lea.sflag [#allocation4], %s161_s26  ;;  %s2707_s28 = scalar_lea.hbm %s4181_s2, 6 }
 0x294   : > { %s2513_s5 = scalar_lea.hbm %s4181_s2, %s2609_s12 }
 0x295   : > { %s2517_s6 = sshll.u32 %s2513_s5, 4  ;;  %s2518_s6 = int_to_ptr.hbm [resolvable:$true] %s2517_s6 }
 0x296   : > { %s2701_s8 = sshra.s32 %s2518_s6, 4  ;;  %s2702_s8 = int_to_ptr.hbm [resolvable:$true] %s2701_s8 }
 0x297   : > { %s2703_s18 = scalar_lea.hbm %s2702_s8, 3  ;;  %p2708_p8 = scmp.lt.s32.totalorder %s2702_s8, %s4181_s2 }
 0x298   : > { %p2704_p5 = scmp.ne.s32.totalorder %s2702_s8, %s2703_s18  ;;  %p2709_p10 = scmp.lt.s32.totalorder %s2707_s28, %s2703_s18 }
 0x29a   : > { %p2705_p6 = pnand %p2704_p5, %p2850_p3  ;;  %p2710_p11 = por %p2709_p10, %p2708_p8 }
 0x29c   : > { %p2706_p7 = pneg %p2705_p6 }
 0x29e   : > { %p2711_p12 = pnand %p2710_p11, %p2706_p7 }
 0x2a0   : > { %2714 = shalt.err (!%p2711_p12)
}
 0x2a1   : > { %2610 = dma.vmem_to_hbm [thread:$0]  (%p2850_p3), %s2516_s30, 48, %s2518_s6, %s2503_s7  }
 0x2a2 PF: > { %p2616_p13 = scmp.ge.s32.totalorder %s2781_s16, 2  ;;  %s2529_s26 = sand.u32 1, %s2753_s9  }
 0x2a3   : > { %s2530_s27 = scalar_lea.sflag [#allocation4], %s2529_s26 }
 0x2a4   : > { %p2613_p0 = pnand %p2616_p13, %p2860_p9 }
 0x2a6   : > { %p2614_p1 = pneg %p2613_p0 }
 0x2a8   : > { %2748 = dma.done.wait (%p2614_p1), %s2530_s27, 48  }
 0x2a9   : > { %2750 = vsyncadd (%p2614_p1), %s2530_s27, 4294967248  ;;  %s15_s16 = sadd.s32 1, %s2781_s16   ;;  %s4204_s9 = smov %s2757_s10 }
 0x2aa   : > { %p12_p2 = scmp.ge.s32.totalorder %s15_s16, 6   ;;  %s4205_s10 = smov %s2761_s11 }
 0x2ab   : > { %s4206_s11 = smov %s2868_s25  ;;  %s4207_s12 = smov %s2773_s14 }
 0x2ac   : > { %s4208_s13 = smov %s2777_s15  ;;  %s4209_s14 = smov %s4212_s19 }
 0x2ad   : > { %s4210_s15 = smov %s4216_s20  ;;  %14 = sbr.rel (!%p12_p2) target bundleno = 5 (0x5), region = 78 }
 0x2b2   :  { %2536 = vsyncpa [#allocation4], 1 }
 0x2b3   :  { %2538 = vsyncpa [#allocation4 + $0x1], 1 }

</bundles_post_ra>
